<compile_context>
chip_gen: v7x
topology: tpu7x:2x2x1
jax: 0.10.0
libtpu: 0.0.40
codegen_flags: <defaults>
</compile_context>

<pallas_src>
import functools

import jax
import jax.numpy as jnp
from jax.experimental import pallas as pl
from jax.experimental.pallas import tpu as pltpu

H = W = 28           # spatial size implied by fc = Linear(14*14*32, 10)
K = 5                # conv kernel size
COUT = 32            # conv output channels
PW = 32              # padded width  (2 + 28 + 2)
PH = 32              # padded height (2 + 28 + 2)
POOL = 14            # spatial size after 2x2 max-pool
FC_OUT = 10
BN_EPS = 1e-5

IM2ROW_K = K * PW            # 160 : im2row contraction depth (kh*32 + j)
WP_PAD = 16                  # pooled-w slots padded 14 -> 16 (lane alignment)
HALF = WP_PAD * COUT         # 512 : one parity half,  col = wp*32 + c
CONV_N = 2 * HALF            # 1024: conv output lanes, col = parity*512 + wp*32 + c


def fused_kernel(xr_ref, wk_ref, bias_ref, fcw_ref, fcb_ref, o_ref, *, tb):
    # ---- conv (BN scale folded into weight) as ONE im2row MXU matmul -----------
    # xr_ref: (28*tb, 160); rows 0..14*tb-1 are even output rows (slot=hp, image b
    # at row hp*tb+b), rows 14*tb.. are the matching odd rows.
    conv = jnp.dot(xr_ref[...], wk_ref[...],
                   preferred_element_type=jnp.float32)          # (28*tb, 1024)

    # ---- 2x2 max-pool: one row-half max (h pair) + one lane-half max (w pair) --
    half_rows = POOL * tb
    y = jnp.maximum(conv[:half_rows, :], conv[half_rows:, :])   # (14*tb, 1024)
    y = jnp.maximum(y[:, :HALF], y[:, HALF:])                   # (14*tb, 512)

    # ---- bias + ReLU (commutes with the monotone max-pool), single broadcast ---
    z = jnp.maximum(y + bias_ref[...], 0.0)                     # (14*tb, 512)

    # ---- fused FC: 14 contiguous (tb,512) slabs against lane-dense weights -----
    logits = jnp.zeros((tb, FC_OUT), jnp.float32)
    for hp in range(POOL):
        zh = z[hp * tb:(hp + 1) * tb, :]                        # contiguous slab
        logits = logits + jax.lax.dot_general(
            zh, fcw_ref[hp],
            dimension_numbers=(((1,), (1,)), ((), ())),
            preferred_element_type=jnp.float32)
    o_ref[...] = logits + fcb_ref[...]


def my_model_forward(x, params):
    """x: (B, 1, 28, 28) float32 (NCHW, as in PyTorch). Returns (B, 10) float32."""
    B = x.shape[0]
    conv_w, conv_b, bn_gamma, bn_beta, bn_mean, bn_var, fc_w, fc_b = params

    # fold conv bias + eval-mode BatchNorm into per-channel scale / bias
    scale = bn_gamma / jnp.sqrt(bn_var + BN_EPS)                 # (32,)
    bias = (conv_b - bn_mean) * scale + bn_beta                  # (32,)

    # batch tile: large enough to amortize per-step overhead, small enough to keep
    # >=2 grid steps (v7x dual-TC) for moderate batches.
    if B >= 64:
        TB = 32
    elif B >= 32:
        TB = 16
    else:
        TB = 8
    B_pad = ((B + TB - 1) // TB) * TB
    n_tiles = B_pad // TB

    # ---- im2row LHS -------------------------------------------------------------
    xp = jnp.pad(x[:, 0], ((0, B_pad - B), (2, 2), (2, 2)))      # (B_pad, 32, 32)
    hp_idx = jnp.arange(POOL)
    h_of_slot = jnp.concatenate([2 * hp_idx, 2 * hp_idx + 1])    # (28,) even rows first
    row_idx = h_of_slot[:, None] + jnp.arange(K)[None, :]        # (28, 5) padded rows
    x_rows = xp[:, row_idx, :]                                   # (B_pad, 28, 5, 32)
    x_rows = x_rows.reshape(B_pad, 2 * POOL, IM2ROW_K)           # lane = kh*32 + j
    x_rows = x_rows.reshape(n_tiles, TB, 2 * POOL, IM2ROW_K)
    x_rows = jnp.transpose(x_rows, (0, 2, 1, 3))                 # (nt, 28, TB, 160)
    x_rows = x_rows.reshape(n_tiles, 2 * POOL * TB, IM2ROW_K)    # row = slot*TB + b

    # ---- Toeplitz conv weight (160, 1024), col = parity*512 + wp*32 + c ---------
    w_scaled = jnp.transpose(conv_w[:, 0] * scale[:, None, None], (1, 2, 0))  # (5,5,32)
    Wk = jnp.zeros((K, PW, W, COUT), jnp.float32)                # [kh, j, w, c]
    w_idx = jnp.arange(W)
    for kw in range(K):
        Wk = Wk.at[:, w_idx + kw, w_idx, :].set(w_scaled[:, kw, :][:, None, :])
    Wk = Wk.reshape(K, PW, POOL, 2, COUT)                        # w = wp*2 + parity
    Wk = jnp.transpose(Wk, (0, 1, 3, 2, 4))                      # [kh, j, parity, wp, c]
    Wk = jnp.pad(Wk, ((0, 0), (0, 0), (0, 0), (0, WP_PAD - POOL), (0, 0)))
    Wk_flat = Wk.reshape(IM2ROW_K, CONV_N)                       # (160, 1024)

    # per-channel bias replicated across the 16 wp slots (dead slots harmless)
    bias_row = jnp.tile(bias, WP_PAD).reshape(1, HALF)           # (1, 512)

    # ---- FC weight, lane-dense: (14, 10, 512), col = wp*32 + c ------------------
    fcw_t = fc_w.reshape(FC_OUT, COUT, POOL, POOL)               # [o, c, hp, wp]
    fcw_t = jnp.transpose(fcw_t, (2, 0, 3, 1))                   # [hp, o, wp, c]
    fcw_p = jnp.pad(fcw_t, ((0, 0), (0, 0), (0, WP_PAD - POOL), (0, 0)))
    fcw_p = fcw_p.reshape(POOL, FC_OUT, HALF)                    # (14, 10, 512)

    out = pl.pallas_call(
        functools.partial(fused_kernel, tb=TB),
        out_shape=jax.ShapeDtypeStruct((B_pad, FC_OUT), jnp.float32),
        grid=(n_tiles,),
        in_specs=[
            pl.BlockSpec((None, 2 * POOL * TB, IM2ROW_K), lambda i: (i, 0, 0)),
            pl.BlockSpec((IM2ROW_K, CONV_N), lambda i: (0, 0)),
            pl.BlockSpec((1, HALF), lambda i: (0, 0)),
            pl.BlockSpec((POOL, FC_OUT, HALF), lambda i: (0, 0, 0)),
            pl.BlockSpec((1, FC_OUT), lambda i: (0, 0)),
        ],
        out_specs=pl.BlockSpec((TB, FC_OUT), lambda i: (i, 0)),
        compiler_params=pltpu.CompilerParams(
            dimension_semantics=("parallel",),
            vmem_limit_bytes=32 * 1024 * 1024),
    )(x_rows, Wk_flat, bias_row, fcw_p, fc_b.reshape(1, FC_OUT))
    return out[:B]


def reference_forward(x, params):
    """Pure-JAX reference matching the PyTorch forward (eval-mode BatchNorm)."""
    conv_w, conv_b, bn_gamma, bn_beta, bn_mean, bn_var, fc_w, fc_b = params
    y = jax.lax.conv_general_dilated(
        x, conv_w, window_strides=(1, 1), padding=((2, 2), (2, 2)),
        dimension_numbers=("NCHW", "OIHW", "NCHW"))
    y = y + conv_b[None, :, None, None]
    y = (y - bn_mean[None, :, None, None]) / jnp.sqrt(bn_var + BN_EPS)[None, :, None, None]
    y = y * bn_gamma[None, :, None, None] + bn_beta[None, :, None, None]
    y = jnp.maximum(y, 0.0)
    y = jax.lax.reduce_window(y, -jnp.inf, jax.lax.max,
                              (1, 1, 2, 2), (1, 1, 2, 2), "VALID")
    y = y.reshape(y.shape[0], -1)
    return y @ fc_w.T + fc_b


if __name__ == "__main__":
    key = jax.random.PRNGKey(0)
    ks = jax.random.split(key, 8)
    B = 2
    x = jax.random.normal(ks[0], (B, 1, H, W), jnp.float32)

    # deterministic synthetic parameters (shapes from MyModel.__init__)
    conv_w = 0.1 * jax.random.normal(ks[1], (COUT, 1, K, K), jnp.float32)
    conv_b = 0.1 * jax.random.normal(ks[2], (COUT,), jnp.float32)
    bn_gamma = 1.0 + 0.1 * jax.random.normal(ks[3], (COUT,), jnp.float32)
    bn_beta = 0.1 * jax.random.normal(ks[4], (COUT,), jnp.float32)
    bn_mean = 0.1 * jax.random.normal(ks[5], (COUT,), jnp.float32)
    bn_var = jnp.abs(jax.random.normal(ks[6], (COUT,), jnp.float32)) + 0.5
    fc_w = 0.01 * jax.random.normal(ks[7], (FC_OUT, COUT * POOL * POOL), jnp.float32)
    fc_b = jnp.linspace(-0.1, 0.1, FC_OUT).astype(jnp.float32)
    params = (conv_w, conv_b, bn_gamma, bn_beta, bn_mean, bn_var, fc_w, fc_b)

    out = my_model_forward(x, params)
    out = jax.block_until_ready(out)
    ref = reference_forward(x, params)

    assert out.shape == (B, FC_OUT)
    assert jnp.allclose(out, ref, atol=2e-3, rtol=2e-3), float(jnp.max(jnp.abs(out - ref)))
    print("KERNEL_OK")
</pallas_src>

<mosaic_0001>
module attributes {stable_mosaic.version = 11 : i64} {
  func.func @fused_kernel(%arg0: i32, %arg1: memref<1x224x160xf32, #tpu.memory_space<vmem>>, %arg2: memref<160x1024xf32, #tpu.memory_space<vmem>>, %arg3: memref<1x512xf32, #tpu.memory_space<vmem>>, %arg4: memref<14x10x512xf32, #tpu.memory_space<vmem>>, %arg5: memref<1x10xf32, #tpu.memory_space<vmem>>, %arg6: memref<8x10xf32, #tpu.memory_space<vmem>>) attributes {dimension_semantics = [#tpu.dimension_semantics<parallel>], iteration_bounds = array<i64: 1>, scalar_prefetch = 0 : i64, scratch_operands = 0 : i64, tpu.core_type = #tpu.core_type<tc>, window_params = [{transform_indices = @transform_0, window_bounds = array<i64: 1, 224, 160>}, {pipeline_mode = #tpu.pipeline_mode<synchronous>, transform_indices = @transform_1, window_bounds = array<i64: 160, 1024>}, {pipeline_mode = #tpu.pipeline_mode<synchronous>, transform_indices = @transform_2, window_bounds = array<i64: 1, 512>}, {pipeline_mode = #tpu.pipeline_mode<synchronous>, transform_indices = @transform_3, window_bounds = array<i64: 14, 10, 512>}, {pipeline_mode = #tpu.pipeline_mode<synchronous>, transform_indices = @transform_4, window_bounds = array<i64: 1, 10>}, {transform_indices = @transform_5, window_bounds = array<i64: 8, 10>}]} {
    %c0 = arith.constant 0 : index
    %c0_0 = arith.constant 0 : index
    %c0_1 = arith.constant 0 : index
    %0 = vector.load %arg1[%c0, %c0_0, %c0_1] : memref<1x224x160xf32, #tpu.memory_space<vmem>>, vector<1x224x160xf32>
    %1 = vector.shape_cast %0 : vector<1x224x160xf32> to vector<224x160xf32>
    %c0_2 = arith.constant 0 : index
    %c0_3 = arith.constant 0 : index
    %2 = vector.load %arg2[%c0_2, %c0_3] : memref<160x1024xf32, #tpu.memory_space<vmem>>, vector<160x1024xf32>
    %cst = arith.constant dense<0.000000e+00> : vector<224x1024xf32>
    %3 = tpu.matmul %1, %2, %cst {dimension_numbers = #tpu.dot_dimension_numbers<[1], [0], [0], [1], [0, 0, 1, 1], [], []>} : vector<224x160xf32>, vector<160x1024xf32>, vector<224x1024xf32> -> vector<224x1024xf32>
    %4 = vector.extract_strided_slice %3 {offsets = [0, 0], sizes = [112, 1024], strides = [1, 1]} : vector<224x1024xf32> to vector<112x1024xf32>
    %5 = vector.extract_strided_slice %3 {offsets = [112, 0], sizes = [112, 1024], strides = [1, 1]} : vector<224x1024xf32> to vector<112x1024xf32>
    %6 = arith.maximumf %4, %5 : vector<112x1024xf32>
    %7 = vector.extract_strided_slice %6 {offsets = [0, 0], sizes = [112, 512], strides = [1, 1]} : vector<112x1024xf32> to vector<112x512xf32>
    %8 = vector.extract_strided_slice %6 {offsets = [0, 512], sizes = [112, 512], strides = [1, 1]} : vector<112x1024xf32> to vector<112x512xf32>
    %9 = arith.maximumf %7, %8 : vector<112x512xf32>
    %c0_4 = arith.constant 0 : index
    %c0_5 = arith.constant 0 : index
    %10 = vector.load %arg3[%c0_4, %c0_5] : memref<1x512xf32, #tpu.memory_space<vmem>>, vector<1x512xf32>
    %11 = vector.broadcast %10 : vector<1x512xf32> to vector<112x512xf32>
    %12 = arith.addf %9, %11 : vector<112x512xf32>
    %cst_6 = arith.constant 0.000000e+00 : f32
    %13 = vector.broadcast %cst_6 : f32 to vector<112x512xf32>
    %14 = arith.maximumf %12, %13 : vector<112x512xf32>
    %cst_7 = arith.constant 0.000000e+00 : f32
    %15 = vector.broadcast %cst_7 : f32 to vector<8x10xf32>
    %16 = vector.extract_strided_slice %14 {offsets = [0, 0], sizes = [8, 512], strides = [1, 1]} : vector<112x512xf32> to vector<8x512xf32>
    %c0_8 = arith.constant 0 : index
    %c0_9 = arith.constant 0 : index
    %c0_10 = arith.constant 0 : index
    %17 = vector.load %arg4[%c0_8, %c0_9, %c0_10] : memref<14x10x512xf32, #tpu.memory_space<vmem>>, vector<1x10x512xf32>
    %18 = vector.shape_cast %17 : vector<1x10x512xf32> to vector<10x512xf32>
    %cst_11 = arith.constant dense<0.000000e+00> : vector<8x10xf32>
    %19 = tpu.matmul %16, %18, %cst_11 {dimension_numbers = #tpu.dot_dimension_numbers<[1], [1], [0], [0], [0, 0, 1, 0], [], []>} : vector<8x512xf32>, vector<10x512xf32>, vector<8x10xf32> -> vector<8x10xf32>
    %20 = arith.addf %15, %19 : vector<8x10xf32>
    %21 = vector.extract_strided_slice %14 {offsets = [8, 0], sizes = [8, 512], strides = [1, 1]} : vector<112x512xf32> to vector<8x512xf32>
    %c1 = arith.constant 1 : index
    %c0_12 = arith.constant 0 : index
    %c0_13 = arith.constant 0 : index
    %22 = vector.load %arg4[%c1, %c0_12, %c0_13] : memref<14x10x512xf32, #tpu.memory_space<vmem>>, vector<1x10x512xf32>
    %23 = vector.shape_cast %22 : vector<1x10x512xf32> to vector<10x512xf32>
    %cst_14 = arith.constant dense<0.000000e+00> : vector<8x10xf32>
    %24 = tpu.matmul %21, %23, %cst_14 {dimension_numbers = #tpu.dot_dimension_numbers<[1], [1], [0], [0], [0, 0, 1, 0], [], []>} : vector<8x512xf32>, vector<10x512xf32>, vector<8x10xf32> -> vector<8x10xf32>
    %25 = arith.addf %20, %24 : vector<8x10xf32>
    %26 = vector.extract_strided_slice %14 {offsets = [16, 0], sizes = [8, 512], strides = [1, 1]} : vector<112x512xf32> to vector<8x512xf32>
    %c2 = arith.constant 2 : index
    %c0_15 = arith.constant 0 : index
    %c0_16 = arith.constant 0 : index
    %27 = vector.load %arg4[%c2, %c0_15, %c0_16] : memref<14x10x512xf32, #tpu.memory_space<vmem>>, vector<1x10x512xf32>
    %28 = vector.shape_cast %27 : vector<1x10x512xf32> to vector<10x512xf32>
    %cst_17 = arith.constant dense<0.000000e+00> : vector<8x10xf32>
    %29 = tpu.matmul %26, %28, %cst_17 {dimension_numbers = #tpu.dot_dimension_numbers<[1], [1], [0], [0], [0, 0, 1, 0], [], []>} : vector<8x512xf32>, vector<10x512xf32>, vector<8x10xf32> -> vector<8x10xf32>
    %30 = arith.addf %25, %29 : vector<8x10xf32>
    %31 = vector.extract_strided_slice %14 {offsets = [24, 0], sizes = [8, 512], strides = [1, 1]} : vector<112x512xf32> to vector<8x512xf32>
    %c3 = arith.constant 3 : index
    %c0_18 = arith.constant 0 : index
    %c0_19 = arith.constant 0 : index
    %32 = vector.load %arg4[%c3, %c0_18, %c0_19] : memref<14x10x512xf32, #tpu.memory_space<vmem>>, vector<1x10x512xf32>
    %33 = vector.shape_cast %32 : vector<1x10x512xf32> to vector<10x512xf32>
    %cst_20 = arith.constant dense<0.000000e+00> : vector<8x10xf32>
    %34 = tpu.matmul %31, %33, %cst_20 {dimension_numbers = #tpu.dot_dimension_numbers<[1], [1], [0], [0], [0, 0, 1, 0], [], []>} : vector<8x512xf32>, vector<10x512xf32>, vector<8x10xf32> -> vector<8x10xf32>
    %35 = arith.addf %30, %34 : vector<8x10xf32>
    %36 = vector.extract_strided_slice %14 {offsets = [32, 0], sizes = [8, 512], strides = [1, 1]} : vector<112x512xf32> to vector<8x512xf32>
    %c4 = arith.constant 4 : index
    %c0_21 = arith.constant 0 : index
    %c0_22 = arith.constant 0 : index
    %37 = vector.load %arg4[%c4, %c0_21, %c0_22] : memref<14x10x512xf32, #tpu.memory_space<vmem>>, vector<1x10x512xf32>
    %38 = vector.shape_cast %37 : vector<1x10x512xf32> to vector<10x512xf32>
    %cst_23 = arith.constant dense<0.000000e+00> : vector<8x10xf32>
    %39 = tpu.matmul %36, %38, %cst_23 {dimension_numbers = #tpu.dot_dimension_numbers<[1], [1], [0], [0], [0, 0, 1, 0], [], []>} : vector<8x512xf32>, vector<10x512xf32>, vector<8x10xf32> -> vector<8x10xf32>
    %40 = arith.addf %35, %39 : vector<8x10xf32>
    %41 = vector.extract_strided_slice %14 {offsets = [40, 0], sizes = [8, 512], strides = [1, 1]} : vector<112x512xf32> to vector<8x512xf32>
    %c5 = arith.constant 5 : index
    %c0_24 = arith.constant 0 : index
    %c0_25 = arith.constant 0 : index
    %42 = vector.load %arg4[%c5, %c0_24, %c0_25] : memref<14x10x512xf32, #tpu.memory_space<vmem>>, vector<1x10x512xf32>
    %43 = vector.shape_cast %42 : vector<1x10x512xf32> to vector<10x512xf32>
    %cst_26 = arith.constant dense<0.000000e+00> : vector<8x10xf32>
    %44 = tpu.matmul %41, %43, %cst_26 {dimension_numbers = #tpu.dot_dimension_numbers<[1], [1], [0], [0], [0, 0, 1, 0], [], []>} : vector<8x512xf32>, vector<10x512xf32>, vector<8x10xf32> -> vector<8x10xf32>
    %45 = arith.addf %40, %44 : vector<8x10xf32>
    %46 = vector.extract_strided_slice %14 {offsets = [48, 0], sizes = [8, 512], strides = [1, 1]} : vector<112x512xf32> to vector<8x512xf32>
    %c6 = arith.constant 6 : index
    %c0_27 = arith.constant 0 : index
    %c0_28 = arith.constant 0 : index
    %47 = vector.load %arg4[%c6, %c0_27, %c0_28] : memref<14x10x512xf32, #tpu.memory_space<vmem>>, vector<1x10x512xf32>
    %48 = vector.shape_cast %47 : vector<1x10x512xf32> to vector<10x512xf32>
    %cst_29 = arith.constant dense<0.000000e+00> : vector<8x10xf32>
    %49 = tpu.matmul %46, %48, %cst_29 {dimension_numbers = #tpu.dot_dimension_numbers<[1], [1], [0], [0], [0, 0, 1, 0], [], []>} : vector<8x512xf32>, vector<10x512xf32>, vector<8x10xf32> -> vector<8x10xf32>
    %50 = arith.addf %45, %49 : vector<8x10xf32>
    %51 = vector.extract_strided_slice %14 {offsets = [56, 0], sizes = [8, 512], strides = [1, 1]} : vector<112x512xf32> to vector<8x512xf32>
    %c7 = arith.constant 7 : index
    %c0_30 = arith.constant 0 : index
    %c0_31 = arith.constant 0 : index
    %52 = vector.load %arg4[%c7, %c0_30, %c0_31] : memref<14x10x512xf32, #tpu.memory_space<vmem>>, vector<1x10x512xf32>
    %53 = vector.shape_cast %52 : vector<1x10x512xf32> to vector<10x512xf32>
    %cst_32 = arith.constant dense<0.000000e+00> : vector<8x10xf32>
    %54 = tpu.matmul %51, %53, %cst_32 {dimension_numbers = #tpu.dot_dimension_numbers<[1], [1], [0], [0], [0, 0, 1, 0], [], []>} : vector<8x512xf32>, vector<10x512xf32>, vector<8x10xf32> -> vector<8x10xf32>
    %55 = arith.addf %50, %54 : vector<8x10xf32>
    %56 = vector.extract_strided_slice %14 {offsets = [64, 0], sizes = [8, 512], strides = [1, 1]} : vector<112x512xf32> to vector<8x512xf32>
    %c8 = arith.constant 8 : index
    %c0_33 = arith.constant 0 : index
    %c0_34 = arith.constant 0 : index
    %57 = vector.load %arg4[%c8, %c0_33, %c0_34] : memref<14x10x512xf32, #tpu.memory_space<vmem>>, vector<1x10x512xf32>
    %58 = vector.shape_cast %57 : vector<1x10x512xf32> to vector<10x512xf32>
    %cst_35 = arith.constant dense<0.000000e+00> : vector<8x10xf32>
    %59 = tpu.matmul %56, %58, %cst_35 {dimension_numbers = #tpu.dot_dimension_numbers<[1], [1], [0], [0], [0, 0, 1, 0], [], []>} : vector<8x512xf32>, vector<10x512xf32>, vector<8x10xf32> -> vector<8x10xf32>
    %60 = arith.addf %55, %59 : vector<8x10xf32>
    %61 = vector.extract_strided_slice %14 {offsets = [72, 0], sizes = [8, 512], strides = [1, 1]} : vector<112x512xf32> to vector<8x512xf32>
    %c9 = arith.constant 9 : index
    %c0_36 = arith.constant 0 : index
    %c0_37 = arith.constant 0 : index
    %62 = vector.load %arg4[%c9, %c0_36, %c0_37] : memref<14x10x512xf32, #tpu.memory_space<vmem>>, vector<1x10x512xf32>
    %63 = vector.shape_cast %62 : vector<1x10x512xf32> to vector<10x512xf32>
    %cst_38 = arith.constant dense<0.000000e+00> : vector<8x10xf32>
    %64 = tpu.matmul %61, %63, %cst_38 {dimension_numbers = #tpu.dot_dimension_numbers<[1], [1], [0], [0], [0, 0, 1, 0], [], []>} : vector<8x512xf32>, vector<10x512xf32>, vector<8x10xf32> -> vector<8x10xf32>
    %65 = arith.addf %60, %64 : vector<8x10xf32>
    %66 = vector.extract_strided_slice %14 {offsets = [80, 0], sizes = [8, 512], strides = [1, 1]} : vector<112x512xf32> to vector<8x512xf32>
    %c10 = arith.constant 10 : index
    %c0_39 = arith.constant 0 : index
    %c0_40 = arith.constant 0 : index
    %67 = vector.load %arg4[%c10, %c0_39, %c0_40] : memref<14x10x512xf32, #tpu.memory_space<vmem>>, vector<1x10x512xf32>
    %68 = vector.shape_cast %67 : vector<1x10x512xf32> to vector<10x512xf32>
    %cst_41 = arith.constant dense<0.000000e+00> : vector<8x10xf32>
    %69 = tpu.matmul %66, %68, %cst_41 {dimension_numbers = #tpu.dot_dimension_numbers<[1], [1], [0], [0], [0, 0, 1, 0], [], []>} : vector<8x512xf32>, vector<10x512xf32>, vector<8x10xf32> -> vector<8x10xf32>
    %70 = arith.addf %65, %69 : vector<8x10xf32>
    %71 = vector.extract_strided_slice %14 {offsets = [88, 0], sizes = [8, 512], strides = [1, 1]} : vector<112x512xf32> to vector<8x512xf32>
    %c11 = arith.constant 11 : index
    %c0_42 = arith.constant 0 : index
    %c0_43 = arith.constant 0 : index
    %72 = vector.load %arg4[%c11, %c0_42, %c0_43] : memref<14x10x512xf32, #tpu.memory_space<vmem>>, vector<1x10x512xf32>
    %73 = vector.shape_cast %72 : vector<1x10x512xf32> to vector<10x512xf32>
    %cst_44 = arith.constant dense<0.000000e+00> : vector<8x10xf32>
    %74 = tpu.matmul %71, %73, %cst_44 {dimension_numbers = #tpu.dot_dimension_numbers<[1], [1], [0], [0], [0, 0, 1, 0], [], []>} : vector<8x512xf32>, vector<10x512xf32>, vector<8x10xf32> -> vector<8x10xf32>
    %75 = arith.addf %70, %74 : vector<8x10xf32>
    %76 = vector.extract_strided_slice %14 {offsets = [96, 0], sizes = [8, 512], strides = [1, 1]} : vector<112x512xf32> to vector<8x512xf32>
    %c12 = arith.constant 12 : index
    %c0_45 = arith.constant 0 : index
    %c0_46 = arith.constant 0 : index
    %77 = vector.load %arg4[%c12, %c0_45, %c0_46] : memref<14x10x512xf32, #tpu.memory_space<vmem>>, vector<1x10x512xf32>
    %78 = vector.shape_cast %77 : vector<1x10x512xf32> to vector<10x512xf32>
    %cst_47 = arith.constant dense<0.000000e+00> : vector<8x10xf32>
    %79 = tpu.matmul %76, %78, %cst_47 {dimension_numbers = #tpu.dot_dimension_numbers<[1], [1], [0], [0], [0, 0, 1, 0], [], []>} : vector<8x512xf32>, vector<10x512xf32>, vector<8x10xf32> -> vector<8x10xf32>
    %80 = arith.addf %75, %79 : vector<8x10xf32>
    %81 = vector.extract_strided_slice %14 {offsets = [104, 0], sizes = [8, 512], strides = [1, 1]} : vector<112x512xf32> to vector<8x512xf32>
    %c13 = arith.constant 13 : index
    %c0_48 = arith.constant 0 : index
    %c0_49 = arith.constant 0 : index
    %82 = vector.load %arg4[%c13, %c0_48, %c0_49] : memref<14x10x512xf32, #tpu.memory_space<vmem>>, vector<1x10x512xf32>
    %83 = vector.shape_cast %82 : vector<1x10x512xf32> to vector<10x512xf32>
    %cst_50 = arith.constant dense<0.000000e+00> : vector<8x10xf32>
    %84 = tpu.matmul %81, %83, %cst_50 {dimension_numbers = #tpu.dot_dimension_numbers<[1], [1], [0], [0], [0, 0, 1, 0], [], []>} : vector<8x512xf32>, vector<10x512xf32>, vector<8x10xf32> -> vector<8x10xf32>
    %85 = arith.addf %80, %84 : vector<8x10xf32>
    %c0_51 = arith.constant 0 : index
    %c0_52 = arith.constant 0 : index
    %86 = vector.load %arg5[%c0_51, %c0_52] : memref<1x10xf32, #tpu.memory_space<vmem>>, vector<1x10xf32>
    %87 = vector.broadcast %86 : vector<1x10xf32> to vector<8x10xf32>
    %88 = arith.addf %85, %87 : vector<8x10xf32>
    %c0_53 = arith.constant 0 : index
    %c0_54 = arith.constant 0 : index
    %89 = vector.load %arg6[%c0_53, %c0_54] : memref<8x10xf32, #tpu.memory_space<vmem>>, vector<8x10xf32>
    tpu.vector_store %arg6[%c0_53, %c0_54], %88 {strides = array<i32>} : memref<8x10xf32, #tpu.memory_space<vmem>>, vector<8x10xf32>,
    return
  }
  func.func @transform_0(%arg0: i32) -> (i32, i32, i32) {
    %c0_i32 = arith.constant 0 : i32
    %c0_i32_0 = arith.constant 0 : i32
    %c0_i32_1 = arith.constant 0 : i32
    return %arg0, %c0_i32, %c0_i32_0 : i32, i32, i32
  }
  func.func @transform_1(%arg0: i32) -> (i32, i32) {
    %c0_i32 = arith.constant 0 : i32
    %c0_i32_0 = arith.constant 0 : i32
    %c0_i32_1 = arith.constant 0 : i32
    return %c0_i32, %c0_i32_0 : i32, i32
  }
  func.func @transform_2(%arg0: i32) -> (i32, i32) {
    %c0_i32 = arith.constant 0 : i32
    %c0_i32_0 = arith.constant 0 : i32
    %c0_i32_1 = arith.constant 0 : i32
    return %c0_i32, %c0_i32_0 : i32, i32
  }
  func.func @transform_3(%arg0: i32) -> (i32, i32, i32) {
    %c0_i32 = arith.constant 0 : i32
    %c0_i32_0 = arith.constant 0 : i32
    %c0_i32_1 = arith.constant 0 : i32
    %c0_i32_2 = arith.constant 0 : i32
    return %c0_i32, %c0_i32_0, %c0_i32_1 : i32, i32, i32
  }
  func.func @transform_4(%arg0: i32) -> (i32, i32) {
    %c0_i32 = arith.constant 0 : i32
    %c0_i32_0 = arith.constant 0 : i32
    %c0_i32_1 = arith.constant 0 : i32
    return %c0_i32, %c0_i32_0 : i32, i32
  }
  func.func @transform_5(%arg0: i32) -> (i32, i32) {
    %c0_i32 = arith.constant 0 : i32
    %c0_i32_0 = arith.constant 0 : i32
    return %arg0, %c0_i32 : i32, i32
  }
}

</mosaic_0001>

<bundles_post_ra>
// kernel: tpu_custom_call.1
= control target key start
LH: loop header
LB: loop body
LE: loop exit
PB: predicated region body
PF: predicated region fallthrough
CT: control target
= control target key end

     0   :  { %vm237_vm0 = vcmask 261120   ;;  %s6768_s0 = inlined_call_operand.vmem [shape: f32[1,224,160], index: 0, kind: input, shape index: {}]   ;;  %s6769_s1 = inlined_call_operand.vmem [shape: f32[160,1024], index: 1, kind: input, shape index: {}]   ;;  %s6770_s2 = inlined_call_operand.vmem [shape: f32[1,512], index: 2, kind: input, shape index: {}]   ;;  %s6771_s3 = inlined_call_operand.vmem [shape: f32[14,10,512], index: 3, kind: input, shape index: {}]   ;;  %s6772_s4 = inlined_call_operand.vmem [shape: f32[1,10], index: 4, kind: input, shape index: {}]   ;;  %s6773_s5 = inlined_call_operand.hbm [shape: f32[8,10], index: 5, kind: output, shape index: {}]  }
   0x1   :  { %v78_v0 = vld [vmem:[%s6769_s1 + $0x8] sm:$0xff]  ;;  %v80_v2 = vld [vmem:[%s6769_s1 + $0x18] sm:$0xff]  ;;  %v77_v5 = vld [vmem:[%s6769_s1] sm:$0xff] }
   0x2   :  { %v86_v1 = vld [vmem:[%s6769_s1 + $0x48] sm:$0xff]  ;;  %v88_v4 = vld [vmem:[%s6769_s1 + $0x58] sm:$0xff]  ;;  %v85_v6 = vld [vmem:[%s6769_s1 + $0x40] sm:$0xff] }
   0x3   :  { %v3894_v3 = vpack.c.bf16 %v86_v1, %v78_v0  ;;  %v3934_v7 = vpack.c.bf16 %v88_v4, %v80_v2  ;;  %v3896_v8 = vpack.c.bf16 %v85_v6, %v77_v5  ;;  %v79_v9 = vld [vmem:[%s6769_s1 + $0x10] sm:$0xff]  ;;  %v94_v11 = vld [vmem:[%s6769_s1 + $0x88] sm:$0xff]  ;;  %v96_v14 = vld [vmem:[%s6769_s1 + $0x98] sm:$0xff] }
   0x4   :  { %v87_v10 = vld [vmem:[%s6769_s1 + $0x50] sm:$0xff]  ;;  %v102_v13 = vld [vmem:[%s6769_s1 + $0xc8] sm:$0xff]  ;;  %v104_v15 = vld [vmem:[%s6769_s1 + $0xd8] sm:$0xff] }
   0x5   :  { %3895 = vmatprep.subr.bf16.mxu0 %v3894_v3  ;;  %v3936_v12 = vpack.c.bf16 %v87_v10, %v79_v9  ;;  %3935 = vmatprep.subr.bf16.mxu1 %v3934_v7  ;;  %v3898_v16 = vpack.c.bf16 %v102_v13, %v94_v11  ;;  %v3938_v17 = vpack.c.bf16 %v104_v15, %v96_v14  ;;  %v93_v18 = vld [vmem:[%s6769_s1 + $0x80] sm:$0xff]  ;;  %v95_v20 = vld [vmem:[%s6769_s1 + $0x90] sm:$0xff]  ;;  %v110_v23 = vld [vmem:[%s6769_s1 + $0x108] sm:$0xff] }
   0x6   :  { %3897 = vmatpush1.bf16.msra.mxu0 %v3896_v8  ;;  %v101_v19 = vld [vmem:[%s6769_s1 + $0xc0] sm:$0xff]  ;;  %v103_v22 = vld [vmem:[%s6769_s1 + $0xd0] sm:$0xff]  ;;  %v118_v24 = vld [vmem:[%s6769_s1 + $0x148] sm:$0xff] }
   0x7   :  { %3937 = vmatpush1.bf16.msra.mxu1 %v3936_v12  ;;  %v3900_v21 = vpack.c.bf16 %v101_v19, %v93_v18  ;;  %3899 = vmatprep.subr.bf16.mxu0 %v3898_v16  ;;  %v3940_v25 = vpack.c.bf16 %v103_v22, %v95_v20  ;;  %v3902_v26 = vpack.c.bf16 %v118_v24, %v110_v23  ;;  %v112_v27 = vld [vmem:[%s6769_s1 + $0x118] sm:$0xff]  ;;  %v109_v29 = vld [vmem:[%s6769_s1 + $0x100] sm:$0xff]  ;;  %v111_v32 = vld [vmem:[%s6769_s1 + $0x110] sm:$0xff] }
   0x8   :  { %3939 = vmatprep.subr.bf16.mxu1 %v3938_v17  ;;  %v120_v28 = vld [vmem:[%s6769_s1 + $0x158] sm:$0xff]  ;;  %v117_v31 = vld [vmem:[%s6769_s1 + $0x140] sm:$0xff]  ;;  %v119_v33 = vld [vmem:[%s6769_s1 + $0x150] sm:$0xff] }
   0x9   :  { %v3942_v30 = vpack.c.bf16 %v120_v28, %v112_v27  ;;  %v3904_v34 = vpack.c.bf16 %v117_v31, %v109_v29  ;;  %v126_v35 = vld [vmem:[%s6769_s1 + $0x188] sm:$0xff]  ;;  %v128_v37 = vld [vmem:[%s6769_s1 + $0x198] sm:$0xff]  ;;  %v3944_v38 = vpack.c.bf16 %v119_v33, %v111_v32  ;;  %v125_v41 = vld [vmem:[%s6769_s1 + $0x180] sm:$0xff] }
   0xa   :  { %3901 = vmatpush1.bf16.msra.mxu0 %v3900_v21  ;;  %v134_v36 = vld [vmem:[%s6769_s1 + $0x1c8] sm:$0xff]  ;;  %v136_v40 = vld [vmem:[%s6769_s1 + $0x1d8] sm:$0xff]  ;;  %v133_v42 = vld [vmem:[%s6769_s1 + $0x1c0] sm:$0xff] }
   0xb   :  { %3941 = vmatpush1.bf16.msra.mxu1 %v3940_v25  ;;  %3903 = vmatprep.subr.bf16.mxu0 %v3902_v26  ;;  %v3906_v39 = vpack.c.bf16 %v134_v36, %v126_v35  ;;  %v3946_v43 = vpack.c.bf16 %v136_v40, %v128_v37  ;;  %v127_v44 = vld [vmem:[%s6769_s1 + $0x190] sm:$0xff]  ;;  %v142_v46 = vld [vmem:[%s6769_s1 + $0x208] sm:$0xff]  ;;  %v144_v48 = vld [vmem:[%s6769_s1 + $0x218] sm:$0xff]  ;;  %v3908_v50 = vpack.c.bf16 %v133_v42, %v125_v41 }
   0xc   :  { %3943 = vmatprep.subr.bf16.mxu1 %v3942_v30  ;;  %v135_v45 = vld [vmem:[%s6769_s1 + $0x1d0] sm:$0xff]  ;;  %v150_v47 = vld [vmem:[%s6769_s1 + $0x248] sm:$0xff]  ;;  %v152_v49 = vld [vmem:[%s6769_s1 + $0x258] sm:$0xff] }
   0xd   :  { %v3948_v51 = vpack.c.bf16 %v135_v45, %v127_v44  ;;  %v3910_v52 = vpack.c.bf16 %v150_v47, %v142_v46  ;;  %v141_v53 = vld [vmem:[%s6769_s1 + $0x200] sm:$0xff]  ;;  %v143_v55 = vld [vmem:[%s6769_s1 + $0x210] sm:$0xff]  ;;  %v3950_v56 = vpack.c.bf16 %v152_v49, %v144_v48  ;;  %v158_v58 = vld [vmem:[%s6769_s1 + $0x288] sm:$0xff] }
   0xe   :  { %3905 = vmatpush1.bf16.msra.mxu0 %v3904_v34  ;;  %v149_v54 = vld [vmem:[%s6769_s1 + $0x240] sm:$0xff]  ;;  %v151_v57 = vld [vmem:[%s6769_s1 + $0x250] sm:$0xff]  ;;  %v166_v59 = vld [vmem:[%s6769_s1 + $0x2c8] sm:$0xff] }
   0xf   :  { %3945 = vmatpush1.bf16.msra.mxu1 %v3944_v38  ;;  %3907 = vmatprep.subr.bf16.mxu0 %v3906_v39  ;;  %v160_v60 = vld [vmem:[%s6769_s1 + $0x298] sm:$0xff]  ;;  %v3912_v62 = vpack.c.bf16 %v149_v54, %v141_v53  ;;  %v3952_v63 = vpack.c.bf16 %v151_v57, %v143_v55  ;;  %v3914_v0 = vpack.c.bf16 %v166_v59, %v158_v58  ;;  %v157_v1 = vld [vmem:[%s6769_s1 + $0x280] sm:$0xff]  ;;  %v159_v3 = vld [vmem:[%s6769_s1 + $0x290] sm:$0xff] }
  0x10   :  { %3947 = vmatprep.subr.bf16.mxu1 %v3946_v43  ;;  %v168_v61 = vld [vmem:[%s6769_s1 + $0x2d8] sm:$0xff]  ;;  %v165_v2 = vld [vmem:[%s6769_s1 + $0x2c0] sm:$0xff]  ;;  %v167_v5 = vld [vmem:[%s6769_s1 + $0x2d0] sm:$0xff] }
  0x11   :  { %v3954_v4 = vpack.c.bf16 %v168_v61, %v160_v60  ;;  %v174_v6 = vld [vmem:[%s6769_s1 + $0x308] sm:$0xff]  ;;  %v176_v8 = vld [vmem:[%s6769_s1 + $0x318] sm:$0xff]  ;;  %v3916_v10 = vpack.c.bf16 %v165_v2, %v157_v1  ;;  %v3956_v11 = vpack.c.bf16 %v167_v5, %v159_v3  ;;  %v173_v13 = vld [vmem:[%s6769_s1 + $0x300] sm:$0xff] }
  0x12   :  { %3909 = vmatpush1.bf16.msra.mxu0 %v3908_v50  ;;  %v182_v7 = vld [vmem:[%s6769_s1 + $0x348] sm:$0xff]  ;;  %v184_v9 = vld [vmem:[%s6769_s1 + $0x358] sm:$0xff]  ;;  %v181_v14 = vld [vmem:[%s6769_s1 + $0x340] sm:$0xff] }
  0x13   :  { %3949 = vmatpush1.bf16.msra.mxu1 %v3948_v51  ;;  %3911 = vmatprep.subr.bf16.mxu0 %v3910_v52  ;;  %v3918_v12 = vpack.c.bf16 %v182_v7, %v174_v6  ;;  %v175_v15 = vld [vmem:[%s6769_s1 + $0x310] sm:$0xff]  ;;  %v3958_v16 = vpack.c.bf16 %v184_v9, %v176_v8  ;;  %v190_v18 = vld [vmem:[%s6769_s1 + $0x388] sm:$0xff]  ;;  %v192_v20 = vld [vmem:[%s6769_s1 + $0x398] sm:$0xff]  ;;  %v3920_v22 = vpack.c.bf16 %v181_v14, %v173_v13 }
  0x14   :  { %3951 = vmatprep.subr.bf16.mxu1 %v3950_v56  ;;  %v183_v17 = vld [vmem:[%s6769_s1 + $0x350] sm:$0xff]  ;;  %v198_v19 = vld [vmem:[%s6769_s1 + $0x3c8] sm:$0xff]  ;;  %v200_v21 = vld [vmem:[%s6769_s1 + $0x3d8] sm:$0xff] }
  0x15   :  { %v189_v23 = vld [vmem:[%s6769_s1 + $0x380] sm:$0xff]  ;;  %v3960_v24 = vpack.c.bf16 %v183_v17, %v175_v15  ;;  %v3922_v25 = vpack.c.bf16 %v198_v19, %v190_v18  ;;  %v191_v27 = vld [vmem:[%s6769_s1 + $0x390] sm:$0xff]  ;;  %v3962_v29 = vpack.c.bf16 %v200_v21, %v192_v20  ;;  %v206_v30 = vld [vmem:[%s6769_s1 + $0x408] sm:$0xff] }
  0x16   :  { %3913 = vmatpush1.bf16.msra.mxu0 %v3912_v62  ;;  %v197_v26 = vld [vmem:[%s6769_s1 + $0x3c0] sm:$0xff]  ;;  %v199_v28 = vld [vmem:[%s6769_s1 + $0x3d0] sm:$0xff]  ;;  %v214_v31 = vld [vmem:[%s6769_s1 + $0x448] sm:$0xff] }
  0x17   :  { %3953 = vmatpush1.bf16.msra.mxu1 %v3952_v63  ;;  %3915 = vmatprep.subr.bf16.mxu0 %v3914_v0  ;;  %v4423_v32 = vld [vmem:[%s6768_s0 + $0x8] sm:$0xff]  ;;  %v208_v33 = vld [vmem:[%s6769_s1 + $0x418] sm:$0xff]  ;;  %v3924_v35 = vpack.c.bf16 %v197_v26, %v189_v23  ;;  %v3964_v36 = vpack.c.bf16 %v199_v28, %v191_v27  ;;  %v3926_v37 = vpack.c.bf16 %v214_v31, %v206_v30  ;;  %v205_v38 = vld [vmem:[%s6769_s1 + $0x400] sm:$0xff] }
  0x18   :  { %3955 = vmatprep.subr.bf16.mxu1 %v3954_v4  ;;  %v216_v34 = vld [vmem:[%s6769_s1 + $0x458] sm:$0xff]  ;;  %3677 = vmatprep.mubr.msk.f32.mxu0 %vm237_vm0, %v4423_v32  ;;  %v213_v39 = vld [vmem:[%s6769_s1 + $0x440] sm:$0xff]  ;;  %v207_v40 = vld [vmem:[%s6769_s1 + $0x410] sm:$0xff] }
  0x19   :  { %3705 = vmatprep.mubr.msk.f32.mxu1 %vm237_vm0, %v4423_v32  ;;  %v3966_v41 = vpack.c.bf16 %v216_v34, %v208_v33  ;;  %v215_v42 = vld [vmem:[%s6769_s1 + $0x450] sm:$0xff]  ;;  %v222_v43 = vld [vmem:[%s6769_s1 + $0x488] sm:$0xff]  ;;  %v224_v45 = vld [vmem:[%s6769_s1 + $0x498] sm:$0xff]  ;;  %v3928_v47 = vpack.c.bf16 %v213_v39, %v205_v38 }
  0x1a   :  { %3917 = vmatpush1.bf16.msra.mxu0 %v3916_v10  ;;  %v230_v44 = vld [vmem:[%s6769_s1 + $0x4c8] sm:$0xff]  ;;  %v232_v46 = vld [vmem:[%s6769_s1 + $0x4d8] sm:$0xff]  ;;  %v3968_v48 = vpack.c.bf16 %v215_v42, %v207_v40  ;;  %v221_v50 = vld [vmem:[%s6769_s1 + $0x480] sm:$0xff] }
  0x1b   :  { %3957 = vmatpush1.bf16.msra.mxu1 %v3956_v11  ;;  %3919 = vmatprep.subr.bf16.mxu0 %v3918_v12  ;;  %v3930_v49 = vpack.c.bf16 %v230_v44, %v222_v43  ;;  %v229_v51 = vld [vmem:[%s6769_s1 + $0x4c0] sm:$0xff]  ;;  %v223_v52 = vld [vmem:[%s6769_s1 + $0x490] sm:$0xff]  ;;  %v3970_v53 = vpack.c.bf16 %v232_v46, %v224_v45  ;;  %v82_v55 = vld [vmem:[%s6769_s1 + $0x28] sm:$0xff] }
  0x1c   :  { %3959 = vmatprep.subr.bf16.mxu1 %v3958_v16  ;;  %v231_v54 = vld [vmem:[%s6769_s1 + $0x4d0] sm:$0xff]  ;;  %v90_v56 = vld [vmem:[%s6769_s1 + $0x68] sm:$0xff]  ;;  %v84_v57 = vld [vmem:[%s6769_s1 + $0x38] sm:$0xff]  ;;  %v3932_v59 = vpack.c.bf16 %v229_v51, %v221_v50 }
  0x1d   :  { %v92_v58 = vld [vmem:[%s6769_s1 + $0x78] sm:$0xff]  ;;  %v3972_v60 = vpack.c.bf16 %v231_v54, %v223_v52  ;;  %v3974_v61 = vpack.c.bf16 %v90_v56, %v82_v55  ;;  %v81_v62 = vld [vmem:[%s6769_s1 + $0x20] sm:$0xff]  ;;  %v83_v1 = vld [vmem:[%s6769_s1 + $0x30] sm:$0xff] }
  0x1e   :  { %3921 = vmatpush1.bf16.msra.mxu0 %v3920_v22  ;;  %v89_v63 = vld [vmem:[%s6769_s1 + $0x60] sm:$0xff]  ;;  %v4014_v0 = vpack.c.bf16 %v92_v58, %v84_v57  ;;  %v91_v2 = vld [vmem:[%s6769_s1 + $0x70] sm:$0xff]  ;;  %v98_v3 = vld [vmem:[%s6769_s1 + $0xa8] sm:$0xff] }
  0x1f   :  { %3961 = vmatpush1.bf16.msra.mxu1 %v3960_v24  ;;  %3923 = vmatprep.subr.bf16.mxu0 %v3922_v25  ;;  %v106_v4 = vld [vmem:[%s6769_s1 + $0xe8] sm:$0xff]  ;;  %v4504_v5 = vld [vmem:[%s6768_s0] sm:$0xff]  ;;  %v3976_v6 = vpack.c.bf16 %v89_v63, %v81_v62  ;;  %v100_v7 = vld [vmem:[%s6769_s1 + $0xb8] sm:$0xff]  ;;  %v4016_v9 = vpack.c.bf16 %v91_v2, %v83_v1 }
  0x20   :  { %3963 = vmatprep.subr.bf16.mxu1 %v3962_v29  ;;  %v108_v8 = vld [vmem:[%s6769_s1 + $0xf8] sm:$0xff]  ;;  %v3978_v11 = vpack.c.bf16 %v106_v4, %v98_v3  ;;  %v97_v12 = vld [vmem:[%s6769_s1 + $0xa0] sm:$0xff]  ;;  %v99_v14 = vld [vmem:[%s6769_s1 + $0xb0] sm:$0xff] }
  0x21   :  { %v4515_v10 = vld [vmem:[%s6768_s0 + $0x18] sm:$0xff]  ;;  %v105_v13 = vld [vmem:[%s6769_s1 + $0xe0] sm:$0xff]  ;;  %v4018_v15 = vpack.c.bf16 %v108_v8, %v100_v7  ;;  %v107_v16 = vld [vmem:[%s6769_s1 + $0xf0] sm:$0xff] }
  0x22   :  { %3925 = vmatpush1.bf16.msra.mxu0 %v3924_v35  ;;  %v114_v17 = vld [vmem:[%s6769_s1 + $0x128] sm:$0xff]  ;;  %v4540_v19 = vld [vmem:[%s6768_s0 + $0x10] sm:$0xff]  ;;  %v116_v20 = vld [vmem:[%s6769_s1 + $0x138] sm:$0xff]  ;;  %v3980_v23 = vpack.c.bf16 %v105_v13, %v97_v12  ;;  %v4020_v24 = vpack.c.bf16 %v107_v16, %v99_v14 }
  0x23   :  { %3965 = vmatpush1.bf16.msra.mxu1 %v3964_v36  ;;  %3927 = vmatprep.subr.bf16.mxu0 %v3926_v37  ;;  %v122_v18 = vld [vmem:[%s6769_s1 + $0x168] sm:$0xff]  ;;  %v124_v21 = vld [vmem:[%s6769_s1 + $0x178] sm:$0xff]  ;;  %v113_v26 = vld [vmem:[%s6769_s1 + $0x120] sm:$0xff] }
  0x24   :  { %3967 = vmatprep.subr.bf16.mxu1 %v3966_v41  ;;  %v4553_v22 = vld [vmem:[%s6768_s0 + $0x28] sm:$0xff]  ;;  %v3982_v25 = vpack.c.bf16 %v122_v18, %v114_v17  ;;  %v121_v27 = vld [vmem:[%s6769_s1 + $0x160] sm:$0xff]  ;;  %v115_v28 = vld [vmem:[%s6769_s1 + $0x130] sm:$0xff]  ;;  %v4022_v29 = vpack.c.bf16 %v124_v21, %v116_v20 }
  0x25   :  { %v123_v30 = vld [vmem:[%s6769_s1 + $0x170] sm:$0xff]  ;;  %v130_v31 = vld [vmem:[%s6769_s1 + $0x1a8] sm:$0xff]  ;;  %v4582_v34 = vld [vmem:[%s6768_s0 + $0x20] sm:$0xff]  ;;  %v3984_v38 = vpack.c.bf16 %v121_v27, %v113_v26 }
  0x26   :  { %3929 = vmatpush1.bf16.msra.mxu0 %v3928_v47  ;;  %v138_v33 = vld [vmem:[%s6769_s1 + $0x1e8] sm:$0xff]  ;;  %v132_v35 = vld [vmem:[%s6769_s1 + $0x1b8] sm:$0xff]  ;;  %v4024_v39 = vpack.c.bf16 %v123_v30, %v115_v28  ;;  %v129_v41 = vld [vmem:[%s6769_s1 + $0x1a0] sm:$0xff] }
  0x27   :  { %3969 = vmatpush1.bf16.msra.mxu1 %v3968_v48  ;;  %3931 = vmatprep.subr.bf16.mxu0 %v3930_v49  ;;  %v140_v36 = vld [vmem:[%s6769_s1 + $0x1f8] sm:$0xff]  ;;  %v3986_v40 = vpack.c.bf16 %v138_v33, %v130_v31  ;;  %v137_v42 = vld [vmem:[%s6769_s1 + $0x1e0] sm:$0xff]  ;;  %v131_v43 = vld [vmem:[%s6769_s1 + $0x1b0] sm:$0xff] }
  0x28   :  { %3971 = vmatprep.subr.bf16.mxu1 %v3970_v53  ;;  %v4595_v37 = vld [vmem:[%s6768_s0 + $0x38] sm:$0xff]  ;;  %v4026_v44 = vpack.c.bf16 %v140_v36, %v132_v35  ;;  %v139_v45 = vld [vmem:[%s6769_s1 + $0x1f0] sm:$0xff]  ;;  %v146_v46 = vld [vmem:[%s6769_s1 + $0x228] sm:$0xff]  ;;  %v3988_v52 = vpack.c.bf16 %v137_v42, %v129_v41 }
  0x29   :  { %v154_v47 = vld [vmem:[%s6769_s1 + $0x268] sm:$0xff]  ;;  %v4622_v48 = vld [vmem:[%s6768_s0 + $0x30] sm:$0xff]  ;;  %v148_v49 = vld [vmem:[%s6769_s1 + $0x238] sm:$0xff]  ;;  %v4028_v53 = vpack.c.bf16 %v139_v45, %v131_v43 }
  0x2a   :  { %3933 = vmatpush1.bf16.msra.mxu0 %v3932_v59  ;;  %v156_v50 = vld [vmem:[%s6769_s1 + $0x278] sm:$0xff]  ;;  %v4635_v51 = vld [vmem:[%s6768_s0 + $0x48] sm:$0xff]  ;;  %v3990_v54 = vpack.c.bf16 %v154_v47, %v146_v46  ;;  %v145_v55 = vld [vmem:[%s6769_s1 + $0x220] sm:$0xff] }
  0x2b   :  { %3973 = vmatpush1.bf16.msra.mxu1 %v3972_v60  ;;  %3975 = vmatprep.subr.bf16.mxu0 %v3974_v61  ;;  %v153_v56 = vld [vmem:[%s6769_s1 + $0x260] sm:$0xff]  ;;  %v147_v57 = vld [vmem:[%s6769_s1 + $0x230] sm:$0xff]  ;;  %v4030_v58 = vpack.c.bf16 %v156_v50, %v148_v49  ;;  %v162_v60 = vld [vmem:[%s6769_s1 + $0x2a8] sm:$0xff] }
  0x2c   :  { %4015 = vmatprep.subr.bf16.mxu1 %v4014_v0  ;;  %v155_v59 = vld [vmem:[%s6769_s1 + $0x270] sm:$0xff]  ;;  %v170_v61 = vld [vmem:[%s6769_s1 + $0x2e8] sm:$0xff]  ;;  %v4662_v62 = vld [vmem:[%s6768_s0 + $0x40] sm:$0xff]  ;;  %v3992_v2 = vpack.c.bf16 %v153_v56, %v145_v55 }
  0x2d   :  { %387 = vmatmul.mubr.f32.vlgmr.msra.gmra.mrb[0].mxu0 %v4504_v5  ;;  %v164_v63 = vld [vmem:[%s6769_s1 + $0x2b8] sm:$0xff]  ;;  %v4032_v3 = vpack.c.bf16 %v155_v59, %v147_v57  ;;  %v3994_v4 = vpack.c.bf16 %v170_v61, %v162_v60  ;;  %v169_v7 = vld [vmem:[%s6769_s1 + $0x2e0] sm:$0xff]  ;;  %v163_v8 = vld [vmem:[%s6769_s1 + $0x2b0] sm:$0xff] }
  0x2e   :  { %620 = vmatmul.mubr.f32.vlgmr.msra.gmra.mrb[0].mxu1 %v4504_v5  ;;  %3977 = vmatpush1.bf16.msra.mxu0 %v3976_v6  ;;  %v172_v0 = vld [vmem:[%s6769_s1 + $0x2f8] sm:$0xff]  ;;  %v161_v6 = vld [vmem:[%s6769_s1 + $0x2a0] sm:$0xff]  ;;  %v178_v12 = vld [vmem:[%s6769_s1 + $0x328] sm:$0xff] }
  0x2f   :  { %4017 = vmatpush1.bf16.msra.mxu1 %v4016_v9  ;;  %3678 = vmatprep.mubr.msk.f32.mxu0 %vm237_vm0, %v4515_v10  ;;  %v4675_v1 = vld [vmem:[%s6768_s0 + $0x58] sm:$0xff]  ;;  %v4034_v9 = vpack.c.bf16 %v172_v0, %v164_v63  ;;  %v186_v13 = vld [vmem:[%s6769_s1 + $0x368] sm:$0xff]  ;;  %v4702_v14 = vld [vmem:[%s6768_s0 + $0x50] sm:$0xff]  ;;  %v3996_v18 = vpack.c.bf16 %v169_v7, %v161_v6 }
  0x30   :  { %3706 = vmatprep.mubr.msk.f32.mxu1 %vm237_vm0, %v4515_v10  ;;  %3979 = vmatprep.subr.bf16.mxu0 %v3978_v11  ;;  %v171_v11 = vld [vmem:[%s6769_s1 + $0x2f0] sm:$0xff]  ;;  %v188_v16 = vld [vmem:[%s6769_s1 + $0x378] sm:$0xff]  ;;  %v4715_v17 = vld [vmem:[%s6768_s0 + $0x68] sm:$0xff]  ;;  %v3998_v21 = vpack.c.bf16 %v186_v13, %v178_v12 }
  0x31   :  { %393 = vmatmul.mubr.f32.gmra.mrb[2].mxu0 %v4540_v19  ;;  %4019 = vmatprep.subr.bf16.mxu1 %v4018_v15  ;;  %v180_v15 = vld [vmem:[%s6769_s1 + $0x338] sm:$0xff]  ;;  %v4036_v20 = vpack.c.bf16 %v171_v11, %v163_v8  ;;  %v187_v27 = vld [vmem:[%s6769_s1 + $0x370] sm:$0xff]  ;;  %v194_v28 = vld [vmem:[%s6769_s1 + $0x3a8] sm:$0xff] }
  0x32   :  { %626 = vmatmul.mubr.f32.gmra.mrb[2].mxu1 %v4540_v19  ;;  %3679 = vmatprep.mubr.msk.f32.mxu0 %vm237_vm0, %v4553_v22  ;;  %v4038_v26 = vpack.c.bf16 %v188_v16, %v180_v15  ;;  %v4742_v30 = vld [vmem:[%s6768_s0 + $0x60] sm:$0xff]  ;;  %v196_v31 = vld [vmem:[%s6769_s1 + $0x3b8] sm:$0xff]  ;;  %v195_v42 = vld [vmem:[%s6769_s1 + $0x3b0] sm:$0xff] }
  0x33   :  { %3707 = vmatprep.mubr.msk.f32.mxu1 %vm237_vm0, %v4553_v22  ;;  %3981 = vmatpush1.bf16.msra.mxu0 %v3980_v23  ;;  %v177_v23 = vld [vmem:[%s6769_s1 + $0x320] sm:$0xff]  ;;  %v204_v33 = vld [vmem:[%s6769_s1 + $0x3f8] sm:$0xff]  ;;  %v210_v45 = vld [vmem:[%s6769_s1 + $0x428] sm:$0xff] }
  0x34   :  { %4021 = vmatpush1.bf16.msra.mxu1 %v4020_v24  ;;  %3983 = vmatprep.subr.bf16.mxu0 %v3982_v25  ;;  %v185_v24 = vld [vmem:[%s6769_s1 + $0x360] sm:$0xff]  ;;  %v179_v25 = vld [vmem:[%s6769_s1 + $0x330] sm:$0xff]  ;;  %v4755_v35 = vld [vmem:[%s6768_s0 + $0x78] sm:$0xff]  ;;  %v4042_v43 = vpack.c.bf16 %v204_v33, %v196_v31 }
  0x35   :  { %399 = vmatmul.mubr.f32.gmra.mrb[4].mxu0 %v4582_v34  ;;  %4023 = vmatprep.subr.bf16.mxu1 %v4022_v29  ;;  %v202_v29 = vld [vmem:[%s6769_s1 + $0x3e8] sm:$0xff]  ;;  %v4000_v36 = vpack.c.bf16 %v185_v24, %v177_v23  ;;  %v201_v41 = vld [vmem:[%s6769_s1 + $0x3e0] sm:$0xff]  ;;  %v4782_v47 = vld [vmem:[%s6768_s0 + $0x70] sm:$0xff] }
  0x36   :  { %632 = vmatmul.mubr.f32.gmra.mrb[4].mxu1 %v4582_v34  ;;  %3680 = vmatprep.mubr.msk.f32.mxu0 %vm237_vm0, %v4595_v37  ;;  %v218_v46 = vld [vmem:[%s6769_s1 + $0x468] sm:$0xff]  ;;  %v212_v49 = vld [vmem:[%s6769_s1 + $0x438] sm:$0xff]  ;;  %v209_v57 = vld [vmem:[%s6769_s1 + $0x420] sm:$0xff] }
  0x37   :  { %3708 = vmatprep.mubr.msk.f32.mxu1 %vm237_vm0, %v4595_v37  ;;  %3985 = vmatpush1.bf16.msra.mxu0 %v3984_v38  ;;  %v4040_v38 = vpack.c.bf16 %v187_v27, %v179_v25  ;;  %v220_v50 = vld [vmem:[%s6769_s1 + $0x478] sm:$0xff]  ;;  %v4006_v56 = vpack.c.bf16 %v218_v46, %v210_v45  ;;  %v211_v59 = vld [vmem:[%s6769_s1 + $0x430] sm:$0xff]  ;;  %v226_v63 = vld [vmem:[%s6769_s1 + $0x4a8] sm:$0xff] }
  0x38   :  { %4025 = vmatpush1.bf16.msra.mxu1 %v4024_v39  ;;  %3987 = vmatprep.subr.bf16.mxu0 %v3986_v40  ;;  %v4002_v39 = vpack.c.bf16 %v202_v29, %v194_v28  ;;  %v193_v40 = vld [vmem:[%s6769_s1 + $0x3a0] sm:$0xff]  ;;  %v4046_v60 = vpack.c.bf16 %v220_v50, %v212_v49  ;;  %v219_v61 = vld [vmem:[%s6769_s1 + $0x470] sm:$0xff]  ;;  %v234_v0 = vld [vmem:[%s6769_s1 + $0x4e8] sm:$0xff] }
  0x39   :  { %405 = vmatmul.mubr.f32.gmra.mrb[6].mxu0 %v4622_v48  ;;  %4027 = vmatprep.subr.bf16.mxu1 %v4026_v44  ;;  %v203_v44 = vld [vmem:[%s6769_s1 + $0x3f0] sm:$0xff] }
  0x3a   :  { %638 = vmatmul.mubr.f32.gmra.mrb[6].mxu1 %v4622_v48  ;;  %3681 = vmatprep.mubr.msk.f32.mxu0 %vm237_vm0, %v4635_v51  ;;  %v4044_v55 = vpack.c.bf16 %v203_v44, %v195_v42 }
  0x3b   :  { %3709 = vmatprep.mubr.msk.f32.mxu1 %vm237_vm0, %v4635_v51  ;;  %3989 = vmatpush1.bf16.msra.mxu0 %v3988_v52  ;;  %v4795_v52 = vld [vmem:[%s6768_s0 + $0x88] sm:$0xff] }
  0x3c   :  { %4029 = vmatpush1.bf16.msra.mxu1 %v4028_v53  ;;  %3991 = vmatprep.subr.bf16.mxu0 %v3990_v54  ;;  %v4004_v53 = vpack.c.bf16 %v201_v41, %v193_v40  ;;  %v4800_v54 = vld [vmem:[%s6768_s0 + $0x80] sm:$0xff] }
  0x3d   :  { %411 = vmatmul.mubr.f32.gmra.mrb[8].mxu0 %v4662_v62  ;;  %4031 = vmatprep.subr.bf16.mxu1 %v4030_v58  ;;  %v217_v58 = vld [vmem:[%s6769_s1 + $0x460] sm:$0xff] }
  0x3e   :  { %644 = vmatmul.mubr.f32.gmra.mrb[8].mxu1 %v4662_v62  ;;  %3682 = vmatprep.mubr.msk.f32.mxu0 %vm237_vm0, %v4675_v1 }
  0x3f   :  { %3710 = vmatprep.mubr.msk.f32.mxu1 %vm237_vm0, %v4675_v1  ;;  %3993 = vmatpush1.bf16.msra.mxu0 %v3992_v2  ;;  %v228_v2 = vld [vmem:[%s6769_s1 + $0x4b8] sm:$0xff] }
  0x40   :  { %4033 = vmatpush1.bf16.msra.mxu1 %v4032_v3  ;;  %3995 = vmatprep.subr.bf16.mxu0 %v3994_v4  ;;  %v236_v3 = vld [vmem:[%s6769_s1 + $0x4f8] sm:$0xff] }
  0x41   :  { %417 = vmatmul.mubr.f32.gmra.mrb[10].mxu0 %v4702_v14  ;;  %4035 = vmatprep.subr.bf16.mxu1 %v4034_v9 }
  0x42   :  { %650 = vmatmul.mubr.f32.gmra.mrb[10].mxu1 %v4702_v14  ;;  %3683 = vmatprep.mubr.msk.f32.mxu0 %vm237_vm0, %v4715_v17 }
  0x43   :  { %3711 = vmatprep.mubr.msk.f32.mxu1 %vm237_vm0, %v4715_v17  ;;  %3997 = vmatpush1.bf16.msra.mxu0 %v3996_v18 }
  0x44   :  { %4037 = vmatpush1.bf16.msra.mxu1 %v4036_v20  ;;  %3999 = vmatprep.subr.bf16.mxu0 %v3998_v21 }
  0x45   :  { %423 = vmatmul.mubr.f32.gmra.mrb[12].mxu0 %v4742_v30  ;;  %4039 = vmatprep.subr.bf16.mxu1 %v4038_v26 }
  0x46   :  { %656 = vmatmul.mubr.f32.gmra.mrb[12].mxu1 %v4742_v30  ;;  %3684 = vmatprep.mubr.msk.f32.mxu0 %vm237_vm0, %v4755_v35 }
  0x47   :  { %3712 = vmatprep.mubr.msk.f32.mxu1 %vm237_vm0, %v4755_v35  ;;  %4001 = vmatpush1.bf16.msra.mxu0 %v4000_v36 }
  0x48   :  { %4041 = vmatpush1.bf16.msra.mxu1 %v4040_v38  ;;  %4003 = vmatprep.subr.bf16.mxu0 %v4002_v39 }
  0x49   :  { %429 = vmatmul.mubr.f32.gmra.mrb[14].mxu0 %v4782_v47  ;;  %4043 = vmatprep.subr.bf16.mxu1 %v4042_v43 }
  0x4a   :  { %662 = vmatmul.mubr.f32.gmra.mrb[14].mxu1 %v4782_v47  ;;  %3685 = vmatprep.mubr.msk.f32.mxu0 %vm237_vm0, %v4795_v52 }
  0x4b   :  { %10 = vsyncpa [#allocation3], 0  ;;  %3713 = vmatprep.mubr.msk.f32.mxu1 %vm237_vm0, %v4795_v52  ;;  %v4835_v4 = vld [vmem:[%s6768_s0 + $0x98] sm:$0xff]  ;;  %4005 = vmatpush1.bf16.msra.mxu0 %v4004_v53  ;;  %v4008_v6 = vpack.c.bf16 %v217_v58, %v209_v57  ;;  %v4048_v7 = vpack.c.bf16 %v219_v61, %v211_v59  ;;  %v4010_v8 = vpack.c.bf16 %v234_v0, %v226_v63  ;;  %v225_v9 = vld [vmem:[%s6769_s1 + $0x4a0] sm:$0xff]  ;;  %s4191_s24 = smov [#allocation2]   ;;  %vm3661_vm1 = vcmask 80896  }
  0x4c   :  { %4045 = vmatpush1.bf16.msra.mxu1 %v4044_v55  ;;  %4007 = vmatprep.subr.bf16.mxu0 %v4006_v56  ;;  %v233_v11 = vld [vmem:[%s6769_s1 + $0x4e0] sm:$0xff]  ;;  %v4050_v12 = vpack.c.bf16 %v236_v3, %v228_v2  ;;  %v227_v13 = vld [vmem:[%s6769_s1 + $0x4b0] sm:$0xff]  ;;  %v4863_v18 = vld [vmem:[%s6768_s0 + $0xa8] sm:$0xff]  ;;  %s3669_s25 = sshll.u32 %s4191_s24, 4  ;;  %s3670_s25 = int_to_ptr.vmem [resolvable:$true] %s3669_s25 }
  0x4d   :  { %435 = vmatmul.mubr.f32.gmra.mrb[16].mxu0 %v4800_v54  ;;  %4047 = vmatprep.subr.bf16.mxu1 %v4046_v60  ;;  %v235_v15 = vld [vmem:[%s6769_s1 + $0x4f0] sm:$0xff]  ;;  %v4012_v20 = vpack.c.bf16 %v233_v11, %v225_v9  ;;  %v4872_v23 = vld [vmem:[%s6768_s0 + $0xa0] sm:$0xff]  ;;  %v4879_v24 = vld [vmem:[%s6768_s0 + $0xb8] sm:$0xff]  ;;  %s4167_s26 = scalar_lea.vmem %s3670_s25, 128  ;;  %p4172_p1 = scmp.lt.s32.totalorder %s3670_s25, %s3670_s25 }
  0x4e   :  { %668 = vmatmul.mubr.f32.gmra.mrb[16].mxu1 %v4800_v54  ;;  %3686 = vmatprep.mubr.msk.f32.mxu0 %vm237_vm0, %v4835_v4  ;;  %v4856_v16 = vld [vmem:[%s6768_s0 + $0x90] sm:$0xff]  ;;  %v4052_v21 = vpack.c.bf16 %v235_v15, %v227_v13  ;;  %v4895_v26 = vld [vmem:[%s6768_s0 + $0xc8] sm:$0xff]  ;;  %v4904_v27 = vld [vmem:[%s6768_s0 + $0xc0] sm:$0xff]  ;;  %p4168_p0 = scmp.ne.s32.totalorder %s3670_s25, %s4167_s26  ;;  %p4173_p2 = scmp.lt.s32.totalorder %s4167_s26, %s4167_s26 }
  0x4f   :  { %3714 = vmatprep.mubr.msk.f32.mxu1 %vm237_vm0, %v4835_v4  ;;  %4009 = vmatpush1.bf16.msra.mxu0 %v4008_v6  ;;  %v4888_v25 = vld [vmem:[%s6768_s0 + $0xb0] sm:$0xff]  ;;  %v4911_v28 = vld [vmem:[%s6768_s0 + $0xd8] sm:$0xff]  ;;  %v4927_v31 = vld [vmem:[%s6768_s0 + $0xe8] sm:$0xff] }
  0x50   :  { %4049 = vmatpush1.bf16.msra.mxu1 %v4048_v7  ;;  %4011 = vmatprep.subr.bf16.mxu0 %v4010_v8  ;;  %v4920_v29 = vld [vmem:[%s6768_s0 + $0xd0] sm:$0xff]  ;;  %v4936_v33 = vld [vmem:[%s6768_s0 + $0xe0] sm:$0xff]  ;;  %v4943_v36 = vld [vmem:[%s6768_s0 + $0xf8] sm:$0xff]  ;;  %p4174_p3 = por %p4173_p2, %p4172_p1 }
  0x51   :  { %441 = vmatmul.mubr.f32.gmra.mrb[18].mxu0 %v4856_v16  ;;  %4051 = vmatprep.subr.bf16.mxu1 %v4050_v12  ;;  %v4952_v38 = vld [vmem:[%s6768_s0 + $0xf0] sm:$0xff]  ;;  %v4959_v39 = vld [vmem:[%s6768_s0 + $0x108] sm:$0xff]  ;;  %v4968_v40 = vld [vmem:[%s6768_s0 + $0x100] sm:$0xff] }
  0x52   :  { %674 = vmatmul.mubr.f32.gmra.mrb[18].mxu1 %v4856_v16  ;;  %3687 = vmatprep.mubr.msk.f32.mxu0 %vm237_vm0, %v4863_v18  ;;  %v4975_v41 = vld [vmem:[%s6768_s0 + $0x118] sm:$0xff]  ;;  %v4984_v42 = vld [vmem:[%s6768_s0 + $0x110] sm:$0xff]  ;;  %v4991_v43 = vld [vmem:[%s6768_s0 + $0x128] sm:$0xff]  ;;  %p4175_p4 = pnand %p4174_p3, %p4168_p0 }
  0x53   :  { %3715 = vmatprep.mubr.msk.f32.mxu1 %vm237_vm0, %v4863_v18  ;;  %4013 = vmatpush1.bf16.msra.mxu0 %v4012_v20  ;;  %v5000_v44 = vld [vmem:[%s6768_s0 + $0x120] sm:$0xff]  ;;  %v5007_v45 = vld [vmem:[%s6768_s0 + $0x138] sm:$0xff]  ;;  %v5016_v46 = vld [vmem:[%s6768_s0 + $0x130] sm:$0xff] }
  0x54   :  { %4053 = vmatpush1.bf16.msra.mxu1 %v4052_v21  ;;  %v5023_v49 = vld [vmem:[%s6768_s0 + $0x148] sm:$0xff]  ;;  %v5032_v50 = vld [vmem:[%s6768_s0 + $0x140] sm:$0xff]  ;;  %v5039_v53 = vld [vmem:[%s6768_s0 + $0x158] sm:$0xff] }
  0x55   :  { %447 = vmatmul.mubr.f32.gmra.mrb[20].mxu0 %v4872_v23  ;;  %v5048_v55 = vld [vmem:[%s6768_s0 + $0x150] sm:$0xff]  ;;  %v5055_v56 = vld [vmem:[%s6768_s0 + $0x168] sm:$0xff]  ;;  %v5064_v57 = vld [vmem:[%s6768_s0 + $0x160] sm:$0xff] }
  0x56   :  { %680 = vmatmul.mubr.f32.gmra.mrb[20].mxu1 %v4872_v23  ;;  %3688 = vmatprep.mubr.msk.f32.mxu0 %vm237_vm0, %v4879_v24  ;;  %v5071_v58 = vld [vmem:[%s6768_s0 + $0x178] sm:$0xff]  ;;  %v5080_v59 = vld [vmem:[%s6768_s0 + $0x170] sm:$0xff]  ;;  %v5087_v60 = vld [vmem:[%s6768_s0 + $0x188] sm:$0xff] }
  0x57   :  { %3716 = vmatprep.mubr.msk.f32.mxu1 %vm237_vm0, %v4879_v24  ;;  %v5096_v61 = vld [vmem:[%s6768_s0 + $0x180] sm:$0xff]  ;;  %v5103_v63 = vld [vmem:[%s6768_s0 + $0x198] sm:$0xff]  ;;  %v5112_v0 = vld [vmem:[%s6768_s0 + $0x190] sm:$0xff] }
  0x58   :  { %v5119_v2 = vld [vmem:[%s6768_s0 + $0x1a8] sm:$0xff]  ;;  %v5128_v3 = vld [vmem:[%s6768_s0 + $0x1a0] sm:$0xff]  ;;  %v5135_v6 = vld [vmem:[%s6768_s0 + $0x1b8] sm:$0xff] }
  0x59   :  { %453 = vmatmul.mubr.f32.gmra.mrb[22].mxu0 %v4888_v25  ;;  %v5144_v7 = vld [vmem:[%s6768_s0 + $0x1b0] sm:$0xff] }
  0x5a   :  { %686 = vmatmul.mubr.f32.gmra.mrb[22].mxu1 %v4888_v25  ;;  %3689 = vmatprep.mubr.msk.f32.mxu0 %vm237_vm0, %v4895_v26 }
  0x5b   :  { %3717 = vmatprep.mubr.msk.f32.mxu1 %vm237_vm0, %v4895_v26 }
  0x5d   :  { %459 = vmatmul.mubr.f32.gmra.mrb[24].mxu0 %v4904_v27 }
  0x5e   :  { %692 = vmatmul.mubr.f32.gmra.mrb[24].mxu1 %v4904_v27  ;;  %3690 = vmatprep.mubr.msk.f32.mxu0 %vm237_vm0, %v4911_v28 }
  0x5f   :  { %3718 = vmatprep.mubr.msk.f32.mxu1 %vm237_vm0, %v4911_v28 }
  0x61   :  { %465 = vmatmul.mubr.f32.gmra.mrb[26].mxu0 %v4920_v29 }
  0x62   :  { %698 = vmatmul.mubr.f32.gmra.mrb[26].mxu1 %v4920_v29  ;;  %3691 = vmatprep.mubr.msk.f32.mxu0 %vm237_vm0, %v4927_v31 }
  0x63   :  { %3719 = vmatprep.mubr.msk.f32.mxu1 %vm237_vm0, %v4927_v31 }
  0x65   :  { %471 = vmatmul.mubr.f32.gmra.mrb[28].mxu0 %v4936_v33 }
  0x66   :  { %704 = vmatmul.mubr.f32.gmra.mrb[28].mxu1 %v4936_v33  ;;  %3692 = vmatprep.mubr.msk.f32.mxu0 %vm237_vm0, %v4943_v36 }
  0x67   :  { %3720 = vmatprep.mubr.msk.f32.mxu1 %vm237_vm0, %v4943_v36 }
  0x69   :  { %477 = vmatmul.mubr.f32.gmra.mrb[30].mxu0 %v4952_v38 }
  0x6a   :  { %710 = vmatmul.mubr.f32.gmra.mrb[30].mxu1 %v4952_v38  ;;  %3693 = vmatprep.mubr.msk.f32.mxu0 %vm237_vm0, %v4959_v39 }
  0x6b   :  { %3721 = vmatprep.mubr.msk.f32.mxu1 %vm237_vm0, %v4959_v39 }
  0x6d   :  { %483 = vmatmul.mubr.f32.gmra.mrb[32].mxu0 %v4968_v40 }
  0x6e   :  { %716 = vmatmul.mubr.f32.gmra.mrb[32].mxu1 %v4968_v40  ;;  %3694 = vmatprep.mubr.msk.f32.mxu0 %vm237_vm0, %v4975_v41 }
  0x6f   :  { %3722 = vmatprep.mubr.msk.f32.mxu1 %vm237_vm0, %v4975_v41 }
  0x71   :  { %489 = vmatmul.mubr.f32.gmra.mrb[34].mxu0 %v4984_v42 }
  0x72   :  { %722 = vmatmul.mubr.f32.gmra.mrb[34].mxu1 %v4984_v42  ;;  %3695 = vmatprep.mubr.msk.f32.mxu0 %vm237_vm0, %v4991_v43 }
  0x73   :  { %3723 = vmatprep.mubr.msk.f32.mxu1 %vm237_vm0, %v4991_v43 }
  0x75   :  { %495 = vmatmul.mubr.f32.gmra.mrb[36].mxu0 %v5000_v44 }
  0x76   :  { %728 = vmatmul.mubr.f32.gmra.mrb[36].mxu1 %v5000_v44  ;;  %3696 = vmatprep.mubr.msk.f32.mxu0 %vm237_vm0, %v5007_v45 }
  0x77   :  { %3724 = vmatprep.mubr.msk.f32.mxu1 %vm237_vm0, %v5007_v45 }
  0x79   :  { %501 = vmatmul.mubr.f32.gmra.mrb[38].mxu0 %v5016_v46 }
  0x7a   :  { %734 = vmatmul.mubr.f32.gmra.mrb[38].mxu1 %v5016_v46  ;;  %3697 = vmatprep.mubr.msk.f32.mxu0 %vm237_vm0, %v5023_v49 }
  0x7b   :  { %3725 = vmatprep.mubr.msk.f32.mxu1 %vm237_vm0, %v5023_v49 }
  0x7d   :  { %507 = vmatmul.mubr.f32.gmra.mrb[40].mxu0 %v5032_v50 }
  0x7e   :  { %740 = vmatmul.mubr.f32.gmra.mrb[40].mxu1 %v5032_v50  ;;  %3698 = vmatprep.mubr.msk.f32.mxu0 %vm237_vm0, %v5039_v53 }
  0x7f   :  { %3726 = vmatprep.mubr.msk.f32.mxu1 %vm237_vm0, %v5039_v53 }
  0x81   :  { %513 = vmatmul.mubr.f32.gmra.mrb[42].mxu0 %v5048_v55 }
  0x82   :  { %746 = vmatmul.mubr.f32.gmra.mrb[42].mxu1 %v5048_v55  ;;  %3699 = vmatprep.mubr.msk.f32.mxu0 %vm237_vm0, %v5055_v56 }
  0x83   :  { %3727 = vmatprep.mubr.msk.f32.mxu1 %vm237_vm0, %v5055_v56 }
  0x85   :  { %519 = vmatmul.mubr.f32.gmra.mrb[44].mxu0 %v5064_v57 }
  0x86   :  { %752 = vmatmul.mubr.f32.gmra.mrb[44].mxu1 %v5064_v57  ;;  %3700 = vmatprep.mubr.msk.f32.mxu0 %vm237_vm0, %v5071_v58 }
  0x87   :  { %3728 = vmatprep.mubr.msk.f32.mxu1 %vm237_vm0, %v5071_v58 }
  0x89   :  { %525 = vmatmul.mubr.f32.gmra.mrb[46].mxu0 %v5080_v59 }
  0x8a   :  { %758 = vmatmul.mubr.f32.gmra.mrb[46].mxu1 %v5080_v59  ;;  %3701 = vmatprep.mubr.msk.f32.mxu0 %vm237_vm0, %v5087_v60 }
  0x8b   :  { %3729 = vmatprep.mubr.msk.f32.mxu1 %vm237_vm0, %v5087_v60 }
  0x8d   :  { %531 = vmatmul.mubr.f32.gmra.mrb[48].mxu0 %v5096_v61 }
  0x8e   :  { %764 = vmatmul.mubr.f32.gmra.mrb[48].mxu1 %v5096_v61  ;;  %3702 = vmatprep.mubr.msk.f32.mxu0 %vm237_vm0, %v5103_v63 }
  0x8f   :  { %3730 = vmatprep.mubr.msk.f32.mxu1 %vm237_vm0, %v5103_v63 }
  0x91   :  { %537 = vmatmul.mubr.f32.gmra.mrb[50].mxu0 %v5112_v0 }
  0x92   :  { %770 = vmatmul.mubr.f32.gmra.mrb[50].mxu1 %v5112_v0  ;;  %3703 = vmatprep.mubr.msk.f32.mxu0 %vm237_vm0, %v5119_v2 }
  0x93   :  { %3731 = vmatprep.mubr.msk.f32.mxu1 %vm237_vm0, %v5119_v2 }
  0x95   :  { %543 = vmatmul.mubr.f32.gmra.mrb[52].mxu0 %v5128_v3 }
  0x96   :  { %776 = vmatmul.mubr.f32.gmra.mrb[52].mxu1 %v5128_v3  ;;  %3704 = vmatprep.mubr.msk.f32.mxu0 %vm237_vm0, %v5135_v6 }
  0x97   :  { %3732 = vmatprep.mubr.msk.f32.mxu1 %vm237_vm0, %v5135_v6 }
  0x99   :  { %549 = vmatmul.mubr.f32.gmra.mrb[54].mxu0 %v5144_v7 }
  0x9a   :  { %782 = vmatmul.mubr.f32.gmra.mrb[54].mxu1 %v5144_v7  ;;  %3733 = vmatprep.mubr.msk.f32.mxu0 %vm237_vm0, %v4423_v32 }
  0x9b   :  { %3761 = vmatprep.mubr.msk.f32.mxu1 %vm237_vm0, %v4423_v32  ;;  %v3790_v32 = vld [vmem:[%s6771_s3 + $0x48] sm:$0xff] }
  0x9d   :  { %853 = vmatmul.mubr.f32.vlgmr.msra.gmra.mrb[56].mxu0 %v4504_v5 }
  0x9e   :  { %1086 = vmatmul.mubr.f32.vlgmr.msra.gmra.mrb[56].mxu1 %v4504_v5  ;;  %3734 = vmatprep.mubr.msk.f32.mxu0 %vm237_vm0, %v4515_v10  ;;  %v3794_v5 = vld [vmem:[%s6771_s3 + $0x68] sm:$0x3] }
  0x9f   :  { %3762 = vmatprep.mubr.msk.f32.mxu1 %vm237_vm0, %v4515_v10  ;;  %v3792_v10 = vld [vmem:[%s6771_s3 + $0x58] sm:$0xff] }
  0xa1   :  { %859 = vmatmul.mubr.f32.gmra.mrb[58].mxu0 %v4540_v19 }
  0xa2   :  { %1092 = vmatmul.mubr.f32.gmra.mrb[58].mxu1 %v4540_v19  ;;  %3735 = vmatprep.mubr.msk.f32.mxu0 %vm237_vm0, %v4553_v22  ;;  %v4054_v19 = vpack.c.bf16 %v3794_v5, %v3790_v32  ;;  %v1557_v5 = vld [vmem:[%s6771_s3 + $0x8] sm:$0xff] }
  0xa3   :  { %3763 = vmatprep.mubr.msk.f32.mxu1 %vm237_vm0, %v4553_v22  ;;  %v3796_v22 = vld [vmem:[%s6771_s3 + $0x78] sm:$0x3] }
  0xa4   :  { %4055 = vmatprep.subr.bf16.mxu0 %v4054_v19  ;;  %v1559_v19 = vld [vmem:[%s6771_s3 + $0x18] sm:$0xff] }
  0xa5   :  { %865 = vmatmul.mubr.f32.gmra.mrb[60].mxu0 %v4582_v34 }
  0xa6   :  { %1098 = vmatmul.mubr.f32.gmra.mrb[60].mxu1 %v4582_v34  ;;  %3736 = vmatprep.mubr.msk.f32.mxu0 %vm237_vm0, %v4595_v37  ;;  %v4058_v34 = vpack.c.bf16 %v3796_v22, %v3792_v10  ;;  %v1561_v10 = vld [vmem:[%s6771_s3 + $0x28] sm:$0x3] }
  0xa7   :  { %3764 = vmatprep.mubr.msk.f32.mxu1 %vm237_vm0, %v4595_v37  ;;  %v3789_v37 = vld [vmem:[%s6771_s3 + $0x40] sm:$0xff] }
  0xa8   :  { %4059 = vmatprep.subr.bf16.mxu1 %v4058_v34 }
  0xa9   :  { %871 = vmatmul.mubr.f32.gmra.mrb[62].mxu0 %v4622_v48 }
  0xaa   :  { %1104 = vmatmul.mubr.f32.gmra.mrb[62].mxu1 %v4622_v48  ;;  %3737 = vmatprep.mubr.msk.f32.mxu0 %vm237_vm0, %v4635_v51  ;;  %v3793_v48 = vld [vmem:[%s6771_s3 + $0x60] sm:$0x3] }
  0xab   :  { %3765 = vmatprep.mubr.msk.f32.mxu1 %vm237_vm0, %v4635_v51  ;;  %v3791_v51 = vld [vmem:[%s6771_s3 + $0x50] sm:$0xff] }
  0xad   :  { %877 = vmatmul.mubr.f32.gmra.mrb[64].mxu0 %v4662_v62 }
  0xae   :  { %1110 = vmatmul.mubr.f32.gmra.mrb[64].mxu1 %v4662_v62  ;;  %3738 = vmatprep.mubr.msk.f32.mxu0 %vm237_vm0, %v4675_v1  ;;  %v4056_v62 = vpack.c.bf16 %v3793_v48, %v3789_v37  ;;  %v4062_v37 = vpack.c.bf16 %v1561_v10, %v1557_v5  ;;  %v1563_v48 = vld [vmem:[%s6771_s3 + $0x38] sm:$0x3] }
  0xaf   :  { %3766 = vmatprep.mubr.msk.f32.mxu1 %vm237_vm0, %v4675_v1  ;;  %v3795_v1 = vld [vmem:[%s6771_s3 + $0x70] sm:$0x3] }
  0xb0   :  { %4057 = vmatpush1.bf16.xpose.msra.mxu0 %v4056_v62  ;;  %v4066_v62 = vpack.c.bf16 %v1563_v48, %v1559_v19 }
  0xb1   :  { %883 = vmatmul.mubr.f32.gmra.mrb[66].mxu0 %v4702_v14  ;;  %4063 = vmatprep.subr.bf16.mxu0 %v4062_v37 }
  0xb2   :  { %1116 = vmatmul.mubr.f32.gmra.mrb[66].mxu1 %v4702_v14  ;;  %3739 = vmatprep.mubr.msk.f32.mxu0 %vm237_vm0, %v4715_v17  ;;  %v4060_v14 = vpack.c.bf16 %v3795_v1, %v3791_v51 }
  0xb3   :  { %3767 = vmatprep.mubr.msk.f32.mxu1 %vm237_vm0, %v4715_v17 }
  0xb4   :  { %4061 = vmatpush1.bf16.xpose.msra.mxu1 %v4060_v14 }
  0xb5   :  { %889 = vmatmul.mubr.f32.gmra.mrb[68].mxu0 %v4742_v30  ;;  %4067 = vmatprep.subr.bf16.mxu1 %v4066_v62 }
  0xb6   :  { %1122 = vmatmul.mubr.f32.gmra.mrb[68].mxu1 %v4742_v30  ;;  %3740 = vmatprep.mubr.msk.f32.mxu0 %vm237_vm0, %v4755_v35 }
  0xb7   :  { %3768 = vmatprep.mubr.msk.f32.mxu1 %vm237_vm0, %v4755_v35 }
  0xb9   :  { %895 = vmatmul.mubr.f32.gmra.mrb[70].mxu0 %v4782_v47 }
  0xba   :  { %1128 = vmatmul.mubr.f32.gmra.mrb[70].mxu1 %v4782_v47  ;;  %3741 = vmatprep.mubr.msk.f32.mxu0 %vm237_vm0, %v4795_v52 }
  0xbb   :  { %3769 = vmatprep.mubr.msk.f32.mxu1 %vm237_vm0, %v4795_v52 }
  0xbd   :  { %901 = vmatmul.mubr.f32.gmra.mrb[72].mxu0 %v4800_v54 }
  0xbe   :  { %1134 = vmatmul.mubr.f32.gmra.mrb[72].mxu1 %v4800_v54  ;;  %3742 = vmatprep.mubr.msk.f32.mxu0 %vm237_vm0, %v4835_v4 }
  0xbf   :  { %3770 = vmatprep.mubr.msk.f32.mxu1 %vm237_vm0, %v4835_v4 }
  0xc1   :  { %907 = vmatmul.mubr.f32.gmra.mrb[74].mxu0 %v4856_v16 }
  0xc2   :  { %1140 = vmatmul.mubr.f32.gmra.mrb[74].mxu1 %v4856_v16  ;;  %3743 = vmatprep.mubr.msk.f32.mxu0 %vm237_vm0, %v4863_v18 }
  0xc3   :  { %3771 = vmatprep.mubr.msk.f32.mxu1 %vm237_vm0, %v4863_v18 }
  0xc5   :  { %913 = vmatmul.mubr.f32.gmra.mrb[76].mxu0 %v4872_v23 }
  0xc6   :  { %1146 = vmatmul.mubr.f32.gmra.mrb[76].mxu1 %v4872_v23  ;;  %3744 = vmatprep.mubr.msk.f32.mxu0 %vm237_vm0, %v4879_v24 }
  0xc7   :  { %3772 = vmatprep.mubr.msk.f32.mxu1 %vm237_vm0, %v4879_v24 }
  0xc9   :  { %919 = vmatmul.mubr.f32.gmra.mrb[78].mxu0 %v4888_v25 }
  0xca   :  { %1152 = vmatmul.mubr.f32.gmra.mrb[78].mxu1 %v4888_v25  ;;  %3745 = vmatprep.mubr.msk.f32.mxu0 %vm237_vm0, %v4895_v26 }
  0xcb   :  { %3773 = vmatprep.mubr.msk.f32.mxu1 %vm237_vm0, %v4895_v26 }
  0xcd   :  { %925 = vmatmul.mubr.f32.gmra.mrb[80].mxu0 %v4904_v27 }
  0xce   :  { %1158 = vmatmul.mubr.f32.gmra.mrb[80].mxu1 %v4904_v27  ;;  %3746 = vmatprep.mubr.msk.f32.mxu0 %vm237_vm0, %v4911_v28 }
  0xcf   :  { %3774 = vmatprep.mubr.msk.f32.mxu1 %vm237_vm0, %v4911_v28 }
  0xd1   :  { %931 = vmatmul.mubr.f32.gmra.mrb[82].mxu0 %v4920_v29 }
  0xd2   :  { %1164 = vmatmul.mubr.f32.gmra.mrb[82].mxu1 %v4920_v29  ;;  %3747 = vmatprep.mubr.msk.f32.mxu0 %vm237_vm0, %v4927_v31 }
  0xd3   :  { %3775 = vmatprep.mubr.msk.f32.mxu1 %vm237_vm0, %v4927_v31 }
  0xd5   :  { %937 = vmatmul.mubr.f32.gmra.mrb[84].mxu0 %v4936_v33 }
  0xd6   :  { %1170 = vmatmul.mubr.f32.gmra.mrb[84].mxu1 %v4936_v33  ;;  %3748 = vmatprep.mubr.msk.f32.mxu0 %vm237_vm0, %v4943_v36 }
  0xd7   :  { %3776 = vmatprep.mubr.msk.f32.mxu1 %vm237_vm0, %v4943_v36 }
  0xd9   :  { %943 = vmatmul.mubr.f32.gmra.mrb[86].mxu0 %v4952_v38 }
  0xda   :  { %1176 = vmatmul.mubr.f32.gmra.mrb[86].mxu1 %v4952_v38  ;;  %3749 = vmatprep.mubr.msk.f32.mxu0 %vm237_vm0, %v4959_v39 }
  0xdb   :  { %3777 = vmatprep.mubr.msk.f32.mxu1 %vm237_vm0, %v4959_v39 }
  0xdd   :  { %949 = vmatmul.mubr.f32.gmra.mrb[88].mxu0 %v4968_v40 }
  0xde   :  { %1182 = vmatmul.mubr.f32.gmra.mrb[88].mxu1 %v4968_v40  ;;  %3750 = vmatprep.mubr.msk.f32.mxu0 %vm237_vm0, %v4975_v41 }
  0xdf   :  { %3778 = vmatprep.mubr.msk.f32.mxu1 %vm237_vm0, %v4975_v41 }
  0xe1   :  { %955 = vmatmul.mubr.f32.gmra.mrb[90].mxu0 %v4984_v42 }
  0xe2   :  { %1188 = vmatmul.mubr.f32.gmra.mrb[90].mxu1 %v4984_v42  ;;  %3751 = vmatprep.mubr.msk.f32.mxu0 %vm237_vm0, %v4991_v43 }
  0xe3   :  { %3779 = vmatprep.mubr.msk.f32.mxu1 %vm237_vm0, %v4991_v43 }
  0xe5   :  { %961 = vmatmul.mubr.f32.gmra.mrb[92].mxu0 %v5000_v44 }
  0xe6   :  { %1194 = vmatmul.mubr.f32.gmra.mrb[92].mxu1 %v5000_v44  ;;  %3752 = vmatprep.mubr.msk.f32.mxu0 %vm237_vm0, %v5007_v45 }
  0xe7   :  { %3780 = vmatprep.mubr.msk.f32.mxu1 %vm237_vm0, %v5007_v45 }
  0xe9   :  { %967 = vmatmul.mubr.f32.gmra.mrb[94].mxu0 %v5016_v46 }
  0xea   :  { %1200 = vmatmul.mubr.f32.gmra.mrb[94].mxu1 %v5016_v46  ;;  %3753 = vmatprep.mubr.msk.f32.mxu0 %vm237_vm0, %v5023_v49 }
  0xeb   :  { %3781 = vmatprep.mubr.msk.f32.mxu1 %vm237_vm0, %v5023_v49 }
  0xed   :  { %973 = vmatmul.mubr.f32.gmra.mrb[96].mxu0 %v5032_v50 }
  0xee   :  { %1206 = vmatmul.mubr.f32.gmra.mrb[96].mxu1 %v5032_v50  ;;  %3754 = vmatprep.mubr.msk.f32.mxu0 %vm237_vm0, %v5039_v53 }
  0xef   :  { %3782 = vmatprep.mubr.msk.f32.mxu1 %vm237_vm0, %v5039_v53 }
  0xf1   :  { %979 = vmatmul.mubr.f32.gmra.mrb[98].mxu0 %v5048_v55 }
  0xf2   :  { %1212 = vmatmul.mubr.f32.gmra.mrb[98].mxu1 %v5048_v55  ;;  %3755 = vmatprep.mubr.msk.f32.mxu0 %vm237_vm0, %v5055_v56 }
  0xf3   :  { %3783 = vmatprep.mubr.msk.f32.mxu1 %vm237_vm0, %v5055_v56 }
  0xf5   :  { %985 = vmatmul.mubr.f32.gmra.mrb[100].mxu0 %v5064_v57 }
  0xf6   :  { %1218 = vmatmul.mubr.f32.gmra.mrb[100].mxu1 %v5064_v57  ;;  %3756 = vmatprep.mubr.msk.f32.mxu0 %vm237_vm0, %v5071_v58 }
  0xf7   :  { %3784 = vmatprep.mubr.msk.f32.mxu1 %vm237_vm0, %v5071_v58 }
  0xf9   :  { %991 = vmatmul.mubr.f32.gmra.mrb[102].mxu0 %v5080_v59 }
  0xfa   :  { %1224 = vmatmul.mubr.f32.gmra.mrb[102].mxu1 %v5080_v59  ;;  %3757 = vmatprep.mubr.msk.f32.mxu0 %vm237_vm0, %v5087_v60 }
  0xfb   :  { %3785 = vmatprep.mubr.msk.f32.mxu1 %vm237_vm0, %v5087_v60 }
  0xfd   :  { %997 = vmatmul.mubr.f32.gmra.mrb[104].mxu0 %v5096_v61 }
  0xfe   :  { %1230 = vmatmul.mubr.f32.gmra.mrb[104].mxu1 %v5096_v61  ;;  %3758 = vmatprep.mubr.msk.f32.mxu0 %vm237_vm0, %v5103_v63 }
  0xff   :  { %3786 = vmatprep.mubr.msk.f32.mxu1 %vm237_vm0, %v5103_v63 }
 0x100   :  { %v5328_v17 = vpop.f32.mrb[0].mxu0 }
 0x101   :  { %v5330_v30 = vpop.f32.mrb[0].mxu1  ;;  %v5332_v35 = vpop.f32.mrb[1].mxu0  ;;  %1003 = vmatmul.mubr.f32.gmra.mrb[106].mxu0 %v5112_v0 }
 0x102   :  { %v5335_v47 = vpop.f32.mrb[1].mxu1  ;;  %1236 = vmatmul.mubr.f32.gmra.mrb[106].mxu1 %v5112_v0  ;;  %3759 = vmatprep.mubr.msk.f32.mxu0 %vm237_vm0, %v5119_v2 }
 0x103   :  { %3787 = vmatprep.mubr.msk.f32.mxu1 %vm237_vm0, %v5119_v2 }
 0x104   :  { %v5342_v52 = vpop.f32.mrb[2].mxu0 }
 0x105   :  { %6867 = vst [vmem:[#allocation5_spill] sm:$0xff] %v5342_v52  ;;  %v5344_v54 = vpop.f32.mrb[2].mxu1  ;;  %v5346_v4 = vpop.f32.mrb[3].mxu0  ;;  %1009 = vmatmul.mubr.f32.gmra.mrb[108].mxu0 %v5128_v3 }
 0x106   :  { %v5349_v8 = vpop.f32.mrb[3].mxu1  ;;  %1242 = vmatmul.mubr.f32.gmra.mrb[108].mxu1 %v5128_v3  ;;  %3760 = vmatprep.mubr.msk.f32.mxu0 %vm237_vm0, %v5135_v6 }
 0x107   :  { %3788 = vmatprep.mubr.msk.f32.mxu1 %vm237_vm0, %v5135_v6 }
 0x108   :  { %v5356_v9 = vpop.f32.mrb[4].mxu0 }
 0x109   :  { %6868 = vst [vmem:[#allocation6_spill] sm:$0xff] %v5356_v9  ;;  %v5358_v11 = vpop.f32.mrb[4].mxu1  ;;  %v5360_v12 = vpop.f32.mrb[5].mxu0  ;;  %1015 = vmatmul.mubr.f32.gmra.mrb[110].mxu0 %v5144_v7 }
 0x10a   :  { %v5363_v13 = vpop.f32.mrb[5].mxu1  ;;  %1248 = vmatmul.mubr.f32.gmra.mrb[110].mxu1 %v5144_v7 }
 0x10c   :  { %v5366_v15 = vpop.f32.mrb[6].mxu0 }
 0x10d   :  { %6869 = vst [vmem:[#allocation7_spill] sm:$0xff] %v5366_v15  ;;  %v5368_v16 = vpop.f32.mrb[6].mxu1  ;;  %v5370_v18 = vpop.f32.mrb[7].mxu0 }
 0x10e   :  { %v5372_v20 = vpop.f32.mrb[7].mxu1 }
 0x110   :  { %v5374_v21 = vpop.f32.mrb[8].mxu0 }
 0x111   :  { %6870 = vst [vmem:[#allocation8_spill] sm:$0xff] %v5374_v21  ;;  %v5376_v23 = vpop.f32.mrb[8].mxu1  ;;  %v5378_v24 = vpop.f32.mrb[9].mxu0 }
 0x112   :  { %6871 = vst [vmem:[#allocation9_spill] sm:$0xff] %v5378_v24  ;;  %v5380_v25 = vpop.f32.mrb[9].mxu1 }
 0x113   :  { %6872 = vst [vmem:[#allocation10_spill] sm:$0xff] %v5380_v25 }
 0x114   :  { %v5382_v26 = vpop.f32.mrb[10].mxu0 }
 0x115   :  { %6873 = vst [vmem:[#allocation11_spill] sm:$0xff] %v5382_v26  ;;  %v5384_v27 = vpop.f32.mrb[10].mxu1  ;;  %v5386_v28 = vpop.f32.mrb[11].mxu0 }
 0x116   :  { %6874 = vst [vmem:[#allocation12_spill] sm:$0xff] %v5384_v27  ;;  %6875 = vst [vmem:[#allocation13_spill] sm:$0xff] %v5386_v28  ;;  %v5388_v29 = vpop.f32.mrb[11].mxu1  ;;  %v5859_v27 = vld [vmem:[%s6771_s3 + $0x98] sm:$0xff] }
 0x117   :  { %6876 = vst [vmem:[#allocation14_spill] sm:$0xff] %v5388_v29  ;;  %v5842_v29 = vld [vmem:[%s6771_s3 + $0xa8] sm:$0x3] }
 0x118   :  { %v5390_v31 = vpop.f32.mrb[12].mxu0 }
 0x119   :  { %6877 = vst [vmem:[#allocation15_spill] sm:$0xff] %v5390_v31  ;;  %v5392_v33 = vpop.f32.mrb[12].mxu1  ;;  %v5394_v36 = vpop.f32.mrb[13].mxu0 }
 0x11a   :  { %6878 = vst [vmem:[#allocation16_spill] sm:$0xff] %v5392_v33  ;;  %6879 = vst [vmem:[#allocation17_spill] sm:$0xff] %v5394_v36  ;;  %v5396_v38 = vpop.f32.mrb[13].mxu1 }
 0x11b   :  { %6880 = vst [vmem:[#allocation18_spill] sm:$0xff] %v5396_v38 }
 0x11c   :  { %v5398_v39 = vpop.f32.mrb[14].mxu0 }
 0x11d   :  { %6881 = vst [vmem:[#allocation19_spill] sm:$0xff] %v5398_v39  ;;  %v5400_v40 = vpop.f32.mrb[14].mxu1  ;;  %v5402_v41 = vpop.f32.mrb[15].mxu0 }
 0x11e   :  { %6882 = vst [vmem:[#allocation20_spill] sm:$0xff] %v5400_v40  ;;  %6883 = vst [vmem:[#allocation21_spill] sm:$0xff] %v5402_v41  ;;  %v5404_v42 = vpop.f32.mrb[15].mxu1 }
 0x11f   :  { %6884 = vst [vmem:[#allocation22_spill] sm:$0xff] %v5404_v42 }
 0x120   :  { %v5406_v43 = vpop.f32.mrb[16].mxu0 }
 0x121   :  { %6885 = vst [vmem:[#allocation23_spill] sm:$0xff] %v5406_v43  ;;  %v5408_v44 = vpop.f32.mrb[16].mxu1  ;;  %v5410_v45 = vpop.f32.mrb[17].mxu0 }
 0x122   :  { %6886 = vst [vmem:[#allocation24_spill] sm:$0xff] %v5408_v44  ;;  %6887 = vst [vmem:[#allocation25_spill] sm:$0xff] %v5410_v45  ;;  %v5412_v46 = vpop.f32.mrb[17].mxu1 }
 0x123   :  { %6888 = vst [vmem:[#allocation26_spill] sm:$0xff] %v5412_v46 }
 0x124   :  { %v5414_v49 = vpop.f32.mrb[18].mxu0 }
 0x125   :  { %6889 = vst [vmem:[#allocation27_spill] sm:$0xff] %v5414_v49  ;;  %v5416_v50 = vpop.f32.mrb[18].mxu1  ;;  %v5418_v53 = vpop.f32.mrb[19].mxu0 }
 0x126   :  { %6890 = vst [vmem:[#allocation28_spill] sm:$0xff] %v5416_v50  ;;  %6891 = vst [vmem:[#allocation29_spill] sm:$0xff] %v5418_v53  ;;  %v5420_v55 = vpop.f32.mrb[19].mxu1 }
 0x127   :  { %6892 = vst [vmem:[#allocation30_spill] sm:$0xff] %v5420_v55 }
 0x128   :  { %v5422_v56 = vpop.f32.mrb[20].mxu0 }
 0x129   :  { %6893 = vst [vmem:[#allocation31_spill] sm:$0xff] %v5422_v56  ;;  %v5424_v57 = vpop.f32.mrb[20].mxu1  ;;  %v5426_v58 = vpop.f32.mrb[21].mxu0 }
 0x12a   :  { %6894 = vst [vmem:[#allocation32_spill] sm:$0xff] %v5424_v57  ;;  %6895 = vst [vmem:[#allocation33_spill] sm:$0xff] %v5426_v58  ;;  %v5428_v59 = vpop.f32.mrb[21].mxu1 }
 0x12b   :  { %6896 = vst [vmem:[#allocation34_spill] sm:$0xff] %v5428_v59 }
 0x12c   :  { %v5430_v60 = vpop.f32.mrb[22].mxu0 }
 0x12d   :  { %6897 = vst [vmem:[#allocation35_spill] sm:$0xff] %v5430_v60  ;;  %v5432_v61 = vpop.f32.mrb[22].mxu1  ;;  %v5434_v63 = vpop.f32.mrb[23].mxu0 }
 0x12e   :  { %6898 = vst [vmem:[#allocation36_spill] sm:$0xff] %v5432_v61  ;;  %6899 = vst [vmem:[#allocation37_spill] sm:$0xff] %v5434_v63  ;;  %v5436_v0 = vpop.f32.mrb[23].mxu1 }
 0x12f   :  { %6900 = vst [vmem:[#allocation38_spill] sm:$0xff] %v5436_v0 }
 0x130   :  { %v5438_v2 = vpop.f32.mrb[24].mxu0 }
 0x131   :  { %6901 = vst [vmem:[#allocation39_spill] sm:$0xff] %v5438_v2  ;;  %v5440_v3 = vpop.f32.mrb[24].mxu1  ;;  %v5442_v6 = vpop.f32.mrb[25].mxu0 }
 0x132   :  { %6902 = vst [vmem:[#allocation40_spill] sm:$0xff] %v5440_v3  ;;  %6903 = vst [vmem:[#allocation41_spill] sm:$0xff] %v5442_v6  ;;  %v5444_v7 = vpop.f32.mrb[25].mxu1 }
 0x133   :  { %6904 = vst [vmem:[#allocation42_spill] sm:$0xff] %v5444_v7 }
 0x134   :  { %v5446_v32 = vpop.f32.mrb[26].mxu0 }
 0x135   :  { %6905 = vst [vmem:[#allocation43_spill] sm:$0xff] %v5446_v32  ;;  %v5457_v22 = vpop.f32.mrb[26].mxu1  ;;  %v5459_v34 = vpop.f32.mrb[27].mxu0 }
 0x136   :  { %6906 = vst [vmem:[#allocation44_spill] sm:$0xff] %v5457_v22  ;;  %6907 = vst [vmem:[#allocation45_spill] sm:$0xff] %v5459_v34  ;;  %v5464_v51 = vpop.f32.mrb[27].mxu1 }
 0x137   :  { %6908 = vst [vmem:[#allocation46_spill] sm:$0xff] %v5464_v51 }
 0x138   :  { %v5466_v1 = vpop.f32.mrb[28].mxu0 }
 0x139   :  { %v5470_v32 = vpop.f32.mrb[28].mxu1  ;;  %v5472_v22 = vpop.f32.mrb[29].mxu0 }
 0x13a   :  { %6909 = vst [vmem:[#allocation47_spill] sm:$0xff] %v5472_v22  ;;  %v5478_v34 = vpop.f32.mrb[29].mxu1 }
 0x13b   :  { %6910 = vst [vmem:[#allocation48_spill] sm:$0xff] %v5478_v34 }
 0x13c   :  { %v5482_v37 = vpop.f32.mrb[30].mxu0 }
 0x13d   :  { %6911 = vst [vmem:[#allocation49_spill] sm:$0xff] %v5482_v37  ;;  %v5486_v62 = vpop.f32.mrb[30].mxu1  ;;  %v5488_v14 = vpop.f32.mrb[31].mxu0 }
 0x13e   :  { %6912 = vst [vmem:[#allocation50_spill] sm:$0xff] %v5488_v14  ;;  %v5494_v22 = vpop.f32.mrb[31].mxu1 }
 0x13f   :  { %6913 = vst [vmem:[#allocation51_spill] sm:$0xff] %v5494_v22 }
 0x140   :  { %v5498_v34 = vpop.f32.mrb[32].mxu0 }
 0x141   :  { %6914 = vst [vmem:[#allocation52_spill] sm:$0xff] %v5498_v34  ;;  %v5502_v37 = vpop.f32.mrb[32].mxu1  ;;  %v5504_v52 = vpop.f32.mrb[33].mxu0 }
 0x142   :  { %6915 = vst [vmem:[#allocation53_spill] sm:$0xff] %v5504_v52  ;;  %v5510_v14 = vpop.f32.mrb[33].mxu1 }
 0x143   :  { %6916 = vst [vmem:[#allocation54_spill] sm:$0xff] %v5510_v14 }
 0x144   :  { %v5514_v22 = vpop.f32.mrb[34].mxu0 }
 0x145   :  { %6917 = vst [vmem:[#allocation55_spill] sm:$0xff] %v5514_v22  ;;  %v5518_v34 = vpop.f32.mrb[34].mxu1  ;;  %v5520_v9 = vpop.f32.mrb[35].mxu0 }
 0x146   :  { %6918 = vst [vmem:[#allocation56_spill] sm:$0xff] %v5520_v9  ;;  %v5526_v52 = vpop.f32.mrb[35].mxu1 }
 0x147   :  { %6919 = vst [vmem:[#allocation57_spill] sm:$0xff] %v5526_v52 }
 0x148   :  { %v5530_v14 = vpop.f32.mrb[36].mxu0 }
 0x149   :  { %6920 = vst [vmem:[#allocation58_spill] sm:$0xff] %v5530_v14  ;;  %v5534_v22 = vpop.f32.mrb[36].mxu1  ;;  %v5536_v15 = vpop.f32.mrb[37].mxu0 }
 0x14a   :  { %6921 = vst [vmem:[#allocation59_spill] sm:$0xff] %v5534_v22  ;;  %6922 = vst [vmem:[#allocation60_spill] sm:$0xff] %v5536_v15  ;;  %v5542_v9 = vpop.f32.mrb[37].mxu1 }
 0x14b   :  { %6923 = vst [vmem:[#allocation61_spill] sm:$0xff] %v5542_v9 }
 0x14c   :  { %v5546_v52 = vpop.f32.mrb[38].mxu0 }
 0x14d   :  { %6924 = vst [vmem:[#allocation62_spill] sm:$0xff] %v5546_v52  ;;  %v5550_v14 = vpop.f32.mrb[38].mxu1  ;;  %v5552_v21 = vpop.f32.mrb[39].mxu0 }
 0x14e   :  { %6925 = vst [vmem:[#allocation63_spill] sm:$0xff] %v5550_v14  ;;  %6926 = vst [vmem:[#allocation64_spill] sm:$0xff] %v5552_v21  ;;  %v5558_v15 = vpop.f32.mrb[39].mxu1 }
 0x14f   :  { %6927 = vst [vmem:[#allocation65_spill] sm:$0xff] %v5558_v15 }
 0x150   :  { %v5562_v9 = vpop.f32.mrb[40].mxu0 }
 0x151   :  { %6928 = vst [vmem:[#allocation66_spill] sm:$0xff] %v5562_v9  ;;  %v5566_v52 = vpop.f32.mrb[40].mxu1  ;;  %v5568_v26 = vpop.f32.mrb[41].mxu0 }
 0x152   :  { %6929 = vst [vmem:[#allocation67_spill] sm:$0xff] %v5566_v52  ;;  %6930 = vst [vmem:[#allocation68_spill] sm:$0xff] %v5568_v26  ;;  %v5574_v21 = vpop.f32.mrb[41].mxu1 }
 0x153   :  { %6931 = vst [vmem:[#allocation69_spill] sm:$0xff] %v5574_v21 }
 0x154   :  { %v5578_v15 = vpop.f32.mrb[42].mxu0 }
 0x155   :  { %6932 = vst [vmem:[#allocation70_spill] sm:$0xff] %v5578_v15  ;;  %v5582_v9 = vpop.f32.mrb[42].mxu1  ;;  %v5584_v31 = vpop.f32.mrb[43].mxu0 }
 0x156   :  { %6933 = vst [vmem:[#allocation71_spill] sm:$0xff] %v5582_v9  ;;  %6934 = vst [vmem:[#allocation72_spill] sm:$0xff] %v5584_v31  ;;  %v5590_v26 = vpop.f32.mrb[43].mxu1 }
 0x157   :  { %6935 = vst [vmem:[#allocation73_spill] sm:$0xff] %v5590_v26 }
 0x158   :  { %v5594_v21 = vpop.f32.mrb[44].mxu0 }
 0x159   :  { %6936 = vst [vmem:[#allocation74_spill] sm:$0xff] %v5594_v21  ;;  %v5598_v15 = vpop.f32.mrb[44].mxu1  ;;  %v5600_v39 = vpop.f32.mrb[45].mxu0 }
 0x15a   :  { %6937 = vst [vmem:[#allocation75_spill] sm:$0xff] %v5598_v15  ;;  %6938 = vst [vmem:[#allocation76_spill] sm:$0xff] %v5600_v39  ;;  %v5606_v31 = vpop.f32.mrb[45].mxu1 }
 0x15b   :  { %6939 = vst [vmem:[#allocation77_spill] sm:$0xff] %v5606_v31 }
 0x15c   :  { %v5610_v26 = vpop.f32.mrb[46].mxu0 }
 0x15d   :  { %6940 = vst [vmem:[#allocation78_spill] sm:$0xff] %v5610_v26  ;;  %v5614_v21 = vpop.f32.mrb[46].mxu1  ;;  %v5616_v43 = vpop.f32.mrb[47].mxu0 }
 0x15e   :  { %6941 = vst [vmem:[#allocation79_spill] sm:$0xff] %v5614_v21  ;;  %6942 = vst [vmem:[#allocation80_spill] sm:$0xff] %v5616_v43  ;;  %v5622_v39 = vpop.f32.mrb[47].mxu1 }
 0x15f   :  { %6943 = vst [vmem:[#allocation81_spill] sm:$0xff] %v5622_v39 }
 0x160   :  { %v5626_v31 = vpop.f32.mrb[48].mxu0 }
 0x161   :  { %6944 = vst [vmem:[#allocation82_spill] sm:$0xff] %v5626_v31  ;;  %v5630_v26 = vpop.f32.mrb[48].mxu1  ;;  %v5632_v49 = vpop.f32.mrb[49].mxu0 }
 0x162   :  { %6945 = vst [vmem:[#allocation83_spill] sm:$0xff] %v5630_v26  ;;  %6946 = vst [vmem:[#allocation84_spill] sm:$0xff] %v5632_v49  ;;  %v5638_v43 = vpop.f32.mrb[49].mxu1 }
 0x163   :  { %6947 = vst [vmem:[#allocation85_spill] sm:$0xff] %v5638_v43 }
 0x164   :  { %v5642_v39 = vpop.f32.mrb[50].mxu0 }
 0x165   :  { %6948 = vst [vmem:[#allocation86_spill] sm:$0xff] %v5642_v39  ;;  %v5646_v31 = vpop.f32.mrb[50].mxu1  ;;  %v5648_v56 = vpop.f32.mrb[51].mxu0 }
 0x166   :  { %6949 = vst [vmem:[#allocation87_spill] sm:$0xff] %v5646_v31  ;;  %6950 = vst [vmem:[#allocation88_spill] sm:$0xff] %v5648_v56  ;;  %v5654_v49 = vpop.f32.mrb[51].mxu1 }
 0x167   :  { %6951 = vst [vmem:[#allocation89_spill] sm:$0xff] %v5654_v49 }
 0x168   :  { %v5658_v43 = vpop.f32.mrb[52].mxu0 }
 0x169   :  { %6952 = vst [vmem:[#allocation90_spill] sm:$0xff] %v5658_v43  ;;  %v5662_v39 = vpop.f32.mrb[52].mxu1  ;;  %v5664_v60 = vpop.f32.mrb[53].mxu0 }
 0x16a   :  { %6953 = vst [vmem:[#allocation91_spill] sm:$0xff] %v5662_v39  ;;  %6954 = vst [vmem:[#allocation92_spill] sm:$0xff] %v5664_v60  ;;  %v5670_v56 = vpop.f32.mrb[53].mxu1 }
 0x16b   :  { %6955 = vst [vmem:[#allocation93_spill] sm:$0xff] %v5670_v56 }
 0x16c   :  { %v5674_v49 = vpop.f32.mrb[54].mxu0 }
 0x16d   :  { %6956 = vst [vmem:[#allocation94_spill] sm:$0xff] %v5674_v49  ;;  %v5678_v43 = vpop.f32.mrb[54].mxu1  ;;  %v5680_v2 = vpop.f32.mrb[55].mxu0 }
 0x16e   :  { %6958 = vst [vmem:[#allocation95_spill] sm:$0xff] %v5678_v43  ;;  %6959 = vst [vmem:[#allocation96_spill] sm:$0xff] %v5680_v2  ;;  %v5686_v60 = vpop.f32.mrb[55].mxu1 }
 0x16f   :  { %6962 = vst [vmem:[#allocation97_spill] sm:$0xff] %v5686_v60 }
 0x170   :  { %v5690_v56 = vpop.f32.mrb[56].mxu0 }
 0x171   :  { %v5692_v7 = vpop.f32.mrb[56].mxu1  ;;  %v5694_v48 = vpop.f32.mrb[57].mxu0 }
 0x172   :  { %v5696_v49 = vpop.f32.mrb[57].mxu1 }
 0x174   :  { %v5698_v0 = vpop.f32.mrb[58].mxu0 }
 0x175   :  { %v5700_v6 = vpop.f32.mrb[58].mxu1  ;;  %v5702_v5 = vpop.f32.mrb[59].mxu0 }
 0x176   :  { %v5704_v10 = vpop.f32.mrb[59].mxu1 }
 0x178   :  { %v5706_v2 = vpop.f32.mrb[60].mxu0 }
 0x179   :  { %v5708_v39 = vpop.f32.mrb[60].mxu1  ;;  %v5710_v19 = vpop.f32.mrb[61].mxu0 }
 0x17a   :  { %v5712_v60 = vpop.f32.mrb[61].mxu1 }
 0x17c   :  { %v5714_v51 = vpop.f32.mrb[62].mxu0 }
 0x17d   :  { %v5716_v43 = vpop.f32.mrb[62].mxu1  ;;  %v5718_v63 = vpop.f32.mrb[63].mxu0 }
 0x17e   :  { %v5720_v3 = vpop.f32.mrb[63].mxu1 }
 0x180   :  { %v5722_v31 = vpop.f32.mrb[64].mxu0 }
 0x181   :  { %v5724_v61 = vpop.f32.mrb[64].mxu1  ;;  %v5726_v59 = vpop.f32.mrb[65].mxu0 }
 0x182   :  { %v5728_v58 = vpop.f32.mrb[65].mxu1 }
 0x184   :  { %v5730_v26 = vpop.f32.mrb[66].mxu0 }
 0x185   :  { %6963 = vst [vmem:[#allocation98_spill] sm:$0xff] %v5730_v26  ;;  %v5732_v57 = vpop.f32.mrb[66].mxu1  ;;  %v5734_v55 = vpop.f32.mrb[67].mxu0  ;;  %v7009_v26 = vld [vmem:[#allocation50_spill] sm:$0xff] }
 0x186   :  { %6964 = vst [vmem:[#allocation99_spill] sm:$0xff] %v5732_v57  ;;  %6965 = vst [vmem:[#allocation100_spill] sm:$0xff] %v5734_v55  ;;  %v5736_v53 = vpop.f32.mrb[67].mxu1  ;;  %v5887_v55 = vld [vmem:[%s6771_s3 + $0x90] sm:$0xff]  ;;  %v7010_v25 = vmax.f32 %v5346_v4, %v7009_v26 }
 0x187   :  { %6966 = vst [vmem:[#allocation101_spill] sm:$0xff] %v5736_v53  ;;  %v5882_v53 = vld [vmem:[%s6771_s3 + $0x80] sm:$0xff] }
 0x188   :  { %v5738_v21 = vpop.f32.mrb[68].mxu0 }
 0x189   :  { %6967 = vst [vmem:[#allocation102_spill] sm:$0xff] %v5738_v21  ;;  %v5740_v50 = vpop.f32.mrb[68].mxu1  ;;  %v5742_v46 = vpop.f32.mrb[69].mxu0 }
 0x18a   :  { %6968 = vst [vmem:[#allocation103_spill] sm:$0xff] %v5740_v50  ;;  %6969 = vst [vmem:[#allocation104_spill] sm:$0xff] %v5742_v46  ;;  %v5744_v45 = vpop.f32.mrb[69].mxu1 }
 0x18b   :  { %6970 = vst [vmem:[#allocation105_spill] sm:$0xff] %v5744_v45 }
 0x18c   :  { %v5746_v15 = vpop.f32.mrb[70].mxu0 }
 0x18d   :  { %6971 = vst [vmem:[#allocation106_spill] sm:$0xff] %v5746_v15  ;;  %v5748_v44 = vpop.f32.mrb[70].mxu1  ;;  %v5750_v42 = vpop.f32.mrb[71].mxu0 }
 0x18e   :  { %6972 = vst [vmem:[#allocation107_spill] sm:$0xff] %v5748_v44  ;;  %6973 = vst [vmem:[#allocation108_spill] sm:$0xff] %v5750_v42  ;;  %v5752_v41 = vpop.f32.mrb[71].mxu1 }
 0x18f   :  { %6974 = vst [vmem:[#allocation109_spill] sm:$0xff] %v5752_v41 }
 0x190   :  { %v5754_v9 = vpop.f32.mrb[72].mxu0 }
 0x191   :  { %6975 = vst [vmem:[#allocation110_spill] sm:$0xff] %v5754_v9  ;;  %v5756_v40 = vpop.f32.mrb[72].mxu1  ;;  %v5758_v38 = vpop.f32.mrb[73].mxu0 }
 0x192   :  { %6976 = vst [vmem:[#allocation111_spill] sm:$0xff] %v5756_v40  ;;  %6977 = vst [vmem:[#allocation112_spill] sm:$0xff] %v5758_v38  ;;  %v5760_v36 = vpop.f32.mrb[73].mxu1 }
 0x193   :  { %6978 = vst [vmem:[#allocation113_spill] sm:$0xff] %v5760_v36 }
 0x194   :  { %v5762_v52 = vpop.f32.mrb[74].mxu0 }
 0x195   :  { %6979 = vst [vmem:[#allocation114_spill] sm:$0xff] %v5762_v52  ;;  %v5764_v33 = vpop.f32.mrb[74].mxu1  ;;  %v5766_v45 = vpop.f32.mrb[75].mxu0 }
 0x196   :  { %6980 = vst [vmem:[#allocation115_spill] sm:$0xff] %v5764_v33  ;;  %6981 = vst [vmem:[#allocation116_spill] sm:$0xff] %v5766_v45  ;;  %v5768_v15 = vpop.f32.mrb[75].mxu1  ;;  %v1424_v45 = vlaneseq }
 0x197   :  { %6982 = vst [vmem:[#allocation117_spill] sm:$0xff] %v5768_v15 }
 0x198   :  { %v5770_v44 = vpop.f32.mrb[76].mxu0 }
 0x199   :  { %6983 = vst [vmem:[#allocation118_spill] sm:$0xff] %v5770_v44  ;;  %v5772_v42 = vpop.f32.mrb[76].mxu1  ;;  %v5774_v41 = vpop.f32.mrb[77].mxu0 }
 0x19a   :  { %6984 = vst [vmem:[#allocation119_spill] sm:$0xff] %v5772_v42  ;;  %6985 = vst [vmem:[#allocation120_spill] sm:$0xff] %v5774_v41  ;;  %v5776_v9 = vpop.f32.mrb[77].mxu1 }
 0x19b   :  { %6986 = vst [vmem:[#allocation121_spill] sm:$0xff] %v5776_v9  ;;  %v1425_v9 = vshrl.u32 %v1424_v45, 7 }
 0x19c   :  { %v5778_v40 = vpop.f32.mrb[78].mxu0 }
 0x19d   :  { %6987 = vst [vmem:[#allocation122_spill] sm:$0xff] %v5778_v40  ;;  %v5780_v38 = vpop.f32.mrb[78].mxu1  ;;  %v5782_v36 = vpop.f32.mrb[79].mxu0  ;;  %v1434_v50 = vsub.s32 2, %v1425_v9  ;;  %v1430_v21 = vsub.s32 1, %v1425_v9 }
 0x19e   :  { %6988 = vst [vmem:[#allocation123_spill] sm:$0xff] %v5780_v38  ;;  %6989 = vst [vmem:[#allocation124_spill] sm:$0xff] %v5782_v36  ;;  %v5784_v52 = vpop.f32.mrb[79].mxu1 }
 0x19f   :  { %6990 = vst [vmem:[#allocation125_spill] sm:$0xff] %v5784_v52  ;;  %v1426_v52 = vsub.s32 0, %v1425_v9 }
 0x1a0   :  { %v5786_v33 = vpop.f32.mrb[80].mxu0 }
 0x1a1   :  { %6991 = vst [vmem:[#allocation126_spill] sm:$0xff] %v5786_v33  ;;  %v5788_v15 = vpop.f32.mrb[80].mxu1  ;;  %v5790_v44 = vpop.f32.mrb[81].mxu0 }
 0x1a2   :  { %6992 = vst [vmem:[#allocation127_spill] sm:$0xff] %v5788_v15  ;;  %6993 = vst [vmem:[#allocation128_spill] sm:$0xff] %v5790_v44  ;;  %v5792_v42 = vpop.f32.mrb[81].mxu1  ;;  %v1422_v44 = vld [vmem:[%s6770_s2] sm:$0xf] }
 0x1a3   :  { %6994 = vst [vmem:[#allocation129_spill] sm:$0xff] %v5792_v42 }
 0x1a4   :  { %v5794_v41 = vpop.f32.mrb[82].mxu0 }
 0x1a5   :  { %6995 = vst [vmem:[#allocation130_spill] sm:$0xff] %v5794_v41  ;;  %v5796_v46 = vpop.f32.mrb[82].mxu1  ;;  %v5798_v40 = vpop.f32.mrb[83].mxu0  ;;  %v1438_v41 = vsub.s32 3, %v1425_v9  ;;  %v6999_v9 = vmax.f32 %v5328_v17, %v5466_v1  ;;  %v5844_v17 = vrot.slane %v1422_v44, %v1426_v52  ;;  %v7001_v1 = vld [vmem:[#allocation47_spill] sm:$0xff] }
 0x1a6   :  { %6996 = vst [vmem:[#allocation131_spill] sm:$0xff] %v5796_v46  ;;  %6997 = vst [vmem:[#allocation132_spill] sm:$0xff] %v5798_v40  ;;  %v5800_v38 = vpop.f32.mrb[83].mxu1  ;;  %v5864_v52 = vld [vmem:[%s6771_s3 + $0xb8] sm:$0x3] }
 0x1a7   :  { %6998 = vst [vmem:[#allocation133_spill] sm:$0xff] %v5800_v38  ;;  %v5811_v38 = vld [vmem:[%s6771_s3] sm:$0xff] }
 0x1a8   :  { %v938_v36 = vpop.f32.mrb[84].mxu0 }
 0x1a9   :  { %v1258_v33 = vmax.f32 %v5690_v56, %v938_v36  ;;  %v1171_v15 = vpop.f32.mrb[84].mxu1  ;;  %v940_v42 = vpop.f32.mrb[85].mxu0  ;;  %v5816_v36 = vld [vmem:[%s6771_s3 + $0x20] sm:$0x3]  ;;  %v5821_v56 = vld [vmem:[%s6771_s3 + $0x10] sm:$0xff] }
 0x1aa   :  { %v1260_v45 = vmax.f32 %v5692_v7, %v1171_v15  ;;  %v1259_v46 = vmax.f32 %v5694_v48, %v940_v42  ;;  %v1173_v40 = vpop.f32.mrb[85].mxu1  ;;  %v5832_v7 = vld [vmem:[%s6771_s3 + $0x30] sm:$0x3]  ;;  %v5837_v48 = vld [vmem:[%s6771_s3 + $0x88] sm:$0xff] }
 0x1ab   :  { %v5826_v15 = vmax.f32 %v6999_v9, %v1258_v33  ;;  %v1261_v42 = vmax.f32 %v5696_v49, %v1173_v40  ;;  %v7000_v33 = vmax.f32 %v5330_v30, %v5470_v32  ;;  %v5851_v49 = vrot.slane %v1422_v44, %v1434_v50  ;;  %v5869_v30 = vld [vmem:[%s6771_s3 + $0xa0] sm:$0x3] }
 0x1ac   :  { %v7002_v9 = vmax.f32 %v5332_v35, %v7001_v1  ;;  %v944_v14 = vpop.f32.mrb[86].mxu0  ;;  %v7003_v50 = vld [vmem:[#allocation48_spill] sm:$0xff]  ;;  %v5875_v1 = vrot.slane %v1422_v44, %v1430_v21 }
 0x1ad   :  { %v5849_v40 = vmax.f32 %v7000_v33, %v1260_v45  ;;  %v7004_v35 = vmax.f32 %v5335_v47, %v7003_v50  ;;  %v1266_v32 = vmax.f32 %v5698_v0, %v944_v14  ;;  %v1177_v45 = vpop.f32.mrb[86].mxu1  ;;  %v946_v33 = vpop.f32.mrb[87].mxu0  ;;  %v5892_v47 = vld [vmem:[%s6771_s3 + $0xb0] sm:$0x3]  ;;  %v4064_v0 = vpack.c.bf16 %v5816_v36, %v5811_v38  ;;  %v5908_v50 = vld [vmem:[%s6771_s3 + $0xe8] sm:$0x3] }
 0x1ae   :  { %v1367_v28 = vmax.f32 %v7002_v9, %v1259_v46  ;;  %v5877_v9 = vrot.slane %v1422_v44, %v1438_v41  ;;  %v1268_v21 = vmax.f32 %v5700_v6, %v1177_v45  ;;  %v1267_v41 = vmax.f32 %v5702_v5, %v946_v33  ;;  %v1179_v44 = vpop.f32.mrb[87].mxu1  ;;  %v7005_v6 = vld [vmem:[#allocation5_spill] sm:$0xff] }
 0x1af   :  { %v1369_v46 = vmax.f32 %v7004_v35, %v1261_v42  ;;  %v5903_v42 = vld [vmem:[%s6771_s3 + $0xc8] sm:$0xff]  ;;  %v1269_v33 = vmax.f32 %v5704_v10, %v1179_v44  ;;  %v4070_v38 = vpack.c.bf16 %v5842_v29, %v5837_v48  ;;  %v4074_v36 = vpack.c.bf16 %v5864_v52, %v5859_v27  ;;  %v7013_v10 = vld [vmem:[#allocation6_spill] sm:$0xff]  ;;  %v7048_v48 = vld [vmem:[#allocation12_spill] sm:$0xff] }
 0x1b0   :  { %v7006_v35 = vld [vmem:[#allocation49_spill] sm:$0xff]  ;;  %v7008_v14 = vmax.f32 %v5344_v54, %v5486_v62  ;;  %v1371_v24 = vmax.f32 %v7010_v25, %v1267_v41  ;;  %v950_v22 = vpop.f32.mrb[88].mxu0  ;;  %v4078_v4 = vpack.c.bf16 %v5908_v50, %v5903_v42 }
 0x1b1   :  { %v7007_v5 = vmax.f32 %v7005_v6, %v7006_v35  ;;  %v7011_v6 = vld [vmem:[#allocation51_spill] sm:$0xff]  ;;  %v1274_v54 = vmax.f32 %v5706_v2, %v950_v22  ;;  %v1183_v62 = vpop.f32.mrb[88].mxu1  ;;  %v7035_v52 = vld [vmem:[#allocation9_spill] sm:$0xff] }
 0x1b2   :  { %v1372_v57 = vmax.f32 %v7008_v14, %v1268_v21  ;;  %v7012_v35 = vmax.f32 %v5349_v8, %v7011_v6  ;;  %v952_v21 = vpop.f32.mrb[89].mxu0  ;;  %v1276_v26 = vmax.f32 %v5708_v39, %v1183_v62  ;;  %v1185_v14 = vpop.f32.mrb[89].mxu1  ;;  %v1445_v6 = vadd.f32 %v5875_v1, %v1367_v28  ;;  %v5950_v39 = vld [vmem:[%s6771_s3 + $0xd8] sm:$0xff]  ;;  %v5974_v62 = vld [vmem:[%s6771_s3 + $0xe0] sm:$0x3] }
 0x1b3   :  { %v1370_v45 = vmax.f32 %v7007_v5, %v1266_v32  ;;  %v1275_v41 = vmax.f32 %v5710_v19, %v952_v21  ;;  %v7014_v32 = vld [vmem:[#allocation52_spill] sm:$0xff]  ;;  %v1277_v2 = vmax.f32 %v5712_v60, %v1185_v14  ;;  %v7017_v60 = vld [vmem:[#allocation53_spill] sm:$0xff] }
 0x1b4   :  { %v1373_v5 = vmax.f32 %v7012_v35, %v1269_v33  ;;  %v1450_v25 = vadd.f32 %v5851_v49, %v1372_v57  ;;  %v7015_v8 = vmax.f32 %v7013_v10, %v7014_v32  ;;  %v7016_v57 = vmax.f32 %v5358_v11, %v5502_v37  ;;  %v956_v28 = vpop.f32.mrb[90].mxu0  ;;  %v5979_v11 = vld [vmem:[%s6771_s3 + $0xd0] sm:$0xff] }
 0x1b5   :  { %v1448_v44 = vadd.f32 %v5844_v17, %v1370_v45  ;;  %v1449_v45 = vadd.f32 %v5875_v1, %v1371_v24  ;;  %v5955_v24 = vld [vmem:[%s6771_s3 + $0xf8] sm:$0x3]  ;;  %v7018_v32 = vmax.f32 %v5360_v12, %v7017_v60  ;;  %v7019_v37 = vld [vmem:[#allocation54_spill] sm:$0xff]  ;;  %v958_v14 = vpop.f32.mrb[91].mxu0 }
 0x1b6   :  { %v5942_v33 = vmax.f32 %v7015_v8, %v1274_v54  ;;  %v1451_v22 = vadd.f32 %v5877_v9, %v1373_v5  ;;  %v5960_v19 = vmax.f32 %v7016_v57, %v1276_v26  ;;  %v1447_v5 = vadd.f32 %v5877_v9, %v1369_v46  ;;  %v5969_v54 = vld [vmem:[%s6771_s3 + $0xc0] sm:$0xff]  ;;  %v5988_v8 = vld [vmem:[%s6771_s3 + $0xf0] sm:$0x3] }
 0x1b7   :  { %v1375_v10 = vmax.f32 %v7018_v32, %v1275_v41  ;;  %v1505_v35 = vmax.f32 %v1449_v45, 0.0  ;;  %v1504_v12 = vmax.f32 %v1448_v44, 0.0  ;;  %v7020_v21 = vmax.f32 %v5363_v13, %v7019_v37  ;;  %v1189_v41 = vpop.f32.mrb[90].mxu1 }
 0x1b8   :  { %v1282_v26 = vmax.f32 %v5714_v51, %v956_v28  ;;  %v1507_v45 = vmax.f32 %v1451_v22, 0.0  ;;  %v1506_v57 = vmax.f32 %v1450_v25, 0.0  ;;  %v1284_v60 = vmax.f32 %v5716_v43, %v1189_v41  ;;  %v1191_v44 = vpop.f32.mrb[91].mxu1  ;;  %v7022_v51 = vld [vmem:[#allocation55_spill] sm:$0xff] }
 0x1b9   :  { %v1377_v46 = vmax.f32 %v7020_v21, %v1277_v2  ;;  %v1283_v32 = vmax.f32 %v5718_v63, %v958_v14  ;;  %1637 = vmatprep.mubr.f32.mxu0 %v1505_v35  ;;  %v4082_v13 = vpack.c.bf16 %v5955_v24, %v5950_v39  ;;  %v7021_v2 = vld [vmem:[#allocation7_spill] sm:$0xff]  ;;  %v1285_v22 = vmax.f32 %v5720_v3, %v1191_v44  ;;  %v7025_v35 = vld [vmem:[#allocation56_spill] sm:$0xff] }
 0x1ba   :  { %v7023_v28 = vmax.f32 %v7021_v2, %v7022_v51  ;;  %1707 = vmatprep.mubr.f32.mxu1 %v1507_v45  ;;  %1638 = vmatmul.mubr.f32.vlgmr.msra.gmra.mrb[112].mxu0 %v1504_v12  ;;  %v1501_v21 = vmax.f32 %v1445_v6, 0.0  ;;  %v7024_v63 = vmax.f32 %v5368_v16, %v5518_v34  ;;  %v7026_v41 = vmax.f32 %v5370_v18, %v7025_v35  ;;  %v6017_v12 = vld [vmem:[%s6771_s3 + $0x108] sm:$0xff]  ;;  %v6038_v44 = vld [vmem:[%s6771_s3 + $0x118] sm:$0xff]  ;;  %v6055_v2 = vld [vmem:[%s6771_s3 + $0x100] sm:$0xff] }
 0x1bb   :  { %1708 = vmatmul.mubr.f32.vlgmr.msra.gmra.mrb[112].mxu1 %v1506_v57  ;;  %4065 = vmatpush1.bf16.xpose.msra.mxu0 %v4064_v0  ;;  %v1503_v3 = vmax.f32 %v1447_v5, 0.0  ;;  %v6022_v16 = vld [vmem:[%s6771_s3 + $0x128] sm:$0x3]  ;;  %v1444_v18 = vadd.f32 %v5844_v17, %v5826_v15  ;;  %v7029_v45 = vpack.c.bf16 %v5832_v7, %v5821_v56  ;;  %v1446_v15 = vadd.f32 %v5851_v49, %v5849_v40  ;;  %v6060_v51 = vld [vmem:[%s6771_s3 + $0x120] sm:$0x3] }
 0x1bc   :  { %v5997_v37 = vmax.f32 %v7023_v28, %v1282_v26  ;;  %v6005_v25 = vmax.f32 %v7024_v63, %v1284_v60  ;;  %v6010_v14 = vmax.f32 %v7026_v41, %v1283_v32  ;;  %v962_v26 = vpop.f32.mrb[92].mxu0  ;;  %v7027_v34 = vld [vmem:[#allocation57_spill] sm:$0xff]  ;;  %v1195_v60 = vpop.f32.mrb[92].mxu1  ;;  %1777 = vmatprep.mubr.f32.mxu0 %v1501_v21  ;;  %4071 = vmatprep.subr.bf16.mxu0 %v4070_v38  ;;  %v7030_v40 = vld [vmem:[#allocation8_spill] sm:$0xff]  ;;  %v6077_v38 = vld [vmem:[%s6771_s3 + $0x110] sm:$0xff] }
 0x1bd   :  { %v7028_v0 = vmax.f32 %v5372_v20, %v7027_v34  ;;  %4069 = vmatpush1.bf16.xpose.msra.mxu1 %v7029_v45  ;;  %v1290_v57 = vmax.f32 %v5722_v31, %v962_v26  ;;  %v964_v32 = vpop.f32.mrb[93].mxu0  ;;  %v6043_v20 = vld [vmem:[%s6771_s3 + $0x138] sm:$0x3]  ;;  %v1292_v56 = vmax.f32 %v5724_v61, %v1195_v60  ;;  %1847 = vmatprep.mubr.f32.mxu1 %v1503_v3  ;;  %v1197_v7 = vpop.f32.mrb[93].mxu1  ;;  %v7031_v61 = vld [vmem:[#allocation58_spill] sm:$0xff]  ;;  %v6100_v34 = vld [vmem:[%s6771_s3 + $0x148] sm:$0xff] }
 0x1be   :  { %v1291_v31 = vmax.f32 %v5726_v59, %v964_v32  ;;  %v7032_v28 = vmax.f32 %v7030_v40, %v7031_v61  ;;  %v1293_v59 = vmax.f32 %v5728_v58, %v1197_v7  ;;  %4075 = vmatprep.subr.bf16.mxu1 %v4074_v36  ;;  %v1453_v29 = vadd.f32 %v5875_v1, %v1375_v10  ;;  %v6082_v21 = vld [vmem:[%s6771_s3 + $0x130] sm:$0x3]  ;;  %v7033_v58 = vld [vmem:[#allocation59_spill] sm:$0xff]  ;;  %v7036_v36 = vld [vmem:[#allocation60_spill] sm:$0xff]  ;;  %v968_v41 = vpop.f32.mrb[94].mxu0 }
 0x1bf   :  { %v6029_v5 = vmax.f32 %v7028_v0, %v1285_v22  ;;  %v7034_v63 = vmax.f32 %v5376_v23, %v7033_v58  ;;  %v7037_v10 = vmax.f32 %v7035_v52, %v7036_v36  ;;  %v1455_v26 = vadd.f32 %v5877_v9, %v1377_v46  ;;  %v6105_v23 = vld [vmem:[%s6771_s3 + $0x168] sm:$0x3]  ;;  %v7038_v45 = vld [vmem:[#allocation10_spill] sm:$0xff]  ;;  %v970_v7 = vpop.f32.mrb[95].mxu0  ;;  %v6118_v61 = vld [vmem:[%s6771_s3 + $0x158] sm:$0xff] }
 0x1c0   :  { %v6065_v22 = vmax.f32 %v7032_v28, %v1290_v57  ;;  %v1500_v0 = vmax.f32 %v1444_v18, 0.0  ;;  %v7039_v57 = vld [vmem:[#allocation61_spill] sm:$0xff]  ;;  %v7041_v46 = vld [vmem:[#allocation98_spill] sm:$0xff]  ;;  %v6123_v18 = vld [vmem:[%s6771_s3 + $0x178] sm:$0x3]  ;;  %v1502_v28 = vmax.f32 %v1446_v15, 0.0  ;;  %v1457_v42 = vadd.f32 %v5875_v1, %v6010_v14 }
 0x1c1   :  { %v6087_v27 = vmax.f32 %v7034_v63, %v1292_v56  ;;  %v6092_v35 = vmax.f32 %v7037_v10, %v1291_v31  ;;  %v7040_v60 = vmax.f32 %v7038_v45, %v7039_v57  ;;  %v1298_v56 = vmax.f32 %v7041_v46, %v968_v41  ;;  %v1201_v31 = vpop.f32.mrb[94].mxu1  ;;  %v7043_v63 = vld [vmem:[#allocation100_spill] sm:$0xff]  ;;  %v7044_v41 = vld [vmem:[#allocation11_spill] sm:$0xff]  ;;  %v7045_v45 = vld [vmem:[#allocation62_spill] sm:$0xff] }
 0x1c2   :  { %v1299_v52 = vmax.f32 %v7043_v63, %v970_v7  ;;  %v1203_v36 = vpop.f32.mrb[95].mxu1  ;;  %v7046_v57 = vmax.f32 %v7044_v41, %v7045_v45  ;;  %v7047_v46 = vld [vmem:[#allocation101_spill] sm:$0xff]  ;;  %1778 = vmatmul.mubr.f32.vlgmr.msra.gmra.mrb[114].mxu0 %v1500_v0  ;;  %v1509_v3 = vmax.f32 %v1453_v29, 0.0  ;;  %v7052_v6 = vld [vmem:[#allocation64_spill] sm:$0xff]  ;;  %v1511_v0 = vmax.f32 %v1455_v26, 0.0  ;;  %v974_v29 = vpop.f32.mrb[96].mxu0 }
 0x1c3   :  { %v6110_v32 = vmax.f32 %v7040_v60, %v1293_v59  ;;  %v7042_v59 = vld [vmem:[#allocation99_spill] sm:$0xff]  ;;  %v1301_v40 = vmax.f32 %v7047_v46, %v1203_v36  ;;  %v7051_v63 = vld [vmem:[#allocation13_spill] sm:$0xff]  ;;  %v1207_v45 = vpop.f32.mrb[96].mxu1  ;;  %v6176_v46 = vld [vmem:[%s6771_s3 + $0x150] sm:$0xff] }
 0x1c4   :  { %v1300_v58 = vmax.f32 %v7042_v59, %v1201_v31  ;;  %v6132_v60 = vmax.f32 %v7046_v57, %v1298_v56  ;;  %v7049_v31 = vld [vmem:[#allocation63_spill] sm:$0xff]  ;;  %v7053_v10 = vmax.f32 %v7051_v63, %v7052_v6  ;;  %1848 = vmatmul.mubr.f32.vlgmr.msra.gmra.mrb[114].mxu1 %v1502_v28  ;;  %v7054_v56 = vpack.c.bf16 %v5869_v30, %v5882_v53  ;;  %v6160_v6 = vld [vmem:[%s6771_s3 + $0x160] sm:$0x3]  ;;  %v7055_v53 = vld [vmem:[#allocation14_spill] sm:$0xff]  ;;  %v976_v57 = vpop.f32.mrb[97].mxu0 }
 0x1c5   :  { %v7050_v59 = vmax.f32 %v7048_v48, %v7049_v31  ;;  %v6155_v48 = vld [vmem:[%s6771_s3 + $0x140] sm:$0xff]  ;;  %v1452_v28 = vadd.f32 %v5844_v17, %v5942_v33  ;;  %v7056_v30 = vld [vmem:[#allocation65_spill] sm:$0xff]  ;;  %1926 = vmatprep.mubr.f32.mxu0 %v1509_v3  ;;  %v6181_v33 = vld [vmem:[%s6771_s3 + $0x170] sm:$0x3]  ;;  %v1454_v3 = vadd.f32 %v5851_v49, %v5960_v19  ;;  %1996 = vmatprep.mubr.f32.mxu1 %v1511_v0 }
 0x1c6   :  { %v6145_v43 = vmax.f32 %v7053_v10, %v1299_v52  ;;  %4073 = vmatpush1.bf16.xpose.msra.mxu0 %v7054_v56  ;;  %v7057_v26 = vmax.f32 %v7055_v53, %v7056_v30  ;;  %v7058_v52 = vpack.c.bf16 %v5892_v47, %v5887_v55  ;;  %v7059_v10 = vld [vmem:[#allocation102_spill] sm:$0xff]  ;;  %v7060_v55 = vld [vmem:[#allocation103_spill] sm:$0xff]  ;;  %v6193_v63 = vld [vmem:[%s6771_s3 + $0x188] sm:$0xff] }
 0x1c7   :  { %v6140_v7 = vmax.f32 %v7050_v59, %v1300_v58  ;;  %v1306_v41 = vmax.f32 %v7059_v10, %v974_v29  ;;  %v1308_v47 = vmax.f32 %v7060_v55, %v1207_v45  ;;  %v1209_v59 = vpop.f32.mrb[97].mxu1  ;;  %4079 = vmatprep.subr.bf16.mxu0 %v4078_v4  ;;  %v6198_v56 = vld [vmem:[%s6771_s3 + $0x1a8] sm:$0x3]  ;;  %v7062_v19 = vld [vmem:[#allocation15_spill] sm:$0xff]  ;;  %v7063_v0 = vld [vmem:[#allocation66_spill] sm:$0xff]  ;;  %v980_v55 = vpop.f32.mrb[98].mxu0 }
 0x1c8   :  { %v6167_v58 = vmax.f32 %v7057_v26, %v1301_v40  ;;  %4077 = vmatpush1.bf16.xpose.msra.mxu1 %v7058_v52  ;;  %v7061_v40 = vld [vmem:[#allocation104_spill] sm:$0xff]  ;;  %v7064_v29 = vmax.f32 %v7062_v19, %v7063_v0  ;;  %v7066_v30 = vld [vmem:[#allocation105_spill] sm:$0xff]  ;;  %v6216_v4 = vld [vmem:[%s6771_s3 + $0x198] sm:$0xff]  ;;  %v1508_v19 = vmax.f32 %v1452_v28, 0.0 }
 0x1c9   :  { %v1307_v31 = vmax.f32 %v7061_v40, %v976_v57  ;;  %v1309_v26 = vmax.f32 %v7066_v30, %v1209_v59  ;;  %4083 = vmatprep.subr.bf16.mxu1 %v4082_v13  ;;  %v6221_v52 = vld [vmem:[%s6771_s3 + $0x1b8] sm:$0x3]  ;;  %v7067_v10 = vld [vmem:[#allocation16_spill] sm:$0xff]  ;;  %v7071_v13 = vld [vmem:[#allocation17_spill] sm:$0xff]  ;;  %v1459_v40 = vadd.f32 %v5877_v9, %v6029_v5 }
 0x1ca   :  { %v6203_v53 = vmax.f32 %v7064_v29, %v1306_v41  ;;  %v7068_v41 = vld [vmem:[#allocation67_spill] sm:$0xff]  ;;  %v7072_v14 = vld [vmem:[#allocation68_spill] sm:$0xff]  ;;  %v7074_v0 = vld [vmem:[#allocation18_spill] sm:$0xff] }
 0x1cb   :  { %v7069_v39 = vmax.f32 %v7067_v10, %v7068_v41  ;;  %v7073_v45 = vmax.f32 %v7071_v13, %v7072_v14  ;;  %v7075_v29 = vld [vmem:[#allocation69_spill] sm:$0xff]  ;;  %v1213_v41 = vpop.f32.mrb[98].mxu1  ;;  %v1510_v13 = vmax.f32 %v1454_v3, 0.0  ;;  %v7079_v14 = vld [vmem:[#allocation107_spill] sm:$0xff]  ;;  %v7080_v5 = vld [vmem:[#allocation108_spill] sm:$0xff]  ;;  %v1456_v3 = vadd.f32 %v5844_v17, %v5997_v37 }
 0x1cc   :  { %7065 = vst [vmem:[#allocation47_spill] sm:$0xff] %v6203_v53  ;;  %v7076_v30 = vmax.f32 %v7074_v0, %v7075_v29  ;;  %v1215_v15 = vpop.f32.mrb[99].mxu1  ;;  %v7081_v0 = vld [vmem:[#allocation19_spill] sm:$0xff]  ;;  %v7082_v29 = vld [vmem:[#allocation70_spill] sm:$0xff]  ;;  %v1458_v37 = vadd.f32 %v5851_v49, %v6005_v25  ;;  %v1515_v59 = vmax.f32 %v1459_v40, 0.0  ;;  %v7094_v53 = vld [vmem:[#allocation73_spill] sm:$0xff] }
 0x1cd   :  { %v6226_v24 = vmax.f32 %v7069_v39, %v1308_v47  ;;  %v6231_v57 = vmax.f32 %v7073_v45, %v1307_v31  ;;  %v7078_v47 = vld [vmem:[#allocation106_spill] sm:$0xff]  ;;  %v982_v39 = vpop.f32.mrb[99].mxu0  ;;  %v1316_v45 = vmax.f32 %v7079_v14, %v1213_v41  ;;  %v7085_v41 = vld [vmem:[#allocation109_spill] sm:$0xff]  ;;  %1927 = vmatmul.mubr.f32.vlgmr.msra.gmra.mrb[116].mxu0 %v1508_v19  ;;  %v1513_v14 = vmax.f32 %v1457_v42, 0.0  ;;  %v7090_v42 = vld [vmem:[#allocation72_spill] sm:$0xff] }
 0x1ce   :  { %v6240_v50 = vmax.f32 %v7076_v30, %v1309_v26  ;;  %v1314_v10 = vmax.f32 %v7078_v47, %v980_v55  ;;  %v1315_v36 = vmax.f32 %v7080_v5, %v982_v39  ;;  %v6252_v26 = vld [vmem:[%s6771_s3 + $0x180] sm:$0xff]  ;;  %v7083_v30 = vmax.f32 %v7081_v0, %v7082_v29  ;;  %v6270_v5 = vld [vmem:[%s6771_s3 + $0x190] sm:$0xff] }
 0x1cf   :  { %7070 = vst [vmem:[#allocation48_spill] sm:$0xff] %v6226_v24  ;;  %v6257_v55 = vld [vmem:[%s6771_s3 + $0x1a0] sm:$0x3]  ;;  %v1317_v39 = vmax.f32 %v7085_v41, %v1215_v15  ;;  %v6275_v28 = vld [vmem:[%s6771_s3 + $0x1b0] sm:$0x3]  ;;  %v7089_v15 = vld [vmem:[#allocation21_spill] sm:$0xff]  ;;  %1997 = vmatmul.mubr.f32.vlgmr.msra.gmra.mrb[116].mxu1 %v1510_v13  ;;  %v7092_v31 = vpack.c.bf16 %v5974_v62, %v5969_v54  ;;  %2076 = vmatprep.mubr.f32.mxu0 %v1513_v14 }
 0x1d0   :  { %7077 = vst [vmem:[#allocation5_spill] sm:$0xff] %v6240_v50  ;;  %v6264_v47 = vmax.f32 %v7083_v30, %v1314_v10  ;;  %v7086_v0 = vld [vmem:[#allocation20_spill] sm:$0xff]  ;;  %v7087_v10 = vld [vmem:[#allocation71_spill] sm:$0xff]  ;;  %v7091_v19 = vmax.f32 %v7089_v15, %v7090_v42  ;;  %v7093_v24 = vld [vmem:[#allocation22_spill] sm:$0xff]  ;;  %2146 = vmatprep.mubr.f32.mxu1 %v1515_v59  ;;  %v7105_v59 = vpack.c.bf16 %v6043_v20, %v6038_v44 }
 0x1d1   :  { %v7088_v29 = vmax.f32 %v7086_v0, %v7087_v10  ;;  %4081 = vmatpush1.bf16.xpose.msra.mxu0 %v7092_v31  ;;  %v7095_v25 = vmax.f32 %v7093_v24, %v7094_v53  ;;  %v7097_v0 = vld [vmem:[#allocation110_spill] sm:$0xff]  ;;  %v1219_v10 = vpop.f32.mrb[100].mxu1  ;;  %v7098_v62 = vld [vmem:[#allocation111_spill] sm:$0xff]  ;;  %v7099_v31 = vld [vmem:[#allocation112_spill] sm:$0xff]  ;;  %v7100_v24 = vpack.c.bf16 %v6022_v16, %v6017_v12 }
 0x1d2   :  { %7084 = vst [vmem:[#allocation49_spill] sm:$0xff] %v6264_v47  ;;  %v6287_v41 = vmax.f32 %v7091_v19, %v1315_v36  ;;  %v986_v47 = vpop.f32.mrb[100].mxu0  ;;  %v1324_v40 = vmax.f32 %v7098_v62, %v1219_v10  ;;  %v1221_v53 = vpop.f32.mrb[101].mxu1  ;;  %v7104_v42 = vld [vmem:[#allocation113_spill] sm:$0xff]  ;;  %v7106_v12 = vld [vmem:[#allocation24_spill] sm:$0xff]  ;;  %v7107_v16 = vld [vmem:[#allocation75_spill] sm:$0xff] }
 0x1d3   :  { %v6282_v30 = vmax.f32 %v7088_v29, %v1316_v45  ;;  %v6295_v50 = vmax.f32 %v7095_v25, %v1317_v39  ;;  %v7096_v45 = vpack.c.bf16 %v5988_v8, %v5979_v11  ;;  %v1322_v36 = vmax.f32 %v7097_v0, %v986_v47  ;;  %v988_v13 = vpop.f32.mrb[101].mxu0  ;;  %4087 = vmatprep.subr.bf16.mxu0 %v7100_v24  ;;  %v7101_v47 = vld [vmem:[#allocation23_spill] sm:$0xff]  ;;  %v7102_v39 = vld [vmem:[#allocation74_spill] sm:$0xff]  ;;  %v6332_v44 = vld [vmem:[%s6771_s3 + $0x1c8] sm:$0xff] }
 0x1d4   :  { %v1323_v29 = vmax.f32 %v7099_v31, %v988_v13  ;;  %v1512_v8 = vmax.f32 %v1456_v3, 0.0  ;;  %v7103_v14 = vmax.f32 %v7101_v47, %v7102_v39  ;;  %v1325_v19 = vmax.f32 %v7104_v42, %v1221_v53  ;;  %v7109_v13 = vld [vmem:[#allocation25_spill] sm:$0xff]  ;;  %v7110_v3 = vld [vmem:[#allocation76_spill] sm:$0xff]  ;;  %v7117_v47 = vld [vmem:[#allocation114_spill] sm:$0xff] }
 0x1d5   :  { %4085 = vmatpush1.bf16.xpose.msra.mxu1 %v7096_v45  ;;  %v1461_v25 = vadd.f32 %v5875_v1, %v6092_v35  ;;  %v1514_v45 = vmax.f32 %v1458_v37, 0.0  ;;  %v7108_v0 = vmax.f32 %v7106_v12, %v7107_v16  ;;  %v7111_v62 = vmax.f32 %v7109_v13, %v7110_v3  ;;  %v6337_v20 = vld [vmem:[%s6771_s3 + $0x1e8] sm:$0x3]  ;;  %v7119_v12 = vld [vmem:[#allocation115_spill] sm:$0xff] }
 0x1d6   :  { %v1398_v15 = vmax.f32 %v7103_v14, %v1322_v36  ;;  %4091 = vmatprep.subr.bf16.mxu1 %v7105_v59  ;;  %v992_v36 = vpop.f32.mrb[102].mxu0  ;;  %v1463_v53 = vadd.f32 %v5877_v9, %v6110_v32  ;;  %v6341_v35 = vadd.f32 %v5844_v17, %v6065_v22  ;;  %v1225_v14 = vpop.f32.mrb[102].mxu1  ;;  %v6355_v59 = vld [vmem:[%s6771_s3 + $0x1d8] sm:$0xff]  ;;  %v4110_v54 = vpack.c.bf16 %v6337_v20, %v6332_v44  ;;  %v3850_v44 = vld [vmem:[%s6771_s3 + $0x228] sm:$0x3] }
 0x1d7   :  { %v1400_v10 = vmax.f32 %v7108_v0, %v1324_v40  ;;  %v6325_v31 = vmax.f32 %v7111_v62, %v1323_v29  ;;  %v7113_v40 = vld [vmem:[#allocation26_spill] sm:$0xff]  ;;  %v7114_v29 = vld [vmem:[#allocation77_spill] sm:$0xff]  ;;  %v1330_v39 = vmax.f32 %v7117_v47, %v992_v36  ;;  %v994_v42 = vpop.f32.mrb[103].mxu0  ;;  %v6360_v22 = vld [vmem:[%s6771_s3 + $0x1f8] sm:$0x3]  ;;  %v1332_v16 = vmax.f32 %v7119_v12, %v1225_v14  ;;  %v1227_v3 = vpop.f32.mrb[103].mxu1 }
 0x1d8   :  { %v6344_v37 = vadd.f32 %v5844_v17, %v1398_v15  ;;  %v7115_v32 = vmax.f32 %v7113_v40, %v7114_v29  ;;  %v1462_v15 = vadd.f32 %v5851_v49, %v6087_v27  ;;  %v7120_v0 = vld [vmem:[#allocation116_spill] sm:$0xff]  ;;  %v7121_v62 = vld [vmem:[#allocation27_spill] sm:$0xff]  ;;  %v7122_v36 = vld [vmem:[#allocation78_spill] sm:$0xff]  ;;  %2077 = vmatmul.mubr.f32.vlgmr.msra.gmra.mrb[118].mxu0 %v1512_v8  ;;  %v1517_v11 = vmax.f32 %v1461_v25, 0.0 }
 0x1d9   :  { %v1331_v13 = vmax.f32 %v7120_v0, %v994_v42  ;;  %v7123_v40 = vmax.f32 %v7121_v62, %v7122_v36  ;;  %v7125_v27 = vld [vmem:[#allocation28_spill] sm:$0xff]  ;;  %v7131_v0 = vpack.c.bf16 %v6060_v51, %v6055_v2  ;;  %v4114_v8 = vpack.c.bf16 %v6360_v22, %v6355_v59  ;;  %v7136_v2 = vld [vmem:[#allocation118_spill] sm:$0xff]  ;;  %v3848_v59 = vld [vmem:[%s6771_s3 + $0x218] sm:$0xff] }
 0x1da   :  { %7112 = vst [vmem:[#allocation50_spill] sm:$0xff] %v6344_v37  ;;  %v6349_v24 = vmax.f32 %v7115_v32, %v1325_v19  ;;  %v6365_v19 = vadd.f32 %v5851_v49, %v1400_v10  ;;  %v7124_v32 = vld [vmem:[#allocation117_spill] sm:$0xff]  ;;  %v7126_v37 = vld [vmem:[#allocation79_spill] sm:$0xff]  ;;  %v7129_v14 = vld [vmem:[#allocation80_spill] sm:$0xff]  ;;  %v1516_v25 = vmax.f32 %v6341_v35, 0.0  ;;  %2226 = vmatprep.mubr.f32.mxu0 %v1517_v11  ;;  %v7139_v11 = vpack.c.bf16 %v6105_v23, %v6100_v34 }
 0x1db   :  { %v1402_v29 = vmax.f32 %v7123_v40, %v1330_v39  ;;  %v1333_v47 = vmax.f32 %v7124_v32, %v1227_v3  ;;  %v7127_v10 = vmax.f32 %v7125_v27, %v7126_v37  ;;  %4089 = vmatpush1.bf16.xpose.msra.mxu0 %v7131_v0  ;;  %v1519_v39 = vmax.f32 %v1463_v53, 0.0  ;;  %v998_v3 = vpop.f32.mrb[104].mxu0  ;;  %v7132_v37 = vld [vmem:[#allocation30_spill] sm:$0xff]  ;;  %v1231_v53 = vpop.f32.mrb[104].mxu1  ;;  %v7137_v35 = vld [vmem:[#allocation119_spill] sm:$0xff]  ;;  %v7138_v27 = vld [vmem:[#allocation120_spill] sm:$0xff] }
 0x1dc   :  { %7116 = vst [vmem:[#allocation51_spill] sm:$0xff] %v6349_v24  ;;  %7118 = vst [vmem:[#allocation6_spill] sm:$0xff] %v6365_v19  ;;  %v7128_v24 = vld [vmem:[#allocation29_spill] sm:$0xff]  ;;  %2147 = vmatmul.mubr.f32.vlgmr.msra.gmra.mrb[118].mxu1 %v1514_v45  ;;  %v7135_v45 = vpack.c.bf16 %v6082_v21, %v6077_v38  ;;  %v1338_v51 = vmax.f32 %v7136_v2, %v998_v3  ;;  %v1518_v40 = vmax.f32 %v1462_v15, 0.0  ;;  %4095 = vmatprep.subr.bf16.mxu0 %v7139_v11  ;;  %v7140_v38 = vld [vmem:[#allocation31_spill] sm:$0xff] }
 0x1dd   :  { %v1404_v19 = vmax.f32 %v7127_v10, %v1332_v16  ;;  %v7130_v12 = vmax.f32 %v7128_v24, %v7129_v14  ;;  %v6388_v62 = vadd.f32 %v5844_v17, %v1402_v29  ;;  %v7133_v16 = vld [vmem:[#allocation81_spill] sm:$0xff]  ;;  %2296 = vmatprep.mubr.f32.mxu1 %v1519_v39  ;;  %v1340_v29 = vmax.f32 %v7137_v35, %v1231_v53  ;;  %v1233_v14 = vpop.f32.mrb[105].mxu1  ;;  %v7141_v21 = vld [vmem:[#allocation82_spill] sm:$0xff] }
 0x1de   :  { %v7134_v36 = vmax.f32 %v7132_v37, %v7133_v16  ;;  %4093 = vmatpush1.bf16.xpose.msra.mxu1 %v7135_v45  ;;  %v7143_v0 = vld [vmem:[#allocation121_spill] sm:$0xff]  ;;  %v7144_v15 = vpack.c.bf16 %v6123_v18, %v6118_v61  ;;  %v7145_v37 = vld [vmem:[#allocation32_spill] sm:$0xff]  ;;  %v7146_v16 = vld [vmem:[#allocation83_spill] sm:$0xff] }
 0x1df   :  { %v1403_v42 = vmax.f32 %v7130_v12, %v1331_v13  ;;  %v1000_v13 = vpop.f32.mrb[105].mxu0  ;;  %v6398_v32 = vadd.f32 %v5851_v49, %v1404_v19  ;;  %v1341_v3 = vmax.f32 %v7143_v0, %v1233_v14  ;;  %v1465_v19 = vadd.f32 %v5875_v1, %v6145_v43  ;;  %v7149_v45 = vld [vmem:[#allocation84_spill] sm:$0xff]  ;;  %v7152_v35 = vld [vmem:[#allocation85_spill] sm:$0xff]  ;;  %v7154_v14 = vld [vmem:[#allocation122_spill] sm:$0xff] }
 0x1e0   :  { %v1405_v24 = vmax.f32 %v7134_v36, %v1333_v47  ;;  %v1339_v10 = vmax.f32 %v7138_v27, %v1000_v13  ;;  %v7142_v47 = vmax.f32 %v7140_v38, %v7141_v21  ;;  %4099 = vmatprep.subr.bf16.mxu1 %v7144_v15  ;;  %v7147_v34 = vmax.f32 %v7145_v37, %v7146_v16  ;;  %v7148_v36 = vld [vmem:[#allocation33_spill] sm:$0xff]  ;;  %v1004_v53 = vpop.f32.mrb[106].mxu0  ;;  %v7155_v21 = vld [vmem:[#allocation123_spill] sm:$0xff]  ;;  %v7158_v37 = vld [vmem:[#allocation86_spill] sm:$0xff] }
 0x1e1   :  { %v6415_v39 = vadd.f32 %v5875_v1, %v1403_v42  ;;  %v7150_v2 = vmax.f32 %v7148_v36, %v7149_v45  ;;  %v1467_v13 = vadd.f32 %v5877_v9, %v6167_v58  ;;  %v1464_v43 = vadd.f32 %v5844_v17, %v6132_v60  ;;  %v7151_v42 = vld [vmem:[#allocation34_spill] sm:$0xff]  ;;  %v1006_v38 = vpop.f32.mrb[107].mxu0  ;;  %v7156_v60 = vld [vmem:[#allocation124_spill] sm:$0xff]  ;;  %v7157_v15 = vld [vmem:[#allocation35_spill] sm:$0xff] }
 0x1e2   :  { %v1406_v12 = vmax.f32 %v7142_v47, %v1338_v51  ;;  %v1408_v23 = vmax.f32 %v7147_v34, %v1340_v29  ;;  %v6426_v61 = vadd.f32 %v5877_v9, %v1405_v24  ;;  %v7153_v29 = vmax.f32 %v7151_v42, %v7152_v35  ;;  %2227 = vmatmul.mubr.f32.vlgmr.msra.gmra.mrb[120].mxu0 %v1516_v25  ;;  %v7164_v35 = vld [vmem:[#allocation37_spill] sm:$0xff] }
 0x1e3   :  { %v1407_v51 = vmax.f32 %v7150_v2, %v1339_v10  ;;  %v1346_v11 = vmax.f32 %v7154_v14, %v1004_v53  ;;  %v1237_v10 = vpop.f32.mrb[106].mxu1  ;;  %v1466_v58 = vadd.f32 %v5851_v49, %v6140_v7  ;;  %v1347_v0 = vmax.f32 %v7156_v60, %v1006_v38  ;;  %v7161_v7 = vld [vmem:[#allocation36_spill] sm:$0xff]  ;;  %v7162_v53 = vld [vmem:[#allocation87_spill] sm:$0xff]  ;;  %v7169_v60 = vld [vmem:[#allocation89_spill] sm:$0xff] }
 0x1e4   :  { %v6431_v18 = vadd.f32 %v5844_v17, %v1406_v12  ;;  %v1409_v27 = vmax.f32 %v7153_v29, %v1341_v3  ;;  %v6440_v24 = vadd.f32 %v5851_v49, %v1408_v23  ;;  %v1348_v47 = vmax.f32 %v7155_v21, %v1237_v10  ;;  %v1239_v12 = vpop.f32.mrb[107].mxu1  ;;  %v7160_v3 = vld [vmem:[#allocation125_spill] sm:$0xff]  ;;  %v7165_v29 = vld [vmem:[#allocation88_spill] sm:$0xff]  ;;  %v1010_v21 = vpop.f32.mrb[108].mxu0 }
 0x1e5   :  { %v7159_v16 = vmax.f32 %v7157_v15, %v7158_v37  ;;  %v1349_v36 = vmax.f32 %v7160_v3, %v1239_v12  ;;  %v1521_v45 = vmax.f32 %v1465_v19, 0.0  ;;  %v6449_v2 = vadd.f32 %v5875_v1, %v1407_v51  ;;  %2297 = vmatmul.mubr.f32.vlgmr.msra.gmra.mrb[120].mxu1 %v1518_v40  ;;  %v7168_v51 = vld [vmem:[#allocation38_spill] sm:$0xff] }
 0x1e6   :  { %v7163_v23 = vmax.f32 %v7161_v7, %v7162_v53  ;;  %v7166_v14 = vmax.f32 %v7164_v35, %v7165_v29  ;;  %v7167_v38 = vpack.c.bf16 %v6160_v6, %v6155_v48  ;;  %v6461_v25 = vadd.f32 %v5877_v9, %v1409_v27  ;;  %v1243_v6 = vpop.f32.mrb[108].mxu1  ;;  %v7173_v27 = vld [vmem:[#allocation127_spill] sm:$0xff]  ;;  %v7179_v53 = vld [vmem:[#allocation129_spill] sm:$0xff] }
 0x1e7   :  { %v1410_v34 = vmax.f32 %v7159_v16, %v1346_v11  ;;  %v1523_v11 = vmax.f32 %v1467_v13, 0.0  ;;  %2376 = vmatprep.mubr.f32.mxu0 %v1521_v45  ;;  %v7171_v40 = vpack.c.bf16 %v6181_v33, %v6176_v46  ;;  %v1012_v13 = vpop.f32.mrb[109].mxu0  ;;  %v1356_v37 = vmax.f32 %v7173_v27, %v1243_v6  ;;  %v7174_v16 = vld [vmem:[#allocation128_spill] sm:$0xff]  ;;  %v1245_v3 = vpop.f32.mrb[109].mxu1  ;;  %v7176_v45 = vld [vmem:[#allocation39_spill] sm:$0xff]  ;;  %v7177_v46 = vld [vmem:[#allocation90_spill] sm:$0xff] }
 0x1e8   :  { %v1412_v42 = vmax.f32 %v7163_v23, %v1348_v47  ;;  %v1411_v10 = vmax.f32 %v7166_v14, %v1347_v0  ;;  %4097 = vmatpush1.bf16.xpose.msra.mxu0 %v7167_v38  ;;  %v7170_v47 = vmax.f32 %v7168_v51, %v7169_v60  ;;  %v7172_v0 = vld [vmem:[#allocation126_spill] sm:$0xff]  ;;  %v7178_v33 = vmax.f32 %v7176_v45, %v7177_v46  ;;  %v7181_v14 = vld [vmem:[#allocation40_spill] sm:$0xff]  ;;  %v7182_v38 = vld [vmem:[#allocation91_spill] sm:$0xff] }
 0x1e9   :  { %v6464_v19 = vadd.f32 %v5844_v17, %v1410_v34  ;;  %4101 = vmatpush1.bf16.xpose.msra.mxu1 %v7171_v40  ;;  %v1354_v48 = vmax.f32 %v7172_v0, %v1010_v21  ;;  %2446 = vmatprep.mubr.f32.mxu1 %v1523_v11  ;;  %v1355_v34 = vmax.f32 %v7174_v16, %v1012_v13  ;;  %v7184_v11 = vld [vmem:[#allocation41_spill] sm:$0xff]  ;;  %v7185_v21 = vld [vmem:[#allocation92_spill] sm:$0xff]  ;;  %v7191_v27 = vld [vmem:[#allocation130_spill] sm:$0xff]  ;;  %v1249_v16 = vpop.f32.mrb[110].mxu1 }
 0x1ea   :  { %v1413_v12 = vmax.f32 %v7170_v47, %v1349_v36  ;;  %v6474_v15 = vadd.f32 %v5851_v49, %v1412_v42  ;;  %v7175_v36 = vpack.c.bf16 %v6198_v56, %v6193_v63  ;;  %v1357_v23 = vmax.f32 %v7179_v53, %v1245_v3  ;;  %v1016_v47 = vpop.f32.mrb[110].mxu0  ;;  %v7187_v40 = vld [vmem:[#allocation5_spill] sm:$0xff]  ;;  %v7192_v45 = vld [vmem:[#allocation131_spill] sm:$0xff] }
 0x1eb   :  { %v1414_v7 = vmax.f32 %v7178_v33, %v1354_v48  ;;  %v7180_v42 = vpack.c.bf16 %v6221_v52, %v6216_v4  ;;  %v1469_v35 = vadd.f32 %v5875_v1, %v6231_v57  ;;  %v6491_v29 = vadd.f32 %v5875_v1, %v1411_v10  ;;  %v7188_v10 = vld [vmem:[#allocation42_spill] sm:$0xff]  ;;  %v7189_v48 = vld [vmem:[#allocation93_spill] sm:$0xff]  ;;  %v1018_v3 = vpop.f32.mrb[111].mxu0  ;;  %v7194_v53 = vld [vmem:[#allocation43_spill] sm:$0xff] }
 0x1ec   :  { %4103 = vmatprep.subr.bf16.mxu0 %v7175_v36  ;;  %v7183_v63 = vmax.f32 %v7181_v14, %v7182_v38  ;;  %v7186_v51 = vmax.f32 %v7184_v11, %v7185_v21  ;;  %v1471_v0 = vadd.f32 %v5877_v9, %v7187_v40  ;;  %v6502_v4 = vadd.f32 %v5877_v9, %v1413_v12  ;;  %v7193_v12 = vld [vmem:[#allocation132_spill] sm:$0xff]  ;;  %v7197_v38 = vld [vmem:[#allocation133_spill] sm:$0xff]  ;;  %v7199_v21 = vld [vmem:[#allocation95_spill] sm:$0xff] }
 0x1ed   :  { %4107 = vmatprep.subr.bf16.mxu1 %v7180_v42  ;;  %v1520_v52 = vmax.f32 %v1464_v43, 0.0  ;;  %v6505_v57 = vadd.f32 %v5844_v17, %v1414_v7  ;;  %v7190_v6 = vmax.f32 %v7188_v10, %v7189_v48  ;;  %v1364_v46 = vmax.f32 %v7192_v45, %v1249_v16  ;;  %v1251_v43 = vpop.f32.mrb[111].mxu1  ;;  %v7195_v7 = vld [vmem:[#allocation94_spill] sm:$0xff]  ;;  %v7202_v40 = vld [vmem:[#allocation96_spill] sm:$0xff] }
 0x1ee   :  { %v1416_v56 = vmax.f32 %v7183_v63, %v1356_v37  ;;  %v1415_v60 = vmax.f32 %v7186_v51, %v1355_v34  ;;  %v1362_v37 = vmax.f32 %v7191_v27, %v1016_v47  ;;  %v1522_v34 = vmax.f32 %v1466_v58, 0.0  ;;  %v7198_v58 = vld [vmem:[#allocation44_spill] sm:$0xff]  ;;  %v7201_v47 = vld [vmem:[#allocation45_spill] sm:$0xff]  ;;  %v7206_v16 = vld [vmem:[#allocation46_spill] sm:$0xff] }
 0x1ef   :  { %v1417_v13 = vmax.f32 %v7190_v6, %v1357_v23  ;;  %v1363_v33 = vmax.f32 %v7193_v12, %v1018_v3  ;;  %v7196_v42 = vmax.f32 %v7194_v53, %v7195_v7  ;;  %v1365_v63 = vmax.f32 %v7197_v38, %v1251_v43  ;;  %2377 = vmatmul.mubr.f32.vlgmr.msra.gmra.mrb[122].mxu0 %v1520_v52  ;;  %v7207_v3 = vld [vmem:[#allocation97_spill] sm:$0xff] }
 0x1f0   :  { %v6512_v36 = vadd.f32 %v5851_v49, %v1416_v56  ;;  %v1525_v23 = vmax.f32 %v1469_v35, 0.0  ;;  %v6521_v11 = vadd.f32 %v5875_v1, %v1415_v60  ;;  %v7200_v56 = vmax.f32 %v7198_v58, %v7199_v21  ;;  %2447 = vmatmul.mubr.f32.vlgmr.msra.gmra.mrb[122].mxu1 %v1522_v34  ;;  %v7205_v35 = vld [vmem:[#allocation47_spill] sm:$0xff]  ;;  %v7211_v58 = vld [vmem:[#allocation49_spill] sm:$0xff]  ;;  %v3845_v21 = vld [vmem:[%s6771_s3 + $0x200] sm:$0xff] }
 0x1f1   :  { %v1418_v14 = vmax.f32 %v7196_v42, %v1362_v37  ;;  %v7203_v10 = vmax.f32 %v7201_v47, %v7202_v40  ;;  %v7204_v6 = vpack.c.bf16 %v6257_v55, %v6252_v26  ;;  %v1527_v27 = vmax.f32 %v1471_v0, 0.0  ;;  %v3837_v26 = vld [vmem:[%s6771_s3 + $0x1c0] sm:$0xff]  ;;  %v3847_v47 = vld [vmem:[%s6771_s3 + $0x210] sm:$0xff] }
 0x1f2   :  { %v1420_v51 = vmax.f32 %v7200_v56, %v1364_v46  ;;  %v6533_v52 = vadd.f32 %v5877_v9, %v1417_v13  ;;  %v1468_v60 = vadd.f32 %v5844_v17, %v7205_v35  ;;  %v7208_v45 = vmax.f32 %v7206_v16, %v7207_v3  ;;  %2526 = vmatprep.mubr.f32.mxu0 %v1525_v23  ;;  %v3841_v55 = vld [vmem:[%s6771_s3 + $0x1e0] sm:$0x3] }
 0x1f3   :  { %v1419_v48 = vmax.f32 %v7203_v10, %v1363_v33  ;;  %4105 = vmatpush1.bf16.xpose.msra.mxu0 %v7204_v6  ;;  %v6538_v37 = vadd.f32 %v5844_v17, %v1418_v14  ;;  %v7209_v34 = vpack.c.bf16 %v6275_v28, %v6270_v5  ;;  %v7210_v0 = vld [vmem:[#allocation48_spill] sm:$0xff]  ;;  %2596 = vmatprep.mubr.f32.mxu1 %v1527_v27  ;;  %v3839_v28 = vld [vmem:[%s6771_s3 + $0x1d0] sm:$0xff]  ;;  %v3854_v10 = vld [vmem:[%s6771_s3 + $0x248] sm:$0xff] }
 0x1f4   :  { %v1421_v46 = vmax.f32 %v7208_v45, %v1365_v63  ;;  %v1470_v13 = vadd.f32 %v5851_v49, %v7210_v0  ;;  %v6555_v12 = vadd.f32 %v5851_v49, %v1420_v51  ;;  %4111 = vmatprep.subr.bf16.mxu0 %v4110_v54  ;;  %v3843_v5 = vld [vmem:[%s6771_s3 + $0x1f0] sm:$0x3]  ;;  %v1473_v43 = vadd.f32 %v5875_v1, %v6287_v41  ;;  %v3846_v54 = vld [vmem:[%s6771_s3 + $0x208] sm:$0xff]  ;;  %v3852_v41 = vld [vmem:[%s6771_s3 + $0x238] sm:$0x3] }
 0x1f5   :  { %4109 = vmatpush1.bf16.xpose.msra.mxu1 %v7209_v34  ;;  %v6567_v33 = vadd.f32 %v5875_v1, %v1419_v48  ;;  %v4112_v53 = vpack.c.bf16 %v3841_v55, %v3837_v26  ;;  %v1475_v7 = vadd.f32 %v5877_v9, %v6295_v50  ;;  %v1524_v22 = vmax.f32 %v1468_v60, 0.0  ;;  %v3849_v56 = vld [vmem:[%s6771_s3 + $0x220] sm:$0x3]  ;;  %v7212_v48 = vld [vmem:[#allocation51_spill] sm:$0xff]  ;;  %v3855_v26 = vld [vmem:[%s6771_s3 + $0x250] sm:$0xff] }
 0x1f6   :  { %4115 = vmatprep.subr.bf16.mxu1 %v4114_v8  ;;  %v6581_v20 = vadd.f32 %v5877_v9, %v1421_v46  ;;  %v4116_v8 = vpack.c.bf16 %v3843_v5, %v3839_v28  ;;  %v1526_v42 = vmax.f32 %v1470_v13, 0.0  ;;  %v4118_v14 = vpack.c.bf16 %v3850_v44, %v3846_v54  ;;  %v3856_v27 = vld [vmem:[%s6771_s3 + $0x258] sm:$0xff]  ;;  %v3857_v34 = vld [vmem:[%s6771_s3 + $0x260] sm:$0x3]  ;;  %v3859_v55 = vld [vmem:[%s6771_s3 + $0x270] sm:$0x3] }
 0x1f7   :  { %v1529_v38 = vmax.f32 %v1473_v43, 0.0  ;;  %v4122_v63 = vpack.c.bf16 %v3852_v41, %v3848_v59  ;;  %v1531_v23 = vmax.f32 %v1475_v7, 0.0  ;;  %v1472_v50 = vadd.f32 %v5844_v17, %v7211_v58  ;;  %v3851_v17 = vld [vmem:[%s6771_s3 + $0x230] sm:$0x3]  ;;  %v3862_v0 = vld [vmem:[%s6771_s3 + $0x288] sm:$0xff]  ;;  %v3864_v5 = vld [vmem:[%s6771_s3 + $0x298] sm:$0xff] }
 0x1f8   :  { %v1474_v51 = vadd.f32 %v5851_v49, %v6282_v30  ;;  %v1477_v40 = vadd.f32 %v5875_v1, %v6325_v31  ;;  %v3858_v49 = vld [vmem:[%s6771_s3 + $0x268] sm:$0x3]  ;;  %v4120_v30 = vpack.c.bf16 %v3849_v56, %v3845_v21  ;;  %v1479_v6 = vadd.f32 %v5877_v9, %v7212_v48  ;;  %v3860_v1 = vld [vmem:[%s6771_s3 + $0x278] sm:$0x3]  ;;  %v3853_v9 = vld [vmem:[%s6771_s3 + $0x240] sm:$0xff] }
 0x1f9   :  { %v1528_v31 = vmax.f32 %v1472_v50, 0.0  ;;  %v4124_v35 = vpack.c.bf16 %v3851_v17, %v3847_v47  ;;  %v4126_v16 = vpack.c.bf16 %v3858_v49, %v3854_v10  ;;  %v4130_v45 = vpack.c.bf16 %v3860_v1, %v3856_v27  ;;  %v3866_v13 = vld [vmem:[%s6771_s3 + $0x2a8] sm:$0x3]  ;;  %v3868_v43 = vld [vmem:[%s6771_s3 + $0x2b8] sm:$0x3]  ;;  %v7213_v54 = vld [vmem:[#allocation50_spill] sm:$0xff] }
 0x1fa   :  { %2527 = vmatmul.mubr.f32.vlgmr.msra.gmra.mrb[124].mxu0 %v1524_v22  ;;  %v1530_v60 = vmax.f32 %v1474_v51, 0.0  ;;  %v1533_v3 = vmax.f32 %v1477_v40, 0.0  ;;  %v1535_v46 = vmax.f32 %v1479_v6, 0.0  ;;  %v4128_v28 = vpack.c.bf16 %v3857_v34, %v3853_v9  ;;  %v7214_v7 = vld [vmem:[#allocation6_spill] sm:$0xff]  ;;  %v3872_v50 = vld [vmem:[%s6771_s3 + $0x2d8] sm:$0xff]  ;;  %v3877_v9 = vld [vmem:[%s6771_s3 + $0x300] sm:$0xff] }
 0x1fb   :  { %4113 = vmatpush1.bf16.xpose.msra.mxu0 %v4112_v53  ;;  %2676 = vmatprep.mubr.f32.mxu0 %v1529_v38  ;;  %v1532_v44 = vmax.f32 %v7213_v54, 0.0  ;;  %v4132_v53 = vpack.c.bf16 %v3859_v55, %v3855_v26  ;;  %v1534_v59 = vmax.f32 %v7214_v7, 0.0  ;;  %v4134_v41 = vpack.c.bf16 %v3866_v13, %v3862_v0  ;;  %v3865_v38 = vld [vmem:[%s6771_s3 + $0x2a0] sm:$0x3]  ;;  %v3876_v21 = vld [vmem:[%s6771_s3 + $0x2f8] sm:$0x3] }
 0x1fc   :  { %2597 = vmatmul.mubr.f32.vlgmr.msra.gmra.mrb[124].mxu1 %v1526_v42  ;;  %4119 = vmatprep.subr.bf16.mxu0 %v4118_v14  ;;  %v1537_v22 = vmax.f32 %v6415_v39, 0.0  ;;  %v1539_v42 = vmax.f32 %v6426_v61, 0.0  ;;  %v3861_v14 = vld [vmem:[%s6771_s3 + $0x280] sm:$0xff]  ;;  %v3863_v39 = vld [vmem:[%s6771_s3 + $0x290] sm:$0xff]  ;;  %v1536_v56 = vmax.f32 %v6388_v62, 0.0  ;;  %v1538_v47 = vmax.f32 %v6398_v32, 0.0 }
 0x1fd   :  { %4117 = vmatpush1.bf16.xpose.msra.mxu1 %v4116_v8  ;;  %2746 = vmatprep.mubr.f32.mxu1 %v1531_v23  ;;  %v4138_v8 = vpack.c.bf16 %v3868_v43, %v3864_v5  ;;  %v3867_v61 = vld [vmem:[%s6771_s3 + $0x2b0] sm:$0x3]  ;;  %v3874_v23 = vld [vmem:[%s6771_s3 + $0x2e8] sm:$0x3]  ;;  %v4136_v58 = vpack.c.bf16 %v3865_v38, %v3861_v14  ;;  %v1541_v40 = vmax.f32 %v6449_v2, 0.0  ;;  %v4146_v10 = vpack.c.bf16 %v3876_v21, %v3872_v50  ;;  %v3880_v27 = vld [vmem:[%s6771_s3 + $0x318] sm:$0xff] }
 0x1fe   :  { %4123 = vmatprep.subr.bf16.mxu1 %v4122_v63  ;;  %v3870_v63 = vld [vmem:[%s6771_s3 + $0x2c8] sm:$0xff]  ;;  %v4140_v51 = vpack.c.bf16 %v3867_v61, %v3863_v39  ;;  %v1543_v49 = vmax.f32 %v6461_v25, 0.0  ;;  %v3873_v62 = vld [vmem:[%s6771_s3 + $0x2e0] sm:$0x3]  ;;  %v3871_v32 = vld [vmem:[%s6771_s3 + $0x2d0] sm:$0xff]  ;;  %v1544_v13 = vmax.f32 %v6464_v19, 0.0 }
 0x1ff   :  { %v4142_v17 = vpack.c.bf16 %v3874_v23, %v3870_v63  ;;  %v3875_v2 = vld [vmem:[%s6771_s3 + $0x2f0] sm:$0x3]  ;;  %v3878_v25 = vld [vmem:[%s6771_s3 + $0x308] sm:$0xff]  ;;  %v3884_v1 = vld [vmem:[%s6771_s3 + $0x338] sm:$0x3]  ;;  %v1546_v5 = vmax.f32 %v6474_v15, 0.0 }
 0x200   :  { %v3882_v48 = vld [vmem:[%s6771_s3 + $0x328] sm:$0x3]  ;;  %v3888_v55 = vld [vmem:[%s6771_s3 + $0x358] sm:$0xff]  ;;  %v1549_v54 = vmax.f32 %v6521_v11, 0.0  ;;  %v3885_v7 = vld [vmem:[%s6771_s3 + $0x340] sm:$0xff]  ;;  %v1552_v14 = vmax.f32 %v6538_v37, 0.0 }
 0x201   :  { %v3890_v34 = vld [vmem:[%s6771_s3 + $0x368] sm:$0x3]  ;;  %v3892_v0 = vld [vmem:[%s6771_s3 + $0x378] sm:$0x3]  ;;  %v3889_v19 = vld [vmem:[%s6771_s3 + $0x360] sm:$0x3] }
 0x202   :  { %2677 = vmatmul.mubr.f32.vlgmr.msra.gmra.mrb[126].mxu0 %v1528_v31  ;;  %v1540_v31 = vmax.f32 %v6431_v18, 0.0  ;;  %v3881_v18 = vld [vmem:[%s6771_s3 + $0x320] sm:$0x3]  ;;  %v3887_v15 = vld [vmem:[%s6771_s3 + $0x350] sm:$0xff]  ;;  %v1554_v38 = vmax.f32 %v6555_v12, 0.0 }
 0x203   :  { %4121 = vmatpush1.bf16.xpose.msra.mxu0 %v4120_v30  ;;  %2826 = vmatprep.mubr.f32.mxu0 %v1533_v3  ;;  %v3869_v30 = vld [vmem:[%s6771_s3 + $0x2c0] sm:$0xff]  ;;  %v1545_v3 = vmax.f32 %v6491_v29, 0.0  ;;  %v3883_v29 = vld [vmem:[%s6771_s3 + $0x330] sm:$0x3]  ;;  %v4152_v26 = vpack.c.bf16 %v3881_v18, %v3877_v9 }
 0x204   :  { %2747 = vmatmul.mubr.f32.vlgmr.msra.gmra.mrb[126].mxu1 %v1530_v60  ;;  %4127 = vmatprep.subr.bf16.mxu0 %v4126_v16  ;;  %v4144_v6 = vpack.c.bf16 %v3873_v62, %v3869_v30  ;;  %v1542_v60 = vmax.f32 %v6440_v24, 0.0  ;;  %v4150_v16 = vpack.c.bf16 %v3882_v48, %v3878_v25  ;;  %v3879_v24 = vld [vmem:[%s6771_s3 + $0x310] sm:$0xff] }
 0x205   :  { %4125 = vmatpush1.bf16.xpose.msra.mxu1 %v4124_v35  ;;  %2896 = vmatprep.mubr.f32.mxu1 %v1535_v46  ;;  %v4148_v35 = vpack.c.bf16 %v3875_v2, %v3871_v32  ;;  %v1547_v46 = vmax.f32 %v6502_v4, 0.0  ;;  %v3886_v4 = vld [vmem:[%s6771_s3 + $0x348] sm:$0xff]  ;;  %v3891_v11 = vld [vmem:[%s6771_s3 + $0x370] sm:$0x3] }
 0x206   :  { %4131 = vmatprep.subr.bf16.mxu1 %v4130_v45  ;;  %v4154_v45 = vpack.c.bf16 %v3884_v1, %v3880_v27  ;;  %v4158_v43 = vpack.c.bf16 %v3890_v34, %v3886_v4 }
 0x20a   :  { %2827 = vmatmul.mubr.f32.vlgmr.msra.gmra.mrb[128].mxu0 %v1532_v44  ;;  %v4162_v44 = vpack.c.bf16 %v3892_v0, %v3888_v55 }
 0x20b   :  { %4129 = vmatpush1.bf16.xpose.msra.mxu0 %v4128_v28  ;;  %2976 = vmatprep.mubr.f32.mxu0 %v1537_v22  ;;  %v4156_v28 = vpack.c.bf16 %v3883_v29, %v3879_v24  ;;  %v1550_v22 = vmax.f32 %v6512_v36, 0.0 }
 0x20c   :  { %2897 = vmatmul.mubr.f32.vlgmr.msra.gmra.mrb[128].mxu1 %v1534_v59  ;;  %4135 = vmatprep.subr.bf16.mxu0 %v4134_v41  ;;  %v1548_v59 = vmax.f32 %v6505_v57, 0.0  ;;  %v4164_v41 = vpack.c.bf16 %v3891_v11, %v3887_v15 }
 0x20d   :  { %4133 = vmatpush1.bf16.xpose.msra.mxu1 %v4132_v53  ;;  %3046 = vmatprep.mubr.f32.mxu1 %v1539_v42  ;;  %v1551_v53 = vmax.f32 %v6533_v52, 0.0  ;;  %v4160_v52 = vpack.c.bf16 %v3889_v19, %v3885_v7  ;;  %v1555_v42 = vmax.f32 %v6581_v20, 0.0 }
 0x20e   :  { %4139 = vmatprep.subr.bf16.mxu1 %v4138_v8  ;;  %v1553_v8 = vmax.f32 %v6567_v33, 0.0 }
 0x212   :  { %2977 = vmatmul.mubr.f32.vlgmr.msra.gmra.mrb[130].mxu0 %v1536_v56 }
 0x213   :  { %4137 = vmatpush1.bf16.xpose.msra.mxu0 %v4136_v58  ;;  %3126 = vmatprep.mubr.f32.mxu0 %v1541_v40 }
 0x214   :  { %3047 = vmatmul.mubr.f32.vlgmr.msra.gmra.mrb[130].mxu1 %v1538_v47  ;;  %4143 = vmatprep.subr.bf16.mxu0 %v4142_v17 }
 0x215   :  { %4141 = vmatpush1.bf16.xpose.msra.mxu1 %v4140_v51  ;;  %3196 = vmatprep.mubr.f32.mxu1 %v1543_v49 }
 0x216   :  { %4147 = vmatprep.subr.bf16.mxu1 %v4146_v10 }
 0x21a   :  { %3127 = vmatmul.mubr.f32.vlgmr.msra.gmra.mrb[132].mxu0 %v1540_v31 }
 0x21b   :  { %4145 = vmatpush1.bf16.xpose.msra.mxu0 %v4144_v6  ;;  %3276 = vmatprep.mubr.f32.mxu0 %v1545_v3 }
 0x21c   :  { %3197 = vmatmul.mubr.f32.vlgmr.msra.gmra.mrb[132].mxu1 %v1542_v60  ;;  %4151 = vmatprep.subr.bf16.mxu0 %v4150_v16 }
 0x21d   :  { %4149 = vmatpush1.bf16.xpose.msra.mxu1 %v4148_v35  ;;  %3346 = vmatprep.mubr.f32.mxu1 %v1547_v46 }
 0x21e   :  { %4155 = vmatprep.subr.bf16.mxu1 %v4154_v45 }
 0x222   :  { %3277 = vmatmul.mubr.f32.vlgmr.msra.gmra.mrb[134].mxu0 %v1544_v13 }
 0x223   :  { %4153 = vmatpush1.bf16.xpose.msra.mxu0 %v4152_v26  ;;  %3426 = vmatprep.mubr.f32.mxu0 %v1549_v54 }
 0x224   :  { %3347 = vmatmul.mubr.f32.vlgmr.msra.gmra.mrb[134].mxu1 %v1546_v5  ;;  %4159 = vmatprep.subr.bf16.mxu0 %v4158_v43 }
 0x225   :  { %4157 = vmatpush1.bf16.xpose.msra.mxu1 %v4156_v28  ;;  %3496 = vmatprep.mubr.f32.mxu1 %v1551_v53 }
 0x226   :  { %4163 = vmatprep.subr.bf16.mxu1 %v4162_v44 }
 0x22a   :  { %3427 = vmatmul.mubr.f32.vlgmr.msra.gmra.mrb[136].mxu0 %v1548_v59 }
 0x22b   :  { %4161 = vmatpush1.bf16.xpose.msra.mxu0 %v4160_v52  ;;  %3576 = vmatprep.mubr.f32.mxu0 %v1553_v8 }
 0x22c   :  { %3497 = vmatmul.mubr.f32.vlgmr.msra.gmra.mrb[136].mxu1 %v1550_v22 }
 0x22d   :  { %4165 = vmatpush1.bf16.xpose.msra.mxu1 %v4164_v41  ;;  %3646 = vmatprep.mubr.f32.mxu1 %v1555_v42 }
 0x232   :  { %3577 = vmatmul.mubr.f32.vlgmr.msra.gmra.mrb[138].mxu0 %v1552_v14 }
 0x234   :  { %3647 = vmatmul.mubr.f32.vlgmr.msra.gmra.mrb[138].mxu1 %v1554_v38 }
 0x28d   :  { %v1639_v57 = vpop.f32.mrb[112].mxu0 }
 0x28e   :  { %v1709_v39 = vpop.f32.mrb[112].mxu1  ;;  %v1641_v61 = vpop.f32.mrb[113].mxu0 }
 0x28f   :  { %v1710_v36 = vadd.f32 %v1709_v39, %v1639_v57  ;;  %v1711_v63 = vpop.f32.mrb[113].mxu1 }
 0x295   :  { %v1779_v23 = vpop.f32.mrb[114].mxu0 }
 0x296   :  { %v1780_v33 = vadd.f32 %v1779_v23, %v1710_v36  ;;  %v1781_v50 = vpop.f32.mrb[115].mxu0 }
 0x297   :  { %v1849_v58 = vpop.f32.mrb[114].mxu1 }
 0x298   :  { %v1851_v21 = vpop.f32.mrb[115].mxu1  ;;  %v1850_v20 = vadd.f32 %v1849_v58, %v1780_v33 }
 0x2a0   :  { %v1928_v56 = vpop.f32.mrb[116].mxu0 }
 0x2a1   :  { %v1930_v47 = vpop.f32.mrb[117].mxu0 }
 0x2a2   :  { %v1998_v51 = vpop.f32.mrb[116].mxu1 }
 0x2a3   :  { %v1999_v17 = vadd.f32 %v1998_v51, %v1928_v56  ;;  %v2000_v37 = vpop.f32.mrb[117].mxu1 }
 0x2a5   :  { %v2002_v40 = vadd.f32 %v1999_v17, %v1850_v20 }
 0x2ab   :  { %v2078_v12 = vpop.f32.mrb[118].mxu0 }
 0x2ac   :  { %v2080_v49 = vpop.f32.mrb[119].mxu0 }
 0x2af   :  { %v2148_v10 = vpop.f32.mrb[118].mxu1 }
 0x2b0   :  { %v2149_v30 = vadd.f32 %v2148_v10, %v2078_v12  ;;  %v2150_v62 = vpop.f32.mrb[119].mxu1  ;;  %v3893_v10 = vld [vmem:[%s6772_s4] ss:$0 sm:$0xff] }
 0x2b2   :  { %v2152_v32 = vadd.f32 %v2149_v30, %v2002_v40 }
 0x2b5   :  { %v2228_v2 = vpop.f32.mrb[120].mxu0 }
 0x2b6   :  { %v2230_v48 = vpop.f32.mrb[121].mxu0 }
 0x2b8   :  { %v2298_v25 = vpop.f32.mrb[120].mxu1 }
 0x2b9   :  { %v2299_v6 = vadd.f32 %v2298_v25, %v2228_v2  ;;  %v2300_v27 = vpop.f32.mrb[121].mxu1 }
 0x2bb   :  { %v2302_v1 = vadd.f32 %v2299_v6, %v2152_v32 }
 0x2c2   :  { %v2378_v31 = vpop.f32.mrb[122].mxu0 }
 0x2c3   :  { %v2448_v35 = vpop.f32.mrb[122].mxu1  ;;  %v2380_v60 = vpop.f32.mrb[123].mxu0 }
 0x2c4   :  { %v2449_v16 = vadd.f32 %v2448_v35, %v2378_v31  ;;  %v2450_v3 = vpop.f32.mrb[123].mxu1 }
 0x2c6   :  { %v2452_v45 = vadd.f32 %v2449_v16, %v2302_v1 }
 0x2cd   :  { %v2528_v46 = vpop.f32.mrb[124].mxu0 }
 0x2ce   :  { %v2530_v18 = vpop.f32.mrb[125].mxu0 }
 0x2cf   :  { %v2598_v9 = vpop.f32.mrb[124].mxu1 }
 0x2d0   :  { %v2599_v24 = vadd.f32 %v2598_v9, %v2528_v46  ;;  %v2600_v29 = vpop.f32.mrb[125].mxu1 }
 0x2d2   :  { %v2602_v4 = vadd.f32 %v2599_v24, %v2452_v45 }
 0x2d5   :  { %v2678_v34 = vpop.f32.mrb[126].mxu0 }
 0x2d6   :  { %v2680_v55 = vpop.f32.mrb[127].mxu0 }
 0x2d7   :  { %v2748_v26 = vpop.f32.mrb[126].mxu1 }
 0x2d8   :  { %v2749_v0 = vadd.f32 %v2748_v26, %v2678_v34  ;;  %v2750_v13 = vpop.f32.mrb[127].mxu1 }
 0x2da   :  { %v2752_v28 = vadd.f32 %v2749_v0, %v2602_v4 }
 0x2dd   :  { %v2828_v5 = vpop.f32.mrb[128].mxu0 }
 0x2de   :  { %v2830_v54 = vpop.f32.mrb[129].mxu0 }
 0x2df   :  { %v2898_v43 = vpop.f32.mrb[128].mxu1 }
 0x2e0   :  { %v2899_v44 = vadd.f32 %v2898_v43, %v2828_v5  ;;  %v2900_v53 = vpop.f32.mrb[129].mxu1 }
 0x2e2   :  { %v2902_v7 = vadd.f32 %v2899_v44, %v2752_v28 }
 0x2e5   :  { %v2978_v19 = vpop.f32.mrb[130].mxu0 }
 0x2e6   :  { %v2980_v11 = vpop.f32.mrb[131].mxu0 }
 0x2e7   :  { %v3048_v15 = vpop.f32.mrb[130].mxu1 }
 0x2e8   :  { %v3049_v52 = vadd.f32 %v3048_v15, %v2978_v19  ;;  %v3050_v59 = vpop.f32.mrb[131].mxu1 }
 0x2ea   :  { %v3052_v41 = vadd.f32 %v3049_v52, %v2902_v7 }
 0x2ed   :  { %v3128_v22 = vpop.f32.mrb[132].mxu0 }
 0x2ee   :  { %v3130_v42 = vpop.f32.mrb[133].mxu0 }
 0x2ef   :  { %v3198_v8 = vpop.f32.mrb[132].mxu1 }
 0x2f0   :  { %v3199_v14 = vadd.f32 %v3198_v8, %v3128_v22  ;;  %v3200_v38 = vpop.f32.mrb[133].mxu1 }
 0x2f2   :  { %v3202_v57 = vadd.f32 %v3199_v14, %v3052_v41 }
 0x2f5   :  { %v3278_v39 = vpop.f32.mrb[134].mxu0 }
 0x2f6   :  { %v3280_v36 = vpop.f32.mrb[135].mxu0 }
 0x2f7   :  { %v3348_v61 = vpop.f32.mrb[134].mxu1 }
 0x2f8   :  { %v3349_v63 = vadd.f32 %v3348_v61, %v3278_v39  ;;  %v3350_v23 = vpop.f32.mrb[135].mxu1 }
 0x2fa   :  { %v3352_v33 = vadd.f32 %v3349_v63, %v3202_v57 }
 0x2fd   :  { %v3428_v58 = vpop.f32.mrb[136].mxu0 }
 0x2fe   :  { %v3430_v21 = vpop.f32.mrb[137].mxu0 }
 0x2ff   :  { %v3498_v50 = vpop.f32.mrb[136].mxu1 }
 0x300   :  { %v3499_v20 = vadd.f32 %v3498_v50, %v3428_v58  ;;  %v3500_v56 = vpop.f32.mrb[137].mxu1 }
 0x302   :  { %v3502_v51 = vadd.f32 %v3499_v20, %v3352_v33 }
 0x305   :  { %v3578_v47 = vpop.f32.mrb[138].mxu0 }
 0x306   :  { %v3580_v37 = vpop.f32.mrb[139].mxu0 }
 0x307   :  { %v3648_v17 = vpop.f32.mrb[138].mxu1 }
 0x308   :  { %v3649_v40 = vadd.f32 %v3648_v17, %v3578_v47  ;;  %v3650_v12 = vpop.f32.mrb[139].mxu1 }
 0x30a   :  { %v3652_v49 = vadd.f32 %v3649_v40, %v3502_v51 }
 0x30c   :  { %v3660_v30 = vadd.f32 %v3893_v10, %v3652_v49 }
 0x30e   :  { %3662 = vst.msk [vmem:[#allocation2] sm:$0xff] %vm3661_vm1, %v3660_v30 }
 0x30f   :  { %4178 = shalt.err (!%p4175_p4)
}
 0x310   :  { %s4179_s29 = scalar_lea.hbm %s6773_s5, 128 }
 0x311   :  { %p4180_p5 = scmp.ne.s32.totalorder %s6773_s5, %s4179_s29  ;;  %p4183_p6 = scmp.lt.u32.totalorder %s4179_s29, %s6773_s5 }
 0x313   :  { %p4185_p7 = pnand %p4183_p6, %p4180_p5 }
 0x315   :  { %4188 = shalt.err (!%p4185_p7)
}
 0x316   :  { %3672 = dma.vmem_to_hbm [thread:$0]  %s3670_s25, 128, %s6773_s5, [#allocation3]  }
 0x317   :  { %4189 = dma.done.wait [#allocation3], 128  }
 0x318   :  { %4190 = vsyncadd [#allocation3], 4294967168 }
 0x319   :  { %3676 = vsyncpa [#allocation3], 1 }

</bundles_post_ra>
